<compile_context>
chip_gen: v7x
topology: tpu7x:2x2x1
jax: 0.10.0
libtpu: 0.0.40
codegen_flags: <defaults>
</compile_context>

<pallas_src>
import functools

import jax
import jax.numpy as jnp
from jax.experimental import pallas as pl
from jax.experimental.pallas import tpu as pltpu


# ----------------------------------------------------------------------------
# Pallas kernel: one direction of one bidirectional LSTM layer, TT steps/grid step.
# grid = (2, n_chunks); axis 0 = direction (0 fwd, 1 bwd, "parallel"), axis 1 = chunk
# ("arbitrary", sequential recurrence). h/c scratch persists across chunks.
# ----------------------------------------------------------------------------
def _lstm_dir_chunk_kernel(len_ref, gin_ref, whh_ref, out_ref, h_ref, c_ref, *,
                           unroll):
    d = pl.program_id(0)                 # 0 = forward, 1 = backward
    chunk = pl.program_id(1)
    TT = gin_ref.shape[0]
    Hp = h_ref.shape[-1]
    T_total = pl.num_programs(1) * TT

    @pl.when(chunk == 0)
    def _():
        h_ref[...] = jnp.zeros_like(h_ref)
        c_ref[...] = jnp.zeros_like(c_ref)

    lengths = len_ref[...]               # (B, 1) int32, loop-invariant
    whh = whh_ref[...]                   # (Hp, 4*Hp), this direction's W_hh

    s0 = chunk * TT                      # recurrence steps completed before this chunk

    def body(j, carry):
        h_prev, c_prev = carry
        s = s0 + j
        # Global timestep and block-local row for this direction.
        t = (1 - d) * s + d * (T_total - 1 - s)
        row = (1 - d) * j + d * (TT - 1 - j)

        # gin already holds x_t @ W_ih + b (precomputed outside, stored bf16/f32).
        gates = gin_ref[row].astype(jnp.float32) + jnp.dot(
            h_prev.astype(whh.dtype), whh, preferred_element_type=jnp.float32)

        # Gate columns were reordered offline to (i, f, o, g): one wide sigmoid slab
        # (tanh form -> single EUP op class), one tanh slab. Hp % 128 == 0 so all
        # slices are lane-aligned.
        sig = 0.5 * jnp.tanh(0.5 * gates[:, :3 * Hp]) + 0.5
        i_g = sig[:, 0 * Hp:1 * Hp]
        f_g = sig[:, 1 * Hp:2 * Hp]
        o_g = sig[:, 2 * Hp:3 * Hp]
        g_g = jnp.tanh(gates[:, 3 * Hp:])

        c_new = f_g * c_prev + i_g * g_g
        h_new = o_g * jnp.tanh(c_new)

        # packed-sequence semantics: padded steps carry state, output zero.
        valid = t < lengths                                  # (B, 1) bool
        h_prev = jnp.where(valid, h_new, h_prev)
        c_prev = jnp.where(valid, c_new, c_prev)
        out_ref[row] = jnp.where(valid, h_new, 0.0).astype(out_ref.dtype)
        return h_prev, c_prev

    h, c = jax.lax.fori_loop(0, TT, body, (h_ref[...], c_ref[...]), unroll=unroll)
    h_ref[...] = h
    c_ref[...] = c


def bilstm_layer(gin, whh_cat, len2d, *, Hp, TT, weight_pipeline_mode=None):
    """One bidirectional LSTM layer given precomputed fused input gates.

    gin:     (T_pad, B_pad, 8*Hp) = x @ [W_ih_f | W_ih_b] + b, bf16 or f32.
    whh_cat: (Hp, 8*Hp) = [W_hh_f | W_hh_b], bf16 or f32.
    len2d:   (B_pad, 1) int32 per-sequence lengths.
    Returns  (T_pad, B_pad, 2*Hp) f32: forward hidden in [:, :, :Hp], backward after.
    """
    T_pad, B, G2 = gin.shape
    G = 4 * Hp
    assert G2 == 2 * G and T_pad % TT == 0
    n_chunks = T_pad // TT

    # Chunk -> time-block mapping per direction (fwd: c, bwd: mirrored).
    def time_blk(d, c):
        return c + d * (n_chunks - 1 - 2 * c)

    def const_spec(shape, index_map):
        if weight_pipeline_mode is None:
            return pl.BlockSpec(shape, index_map)
        return pl.BlockSpec(shape, index_map, pipeline_mode=weight_pipeline_mode)

    # --- explicit VMEM budget from block sizes (per review) ---
    whh_bufs = 1 if weight_pipeline_mode is not None else 2
    needed = (2 * TT * B * G * gin.dtype.itemsize              # gin block, double-buffered
              + 2 * TT * B * Hp * 4                            # out block, double-buffered
              + whh_bufs * Hp * G * whh_cat.dtype.itemsize     # W_hh (single-buffered)
              + 2 * B * Hp * 4                                 # h / c scratch
              + B * 4)                                         # lengths
    vmem_limit = max(int(needed * 1.2) + (4 << 20), 32 << 20)
    cap = 100 << 20                                            # v5e/v6e: 128 MiB physical
    try:
        cap = min(cap, pltpu.get_tpu_info().vmem_capacity_bytes - (8 << 20))  # v7x: 64 MiB
    except Exception:
        cap = 56 << 20
    vmem_limit = min(vmem_limit, cap)

    # Cap vreg pressure at large H (review: avoid full unroll of TT when H >= 1024).
    unroll = True if Hp <= 512 else 2

    out = pl.pallas_call(
        functools.partial(_lstm_dir_chunk_kernel, unroll=unroll),
        out_shape=jax.ShapeDtypeStruct((T_pad, B, 2 * Hp), jnp.float32),
        grid_spec=pltpu.PrefetchScalarGridSpec(
            num_scalar_prefetch=0,
            grid=(2, n_chunks),
            in_specs=[
                const_spec((B, 1), lambda d, c: (0, 0)),                        # lengths
                pl.BlockSpec((TT, B, G), lambda d, c: (time_blk(d, c), 0, d)),  # gin
                const_spec((Hp, G), lambda d, c: (0, d)),                       # W_hh
            ],
            out_specs=pl.BlockSpec((TT, B, Hp), lambda d, c: (time_blk(d, c), 0, d)),
            scratch_shapes=[pltpu.VMEM((B, Hp), jnp.float32)] * 2,
        ),
        # direction axis "parallel" -> can shard across v7x's two TensorCores;
        # chunk axis "arbitrary" -> sequential recurrence.
        compiler_params=pltpu.CompilerParams(
            dimension_semantics=("parallel", "arbitrary"),
            vmem_limit_bytes=vmem_limit),
    )(len2d, gin, whh_cat)
    return out


# ----------------------------------------------------------------------------
# Offline parameter prep: reorder gate columns (i,f,g,o)->(i,f,o,g), pad H->Hp
# (lane-dense), and fuse forward|backward weights along columns.
# ----------------------------------------------------------------------------
def _prep_layer_params(p, H, Hp, layer_idx, mxu_dtype):
    perm = jnp.array([0, 1, 3, 2], dtype=jnp.int32)   # (i,f,g,o) -> (i,f,o,g)

    def cols(w):
        lead = w.shape[:-1]
        w4 = w.reshape(lead + (4, H))
        w4 = jnp.take(w4, perm, axis=-2)
        w4 = jnp.pad(w4, [(0, 0)] * len(lead) + [(0, 0), (0, Hp - H)])
        return w4.reshape(lead + (4 * Hp,))

    def hidden_rows(w):
        # layers > 0: input rows are [fwd hidden (H) | bwd hidden (H)] -> pad each to Hp
        w2 = w.reshape(2, H, w.shape[-1])
        w2 = jnp.pad(w2, ((0, 0), (0, Hp - H), (0, 0)))
        return w2.reshape(2 * Hp, w.shape[-1])

    wih_f, wih_b = cols(p["wih_f"]), cols(p["wih_b"])
    if layer_idx > 0:
        wih_f, wih_b = hidden_rows(wih_f), hidden_rows(wih_b)
    whh_f = jnp.pad(cols(p["whh_f"]), ((0, Hp - H), (0, 0)))
    whh_b = jnp.pad(cols(p["whh_b"]), ((0, Hp - H), (0, 0)))
    b_f, b_b = cols(p["b_f"]), cols(p["b_b"])

    wih_cat = jnp.concatenate([wih_f, wih_b], axis=1)                     # (D_in, 8*Hp)
    b_cat = jnp.concatenate([b_f, b_b], axis=1)                           # (1, 8*Hp)
    whh_cat = jnp.concatenate([whh_f, whh_b], axis=1).astype(mxu_dtype)   # (Hp, 8*Hp)
    return wih_cat, b_cat, whh_cat


# ----------------------------------------------------------------------------
# Fused fwd+bwd input projection (hoisted out of the recurrent kernel): one big
# XLA matmul over the whole padded sequence; f32 accumulation, stored in
# mxu_dtype (bf16 by default) to halve the gin HBM round trip.
# TODO(synk): on v5e (HBM-bound) the projection could instead be fused into the
# Pallas kernel per chunk with W_ih resident in VMEM.
# ----------------------------------------------------------------------------
def _input_gates(x, wih_cat, bias_cat, mxu_dtype):
    T, B, D = x.shape
    acc = jnp.dot(x.astype(mxu_dtype).reshape(T * B, D), wih_cat.astype(mxu_dtype),
                  preferred_element_type=jnp.float32)
    gin = acc + bias_cat.astype(jnp.float32)
    return gin.astype(mxu_dtype).reshape(T, B, -1)


# ----------------------------------------------------------------------------
# Module-level forward (glue in plain JAX). Fully jittable: no host sync.
# ----------------------------------------------------------------------------
def rnn_encoder_forward(x, layer_params, lengths=None, drop_prob=0.0,
                        training=False, TT=8, mxu_dtype=jnp.bfloat16,
                        single_buffer_weights=True):
    """Reproduces RNNEncoder.forward. x: (T, B, input_size) float32."""
    T, B, _ = x.shape
    H = layer_params[0]["whh_f"].shape[0]
    Hp = -(-H // 128) * 128          # lane-dense gate slices / output stores

    x_sb = jnp.sum(x, -1)
    mask = (x_sb != 0).astype(jnp.float32)       # omask, as in sort_batch
    if lengths is None:
        # TODO(synk): like the original module this treats a timestep whose features
        # sum to exactly 0 as padding; pass `lengths` explicitly when known.
        lengths = mask.sum(0).astype(jnp.int32)  # (B,)

    # Pad batch to a multiple of 8 (f32 sublanes) and time to a multiple of TT so
    # every block is full-sized; padded batch rows get length 0 (never update state).
    # TODO(synk): for best MXU utilization batch more sequences per call (B ~ 64-256).
    B_pad = -(-B // 8) * 8
    T_pad = -(-T // TT) * TT
    h_in = jnp.pad(x.astype(jnp.float32), ((0, T_pad - T), (0, B_pad - B), (0, 0)))
    len2d = jnp.pad(lengths.astype(jnp.int32), (0, B_pad - B))[:, None]  # (B_pad, 1)

    weight_pipeline_mode = None
    if single_buffer_weights and hasattr(pl, "Buffered"):
        try:
            weight_pipeline_mode = pl.Buffered(1)   # single-buffer loop-invariants
        except Exception:
            weight_pipeline_mode = None

    out = None
    for li, p in enumerate(layer_params):
        wih_cat, b_cat, whh_cat = _prep_layer_params(p, H, Hp, li, mxu_dtype)
        gin = _input_gates(h_in, wih_cat, b_cat, mxu_dtype)   # (T_pad, B_pad, 8*Hp)
        out = bilstm_layer(gin, whh_cat, len2d, Hp=Hp, TT=TT,
                           weight_pipeline_mode=weight_pipeline_mode)
        # Next layer consumes the (T, B, 2*Hp) output directly (padded hidden columns
        # are exact zeros; the next layer's W_ih rows are padded to match).
        h_in = out

    if Hp == H:
        enc = out[:T, :B, :]
    else:
        enc = jnp.concatenate([out[:T, :B, :H], out[:T, :B, Hp:Hp + H]], axis=-1)
    # TODO(synk): F.dropout omitted (drop_prob=0.0 / eval mode); training-mode dropout
    # could be implemented with pltpu.prng_random_bits.
    return enc, mask


# ----------------------------------------------------------------------------
# Deterministic parameter init (shapes follow torch.nn.LSTM(bidirectional=True))
# ----------------------------------------------------------------------------
def init_params(key, input_size, hidden_size, num_layers):
    params = []
    k = 1.0 / jnp.sqrt(hidden_size)
    for layer in range(num_layers):
        d_in = input_size if layer == 0 else 2 * hidden_size
        keys = jax.random.split(key, 7)
        key = keys[0]
        u = lambda kk, shape: jax.random.uniform(kk, shape, jnp.float32, -k, k)
        params.append({
            # stored pre-transposed: (D, 4H) / (H, 4H); bias = b_ih + b_hh combined
            "wih_f": u(keys[1], (d_in, 4 * hidden_size)),
            "whh_f": u(keys[2], (hidden_size, 4 * hidden_size)),
            "b_f":   u(keys[3], (1, 4 * hidden_size)),
            "wih_b": u(keys[4], (d_in, 4 * hidden_size)),
            "whh_b": u(keys[5], (hidden_size, 4 * hidden_size)),
            "b_b":   u(keys[6], (1, 4 * hidden_size)),
        })
    return params


# ----------------------------------------------------------------------------
# Pure-JAX reference (same masked-bidirectional-LSTM semantics) for checking
# ----------------------------------------------------------------------------
def _ref_dir(x, mask, wih, whh, b, reverse):
    T, B, _ = x.shape
    H = whh.shape[0]
    h = jnp.zeros((B, H), jnp.float32)
    c = jnp.zeros((B, H), jnp.float32)
    outs = [None] * T
    order = range(T - 1, -1, -1) if reverse else range(T)
    for t in order:
        m = mask[t][:, None]
        gates = x[t] @ wih + h @ whh + b[0]
        i = jax.nn.sigmoid(gates[:, :H])
        f = jax.nn.sigmoid(gates[:, H:2 * H])
        g = jnp.tanh(gates[:, 2 * H:3 * H])
        o = jax.nn.sigmoid(gates[:, 3 * H:])
        c_new = f * c + i * g
        h_new = o * jnp.tanh(c_new)
        h = m * h_new + (1.0 - m) * h
        c = m * c_new + (1.0 - m) * c
        outs[t] = m * h_new
    return jnp.stack(outs, 0)


def _ref_forward(x, layer_params):
    mask = (jnp.sum(x, -1) != 0).astype(jnp.float32)
    h = x
    for p in layer_params:
        f = _ref_dir(h, mask, p["wih_f"], p["whh_f"], p["b_f"], reverse=False)
        b = _ref_dir(h, mask, p["wih_b"], p["whh_b"], p["b_b"], reverse=True)
        h = jnp.concatenate([f, b], axis=-1)
    return h, mask


if __name__ == "__main__":
    T, B, D, H, L = 8, 4, 16, 32, 2

    key = jax.random.PRNGKey(0)
    kx, kp = jax.random.split(key)

    # padded batch of sequences (padding positions zeroed)
    lengths = jnp.array([8, 6, 5, 3], dtype=jnp.int32)
    x = jax.random.normal(kx, (T, B, D), jnp.float32)
    valid = (jnp.arange(T)[:, None] < lengths[None, :]).astype(jnp.float32)
    x = x * valid[:, :, None]

    params = init_params(kp, D, H, L)
    ref_out, ref_mask = _ref_forward(x, params)

    def run(single_buffer):
        # f32 MXU path, tight check; TT=4 exercises multi-chunk state carry and
        # both directions of the (2, n_chunks) grid.
        fwd32 = jax.jit(functools.partial(
            rnn_encoder_forward, TT=4, mxu_dtype=jnp.float32,
            single_buffer_weights=single_buffer))
        out, mask = fwd32(x, params)
        out = jax.block_until_ready(out)
        mask = jax.block_until_ready(mask)
        assert out.shape == (T, B, 2 * H), out.shape
        assert mask.shape == (T, B), mask.shape
        err = float(jnp.max(jnp.abs(out - ref_out)))
        assert err < 5e-4, err
        assert jnp.allclose(mask, ref_mask)

        # Default path: bf16 at the MXU + bf16 gin (halved weight/activation DMA+VMEM);
        # gate math and h/c state stay f32.
        fwd_bf16 = jax.jit(functools.partial(
            rnn_encoder_forward, single_buffer_weights=single_buffer))
        out_bf, _ = fwd_bf16(x, params)
        out_bf = jax.block_until_ready(out_bf)
        assert float(jnp.max(jnp.abs(out_bf - ref_out))) < 0.15

    try:
        run(single_buffer=True)     # pl.Buffered(1) single-buffered loop-invariants
    except Exception:
        run(single_buffer=False)    # fallback if this build rejects Buffered(1)

    print("KERNEL_OK")
</pallas_src>

<mosaic_0001>
module attributes {stable_mosaic.version = 11 : i64} {
  func.func @_lstm_dir_chunk_kernel(%arg0: i32, %arg1: i32, %arg2: memref<8x1xi32, #tpu.memory_space<vmem>>, %arg3: memref<4x8x512xf32, #tpu.memory_space<vmem>>, %arg4: memref<128x512xf32, #tpu.memory_space<vmem>>, %arg5: memref<4x8x128xf32, #tpu.memory_space<vmem>>, %arg6: memref<8x128xf32, #tpu.memory_space<vmem>>, %arg7: memref<8x128xf32, #tpu.memory_space<vmem>>) attributes {dimension_semantics = [#tpu.dimension_semantics<parallel>, #tpu.dimension_semantics<arbitrary>], iteration_bounds = array<i64: 2, 2>, scalar_prefetch = 0 : i64, scratch_operands = 2 : i64, tpu.core_type = #tpu.core_type<tc>, window_params = [{pipeline_mode = #tpu.pipeline_mode<synchronous>, transform_indices = @transform_0, window_bounds = array<i64: 8, 1>}, {transform_indices = @transform_1, window_bounds = array<i64: 4, 8, 512>}, {pipeline_mode = #tpu.pipeline_mode<synchronous>, transform_indices = @transform_2, window_bounds = array<i64: 128, 512>}, {transform_indices = @transform_3, window_bounds = array<i64: 4, 8, 128>}]} {
    %c0_i32 = arith.constant 0 : i32
    %0 = arith.cmpi eq, %arg1, %c0_i32 : i32
    %1 = arith.extui %0 : i1 to i32
    %c0_i32_0 = arith.constant 0 : i32
    %2 = arith.cmpi ne, %1, %c0_i32_0 : i32
    scf.if %2 {
      %cst_64 = arith.constant 0.000000e+00 : f32
      %210 = vector.broadcast %cst_64 : f32 to vector<8x128xf32>
      %c0_65 = arith.constant 0 : index
      %c0_66 = arith.constant 0 : index
      %211 = vector.load %arg6[%c0_65, %c0_66] : memref<8x128xf32, #tpu.memory_space<vmem>>, vector<8x128xf32>
      tpu.vector_store %arg6[%c0_65, %c0_66], %210 {strides = array<i32>} : memref<8x128xf32, #tpu.memory_space<vmem>>, vector<8x128xf32>,
      %cst_67 = arith.constant 0.000000e+00 : f32
      %212 = vector.broadcast %cst_67 : f32 to vector<8x128xf32>
      %c0_68 = arith.constant 0 : index
      %c0_69 = arith.constant 0 : index
      %213 = vector.load %arg7[%c0_68, %c0_69] : memref<8x128xf32, #tpu.memory_space<vmem>>, vector<8x128xf32>
      tpu.vector_store %arg7[%c0_68, %c0_69], %212 {strides = array<i32>} : memref<8x128xf32, #tpu.memory_space<vmem>>, vector<8x128xf32>,
    } else {
    }
    %c0 = arith.constant 0 : index
    %c0_1 = arith.constant 0 : index
    %3 = vector.load %arg2[%c0, %c0_1] : memref<8x1xi32, #tpu.memory_space<vmem>>, vector<8x1xi32>
    %c0_2 = arith.constant 0 : index
    %c0_3 = arith.constant 0 : index
    %4 = vector.load %arg4[%c0_2, %c0_3] : memref<128x512xf32, #tpu.memory_space<vmem>>, vector<128x512xf32>
    %c4_i32 = arith.constant 4 : i32
    %5 = arith.muli %arg1, %c4_i32 : i32
    %c0_4 = arith.constant 0 : index
    %c0_5 = arith.constant 0 : index
    %6 = vector.load %arg6[%c0_4, %c0_5] : memref<8x128xf32, #tpu.memory_space<vmem>>, vector<8x128xf32>
    %c0_6 = arith.constant 0 : index
    %c0_7 = arith.constant 0 : index
    %7 = vector.load %arg7[%c0_6, %c0_7] : memref<8x128xf32, #tpu.memory_space<vmem>>, vector<8x128xf32>
    %c0_i32_8 = arith.constant 0 : i32
    %8 = arith.addi %5, %c0_i32_8 : i32
    %c1_i32 = arith.constant 1 : i32
    %9 = arith.subi %c1_i32, %arg0 : i32
    %10 = arith.muli %9, %8 : i32
    %c7_i32 = arith.constant 7 : i32
    %11 = arith.subi %c7_i32, %8 : i32
    %12 = arith.muli %arg0, %11 : i32
    %13 = arith.addi %10, %12 : i32
    %c1_i32_9 = arith.constant 1 : i32
    %14 = arith.subi %c1_i32_9, %arg0 : i32
    %15 = arith.muli %14, %c0_i32_8 : i32
    %c3_i32 = arith.constant 3 : i32
    %16 = arith.subi %c3_i32, %c0_i32_8 : i32
    %17 = arith.muli %arg0, %16 : i32
    %18 = arith.addi %15, %17 : i32
    %19 = arith.index_cast %18 : i32 to index
    %c0_10 = arith.constant 0 : index
    %c0_11 = arith.constant 0 : index
    %20 = vector.load %arg3[%19, %c0_10, %c0_11] : memref<4x8x512xf32, #tpu.memory_space<vmem>>, vector<1x8x512xf32>
    %21 = vector.shape_cast %20 : vector<1x8x512xf32> to vector<8x512xf32>
    %cst = arith.constant dense<0.000000e+00> : vector<8x512xf32>
    %22 = tpu.matmul %6, %4, %cst {dimension_numbers = #tpu.dot_dimension_numbers<[1], [0], [0], [1], [0, 0, 1, 1], [], []>} : vector<8x128xf32>, vector<128x512xf32>, vector<8x512xf32> -> vector<8x512xf32>
    %23 = arith.addf %21, %22 : vector<8x512xf32>
    %24 = vector.extract_strided_slice %23 {offsets = [0, 0], sizes = [8, 384], strides = [1, 1]} : vector<8x512xf32> to vector<8x384xf32>
    %cst_12 = arith.constant 5.000000e-01 : f32
    %25 = vector.broadcast %cst_12 : f32 to vector<8x384xf32>
    %26 = arith.mulf %25, %24 : vector<8x384xf32>
    %27 = math.tanh %26 : vector<8x384xf32>
    %cst_13 = arith.constant 5.000000e-01 : f32
    %28 = vector.broadcast %cst_13 : f32 to vector<8x384xf32>
    %29 = arith.mulf %28, %27 : vector<8x384xf32>
    %cst_14 = arith.constant 5.000000e-01 : f32
    %30 = vector.broadcast %cst_14 : f32 to vector<8x384xf32>
    %31 = arith.addf %29, %30 : vector<8x384xf32>
    %32 = vector.extract_strided_slice %31 {offsets = [0, 0], sizes = [8, 128], strides = [1, 1]} : vector<8x384xf32> to vector<8x128xf32>
    %33 = vector.extract_strided_slice %31 {offsets = [0, 128], sizes = [8, 128], strides = [1, 1]} : vector<8x384xf32> to vector<8x128xf32>
    %34 = vector.extract_strided_slice %31 {offsets = [0, 256], sizes = [8, 128], strides = [1, 1]} : vector<8x384xf32> to vector<8x128xf32>
    %35 = vector.extract_strided_slice %23 {offsets = [0, 384], sizes = [8, 128], strides = [1, 1]} : vector<8x512xf32> to vector<8x128xf32>
    %36 = math.tanh %35 : vector<8x128xf32>
    %37 = arith.mulf %33, %7 : vector<8x128xf32>
    %38 = arith.mulf %32, %36 : vector<8x128xf32>
    %39 = arith.addf %37, %38 : vector<8x128xf32>
    %40 = math.tanh %39 : vector<8x128xf32>
    %41 = arith.mulf %34, %40 : vector<8x128xf32>
    %42 = vector.broadcast %13 : i32 to vector<8x1xi32>
    %43 = arith.cmpi slt, %42, %3 : vector<8x1xi32>
    %44 = vector.shape_cast %43 : vector<8x1xi1> to vector<8x1xi1>
    %45 = vector.broadcast %44 : vector<8x1xi1> to vector<8x128xi1>
    %46 = arith.select %45, %41, %6 : vector<8x128xi1>, vector<8x128xf32>
    %47 = vector.shape_cast %43 : vector<8x1xi1> to vector<8x1xi1>
    %48 = vector.broadcast %47 : vector<8x1xi1> to vector<8x128xi1>
    %49 = arith.select %48, %39, %7 : vector<8x128xi1>, vector<8x128xf32>
    %cst_15 = arith.constant 0.000000e+00 : f32
    %50 = vector.shape_cast %43 : vector<8x1xi1> to vector<8x1xi1>
    %51 = vector.broadcast %50 : vector<8x1xi1> to vector<8x128xi1>
    %52 = vector.broadcast %cst_15 : f32 to vector<8x128xf32>
    %53 = arith.select %51, %41, %52 : vector<8x128xi1>, vector<8x128xf32>
    %54 = arith.index_cast %18 : i32 to index
    %c0_16 = arith.constant 0 : index
    %c0_17 = arith.constant 0 : index
    %55 = vector.load %arg5[%54, %c0_16, %c0_17] : memref<4x8x128xf32, #tpu.memory_space<vmem>>, vector<1x8x128xf32>
    %56 = vector.shape_cast %55 : vector<1x8x128xf32> to vector<8x128xf32>
    %57 = vector.shape_cast %53 : vector<8x128xf32> to vector<1x8x128xf32>
    tpu.vector_store %arg5[%54, %c0_16, %c0_17], %57 {strides = array<i32>} : memref<4x8x128xf32, #tpu.memory_space<vmem>>, vector<1x8x128xf32>,
    %c1_i32_18 = arith.constant 1 : i32
    %58 = arith.addi %5, %c1_i32_18 : i32
    %c1_i32_19 = arith.constant 1 : i32
    %59 = arith.subi %c1_i32_19, %arg0 : i32
    %60 = arith.muli %59, %58 : i32
    %c7_i32_20 = arith.constant 7 : i32
    %61 = arith.subi %c7_i32_20, %58 : i32
    %62 = arith.muli %arg0, %61 : i32
    %63 = arith.addi %60, %62 : i32
    %c1_i32_21 = arith.constant 1 : i32
    %64 = arith.subi %c1_i32_21, %arg0 : i32
    %65 = arith.muli %64, %c1_i32_18 : i32
    %c3_i32_22 = arith.constant 3 : i32
    %66 = arith.subi %c3_i32_22, %c1_i32_18 : i32
    %67 = arith.muli %arg0, %66 : i32
    %68 = arith.addi %65, %67 : i32
    %69 = arith.index_cast %68 : i32 to index
    %c0_23 = arith.constant 0 : index
    %c0_24 = arith.constant 0 : index
    %70 = vector.load %arg3[%69, %c0_23, %c0_24] : memref<4x8x512xf32, #tpu.memory_space<vmem>>, vector<1x8x512xf32>
    %71 = vector.shape_cast %70 : vector<1x8x512xf32> to vector<8x512xf32>
    %cst_25 = arith.constant dense<0.000000e+00> : vector<8x512xf32>
    %72 = tpu.matmul %46, %4, %cst_25 {dimension_numbers = #tpu.dot_dimension_numbers<[1], [0], [0], [1], [0, 0, 1, 1], [], []>} : vector<8x128xf32>, vector<128x512xf32>, vector<8x512xf32> -> vector<8x512xf32>
    %73 = arith.addf %71, %72 : vector<8x512xf32>
    %74 = vector.extract_strided_slice %73 {offsets = [0, 0], sizes = [8, 384], strides = [1, 1]} : vector<8x512xf32> to vector<8x384xf32>
    %cst_26 = arith.constant 5.000000e-01 : f32
    %75 = vector.broadcast %cst_26 : f32 to vector<8x384xf32>
    %76 = arith.mulf %75, %74 : vector<8x384xf32>
    %77 = math.tanh %76 : vector<8x384xf32>
    %cst_27 = arith.constant 5.000000e-01 : f32
    %78 = vector.broadcast %cst_27 : f32 to vector<8x384xf32>
    %79 = arith.mulf %78, %77 : vector<8x384xf32>
    %cst_28 = arith.constant 5.000000e-01 : f32
    %80 = vector.broadcast %cst_28 : f32 to vector<8x384xf32>
    %81 = arith.addf %79, %80 : vector<8x384xf32>
    %82 = vector.extract_strided_slice %81 {offsets = [0, 0], sizes = [8, 128], strides = [1, 1]} : vector<8x384xf32> to vector<8x128xf32>
    %83 = vector.extract_strided_slice %81 {offsets = [0, 128], sizes = [8, 128], strides = [1, 1]} : vector<8x384xf32> to vector<8x128xf32>
    %84 = vector.extract_strided_slice %81 {offsets = [0, 256], sizes = [8, 128], strides = [1, 1]} : vector<8x384xf32> to vector<8x128xf32>
    %85 = vector.extract_strided_slice %73 {offsets = [0, 384], sizes = [8, 128], strides = [1, 1]} : vector<8x512xf32> to vector<8x128xf32>
    %86 = math.tanh %85 : vector<8x128xf32>
    %87 = arith.mulf %83, %49 : vector<8x128xf32>
    %88 = arith.mulf %82, %86 : vector<8x128xf32>
    %89 = arith.addf %87, %88 : vector<8x128xf32>
    %90 = math.tanh %89 : vector<8x128xf32>
    %91 = arith.mulf %84, %90 : vector<8x128xf32>
    %92 = vector.broadcast %63 : i32 to vector<8x1xi32>
    %93 = arith.cmpi slt, %92, %3 : vector<8x1xi32>
    %94 = vector.shape_cast %93 : vector<8x1xi1> to vector<8x1xi1>
    %95 = vector.broadcast %94 : vector<8x1xi1> to vector<8x128xi1>
    %96 = arith.select %95, %91, %46 : vector<8x128xi1>, vector<8x128xf32>
    %97 = vector.shape_cast %93 : vector<8x1xi1> to vector<8x1xi1>
    %98 = vector.broadcast %97 : vector<8x1xi1> to vector<8x128xi1>
    %99 = arith.select %98, %89, %49 : vector<8x128xi1>, vector<8x128xf32>
    %cst_29 = arith.constant 0.000000e+00 : f32
    %100 = vector.shape_cast %93 : vector<8x1xi1> to vector<8x1xi1>
    %101 = vector.broadcast %100 : vector<8x1xi1> to vector<8x128xi1>
    %102 = vector.broadcast %cst_29 : f32 to vector<8x128xf32>
    %103 = arith.select %101, %91, %102 : vector<8x128xi1>, vector<8x128xf32>
    %104 = arith.index_cast %68 : i32 to index
    %c0_30 = arith.constant 0 : index
    %c0_31 = arith.constant 0 : index
    %105 = vector.load %arg5[%104, %c0_30, %c0_31] : memref<4x8x128xf32, #tpu.memory_space<vmem>>, vector<1x8x128xf32>
    %106 = vector.shape_cast %105 : vector<1x8x128xf32> to vector<8x128xf32>
    %107 = vector.shape_cast %103 : vector<8x128xf32> to vector<1x8x128xf32>
    tpu.vector_store %arg5[%104, %c0_30, %c0_31], %107 {strides = array<i32>} : memref<4x8x128xf32, #tpu.memory_space<vmem>>, vector<1x8x128xf32>,
    %c2_i32 = arith.constant 2 : i32
    %108 = arith.addi %5, %c2_i32 : i32
    %c1_i32_32 = arith.constant 1 : i32
    %109 = arith.subi %c1_i32_32, %arg0 : i32
    %110 = arith.muli %109, %108 : i32
    %c7_i32_33 = arith.constant 7 : i32
    %111 = arith.subi %c7_i32_33, %108 : i32
    %112 = arith.muli %arg0, %111 : i32
    %113 = arith.addi %110, %112 : i32
    %c1_i32_34 = arith.constant 1 : i32
    %114 = arith.subi %c1_i32_34, %arg0 : i32
    %115 = arith.muli %114, %c2_i32 : i32
    %c3_i32_35 = arith.constant 3 : i32
    %116 = arith.subi %c3_i32_35, %c2_i32 : i32
    %117 = arith.muli %arg0, %116 : i32
    %118 = arith.addi %115, %117 : i32
    %119 = arith.index_cast %118 : i32 to index
    %c0_36 = arith.constant 0 : index
    %c0_37 = arith.constant 0 : index
    %120 = vector.load %arg3[%119, %c0_36, %c0_37] : memref<4x8x512xf32, #tpu.memory_space<vmem>>, vector<1x8x512xf32>
    %121 = vector.shape_cast %120 : vector<1x8x512xf32> to vector<8x512xf32>
    %cst_38 = arith.constant dense<0.000000e+00> : vector<8x512xf32>
    %122 = tpu.matmul %96, %4, %cst_38 {dimension_numbers = #tpu.dot_dimension_numbers<[1], [0], [0], [1], [0, 0, 1, 1], [], []>} : vector<8x128xf32>, vector<128x512xf32>, vector<8x512xf32> -> vector<8x512xf32>
    %123 = arith.addf %121, %122 : vector<8x512xf32>
    %124 = vector.extract_strided_slice %123 {offsets = [0, 0], sizes = [8, 384], strides = [1, 1]} : vector<8x512xf32> to vector<8x384xf32>
    %cst_39 = arith.constant 5.000000e-01 : f32
    %125 = vector.broadcast %cst_39 : f32 to vector<8x384xf32>
    %126 = arith.mulf %125, %124 : vector<8x384xf32>
    %127 = math.tanh %126 : vector<8x384xf32>
    %cst_40 = arith.constant 5.000000e-01 : f32
    %128 = vector.broadcast %cst_40 : f32 to vector<8x384xf32>
    %129 = arith.mulf %128, %127 : vector<8x384xf32>
    %cst_41 = arith.constant 5.000000e-01 : f32
    %130 = vector.broadcast %cst_41 : f32 to vector<8x384xf32>
    %131 = arith.addf %129, %130 : vector<8x384xf32>
    %132 = vector.extract_strided_slice %131 {offsets = [0, 0], sizes = [8, 128], strides = [1, 1]} : vector<8x384xf32> to vector<8x128xf32>
    %133 = vector.extract_strided_slice %131 {offsets = [0, 128], sizes = [8, 128], strides = [1, 1]} : vector<8x384xf32> to vector<8x128xf32>
    %134 = vector.extract_strided_slice %131 {offsets = [0, 256], sizes = [8, 128], strides = [1, 1]} : vector<8x384xf32> to vector<8x128xf32>
    %135 = vector.extract_strided_slice %123 {offsets = [0, 384], sizes = [8, 128], strides = [1, 1]} : vector<8x512xf32> to vector<8x128xf32>
    %136 = math.tanh %135 : vector<8x128xf32>
    %137 = arith.mulf %133, %99 : vector<8x128xf32>
    %138 = arith.mulf %132, %136 : vector<8x128xf32>
    %139 = arith.addf %137, %138 : vector<8x128xf32>
    %140 = math.tanh %139 : vector<8x128xf32>
    %141 = arith.mulf %134, %140 : vector<8x128xf32>
    %142 = vector.broadcast %113 : i32 to vector<8x1xi32>
    %143 = arith.cmpi slt, %142, %3 : vector<8x1xi32>
    %144 = vector.shape_cast %143 : vector<8x1xi1> to vector<8x1xi1>
    %145 = vector.broadcast %144 : vector<8x1xi1> to vector<8x128xi1>
    %146 = arith.select %145, %141, %96 : vector<8x128xi1>, vector<8x128xf32>
    %147 = vector.shape_cast %143 : vector<8x1xi1> to vector<8x1xi1>
    %148 = vector.broadcast %147 : vector<8x1xi1> to vector<8x128xi1>
    %149 = arith.select %148, %139, %99 : vector<8x128xi1>, vector<8x128xf32>
    %cst_42 = arith.constant 0.000000e+00 : f32
    %150 = vector.shape_cast %143 : vector<8x1xi1> to vector<8x1xi1>
    %151 = vector.broadcast %150 : vector<8x1xi1> to vector<8x128xi1>
    %152 = vector.broadcast %cst_42 : f32 to vector<8x128xf32>
    %153 = arith.select %151, %141, %152 : vector<8x128xi1>, vector<8x128xf32>
    %154 = arith.index_cast %118 : i32 to index
    %c0_43 = arith.constant 0 : index
    %c0_44 = arith.constant 0 : index
    %155 = vector.load %arg5[%154, %c0_43, %c0_44] : memref<4x8x128xf32, #tpu.memory_space<vmem>>, vector<1x8x128xf32>
    %156 = vector.shape_cast %155 : vector<1x8x128xf32> to vector<8x128xf32>
    %157 = vector.shape_cast %153 : vector<8x128xf32> to vector<1x8x128xf32>
    tpu.vector_store %arg5[%154, %c0_43, %c0_44], %157 {strides = array<i32>} : memref<4x8x128xf32, #tpu.memory_space<vmem>>, vector<1x8x128xf32>,
    %c3_i32_45 = arith.constant 3 : i32
    %158 = arith.addi %5, %c3_i32_45 : i32
    %c1_i32_46 = arith.constant 1 : i32
    %159 = arith.subi %c1_i32_46, %arg0 : i32
    %160 = arith.muli %159, %158 : i32
    %c7_i32_47 = arith.constant 7 : i32
    %161 = arith.subi %c7_i32_47, %158 : i32
    %162 = arith.muli %arg0, %161 : i32
    %163 = arith.addi %160, %162 : i32
    %c1_i32_48 = arith.constant 1 : i32
    %164 = arith.subi %c1_i32_48, %arg0 : i32
    %165 = arith.muli %164, %c3_i32_45 : i32
    %c3_i32_49 = arith.constant 3 : i32
    %166 = arith.subi %c3_i32_49, %c3_i32_45 : i32
    %167 = arith.muli %arg0, %166 : i32
    %168 = arith.addi %165, %167 : i32
    %169 = arith.index_cast %168 : i32 to index
    %c0_50 = arith.constant 0 : index
    %c0_51 = arith.constant 0 : index
    %170 = vector.load %arg3[%169, %c0_50, %c0_51] : memref<4x8x512xf32, #tpu.memory_space<vmem>>, vector<1x8x512xf32>
    %171 = vector.shape_cast %170 : vector<1x8x512xf32> to vector<8x512xf32>
    %cst_52 = arith.constant dense<0.000000e+00> : vector<8x512xf32>
    %172 = tpu.matmul %146, %4, %cst_52 {dimension_numbers = #tpu.dot_dimension_numbers<[1], [0], [0], [1], [0, 0, 1, 1], [], []>} : vector<8x128xf32>, vector<128x512xf32>, vector<8x512xf32> -> vector<8x512xf32>
    %173 = arith.addf %171, %172 : vector<8x512xf32>
    %174 = vector.extract_strided_slice %173 {offsets = [0, 0], sizes = [8, 384], strides = [1, 1]} : vector<8x512xf32> to vector<8x384xf32>
    %cst_53 = arith.constant 5.000000e-01 : f32
    %175 = vector.broadcast %cst_53 : f32 to vector<8x384xf32>
    %176 = arith.mulf %175, %174 : vector<8x384xf32>
    %177 = math.tanh %176 : vector<8x384xf32>
    %cst_54 = arith.constant 5.000000e-01 : f32
    %178 = vector.broadcast %cst_54 : f32 to vector<8x384xf32>
    %179 = arith.mulf %178, %177 : vector<8x384xf32>
    %cst_55 = arith.constant 5.000000e-01 : f32
    %180 = vector.broadcast %cst_55 : f32 to vector<8x384xf32>
    %181 = arith.addf %179, %180 : vector<8x384xf32>
    %182 = vector.extract_strided_slice %181 {offsets = [0, 0], sizes = [8, 128], strides = [1, 1]} : vector<8x384xf32> to vector<8x128xf32>
    %183 = vector.extract_strided_slice %181 {offsets = [0, 128], sizes = [8, 128], strides = [1, 1]} : vector<8x384xf32> to vector<8x128xf32>
    %184 = vector.extract_strided_slice %181 {offsets = [0, 256], sizes = [8, 128], strides = [1, 1]} : vector<8x384xf32> to vector<8x128xf32>
    %185 = vector.extract_strided_slice %173 {offsets = [0, 384], sizes = [8, 128], strides = [1, 1]} : vector<8x512xf32> to vector<8x128xf32>
    %186 = math.tanh %185 : vector<8x128xf32>
    %187 = arith.mulf %183, %149 : vector<8x128xf32>
    %188 = arith.mulf %182, %186 : vector<8x128xf32>
    %189 = arith.addf %187, %188 : vector<8x128xf32>
    %190 = math.tanh %189 : vector<8x128xf32>
    %191 = arith.mulf %184, %190 : vector<8x128xf32>
    %192 = vector.broadcast %163 : i32 to vector<8x1xi32>
    %193 = arith.cmpi slt, %192, %3 : vector<8x1xi32>
    %194 = vector.shape_cast %193 : vector<8x1xi1> to vector<8x1xi1>
    %195 = vector.broadcast %194 : vector<8x1xi1> to vector<8x128xi1>
    %196 = arith.select %195, %191, %146 : vector<8x128xi1>, vector<8x128xf32>
    %197 = vector.shape_cast %193 : vector<8x1xi1> to vector<8x1xi1>
    %198 = vector.broadcast %197 : vector<8x1xi1> to vector<8x128xi1>
    %199 = arith.select %198, %189, %149 : vector<8x128xi1>, vector<8x128xf32>
    %cst_56 = arith.constant 0.000000e+00 : f32
    %200 = vector.shape_cast %193 : vector<8x1xi1> to vector<8x1xi1>
    %201 = vector.broadcast %200 : vector<8x1xi1> to vector<8x128xi1>
    %202 = vector.broadcast %cst_56 : f32 to vector<8x128xf32>
    %203 = arith.select %201, %191, %202 : vector<8x128xi1>, vector<8x128xf32>
    %204 = arith.index_cast %168 : i32 to index
    %c0_57 = arith.constant 0 : index
    %c0_58 = arith.constant 0 : index
    %205 = vector.load %arg5[%204, %c0_57, %c0_58] : memref<4x8x128xf32, #tpu.memory_space<vmem>>, vector<1x8x128xf32>
    %206 = vector.shape_cast %205 : vector<1x8x128xf32> to vector<8x128xf32>
    %207 = vector.shape_cast %203 : vector<8x128xf32> to vector<1x8x128xf32>
    tpu.vector_store %arg5[%204, %c0_57, %c0_58], %207 {strides = array<i32>} : memref<4x8x128xf32, #tpu.memory_space<vmem>>, vector<1x8x128xf32>,
    %c4_i32_59 = arith.constant 4 : i32
    %c0_60 = arith.constant 0 : index
    %c0_61 = arith.constant 0 : index
    %208 = vector.load %arg6[%c0_60, %c0_61] : memref<8x128xf32, #tpu.memory_space<vmem>>, vector<8x128xf32>
    tpu.vector_store %arg6[%c0_60, %c0_61], %196 {strides = array<i32>} : memref<8x128xf32, #tpu.memory_space<vmem>>, vector<8x128xf32>,
    %c0_62 = arith.constant 0 : index
    %c0_63 = arith.constant 0 : index
    %209 = vector.load %arg7[%c0_62, %c0_63] : memref<8x128xf32, #tpu.memory_space<vmem>>, vector<8x128xf32>
    tpu.vector_store %arg7[%c0_62, %c0_63], %199 {strides = array<i32>} : memref<8x128xf32, #tpu.memory_space<vmem>>, vector<8x128xf32>,
    return
  }
  func.func @transform_0(%arg0: i32, %arg1: i32) -> (i32, i32) {
    %c0_i32 = arith.constant 0 : i32
    %c0_i32_0 = arith.constant 0 : i32
    %c0_i32_1 = arith.constant 0 : i32
    return %c0_i32, %c0_i32_0 : i32, i32
  }
  func.func @transform_1(%arg0: i32, %arg1: i32) -> (i32, i32, i32) {
    %c2_i32 = arith.constant 2 : i32
    %0 = arith.muli %c2_i32, %arg1 : i32
    %c1_i32 = arith.constant 1 : i32
    %1 = arith.subi %c1_i32, %0 : i32
    %2 = arith.muli %arg0, %1 : i32
    %3 = arith.addi %arg1, %2 : i32
    %c0_i32 = arith.constant 0 : i32
    %c0_i32_0 = arith.constant 0 : i32
    return %3, %c0_i32, %arg0 : i32, i32, i32
  }
  func.func @transform_2(%arg0: i32, %arg1: i32) -> (i32, i32) {
    %c0_i32 = arith.constant 0 : i32
    %c0_i32_0 = arith.constant 0 : i32
    return %c0_i32, %arg0 : i32, i32
  }
  func.func @transform_3(%arg0: i32, %arg1: i32) -> (i32, i32, i32) {
    %c2_i32 = arith.constant 2 : i32
    %0 = arith.muli %c2_i32, %arg1 : i32
    %c1_i32 = arith.constant 1 : i32
    %1 = arith.subi %c1_i32, %0 : i32
    %2 = arith.muli %arg0, %1 : i32
    %3 = arith.addi %arg1, %2 : i32
    %c0_i32 = arith.constant 0 : i32
    %c0_i32_0 = arith.constant 0 : i32
    return %3, %c0_i32, %arg0 : i32, i32, i32
  }
}

module attributes {stable_mosaic.version = 11 : i64} {
  func.func @_lstm_dir_chunk_kernel(%arg0: i32, %arg1: i32, %arg2: memref<8x1xi32, #tpu.memory_space<vmem>>, %arg3: memref<4x8x512xf32, #tpu.memory_space<vmem>>, %arg4: memref<128x512xf32, #tpu.memory_space<vmem>>, %arg5: memref<4x8x128xf32, #tpu.memory_space<vmem>>, %arg6: memref<8x128xf32, #tpu.memory_space<vmem>>, %arg7: memref<8x128xf32, #tpu.memory_space<vmem>>) attributes {dimension_semantics = [#tpu.dimension_semantics<parallel>, #tpu.dimension_semantics<arbitrary>], iteration_bounds = array<i64: 2, 2>, scalar_prefetch = 0 : i64, scratch_operands = 2 : i64, tpu.core_type = #tpu.core_type<tc>, window_params = [{pipeline_mode = #tpu.pipeline_mode<synchronous>, transform_indices = @transform_0, window_bounds = array<i64: 8, 1>}, {transform_indices = @transform_1, window_bounds = array<i64: 4, 8, 512>}, {transform_indices = @transform_2, window_bounds = array<i64: 128, 512>}, {transform_indices = @transform_3, window_bounds = array<i64: 4, 8, 128>}]} {
    %c0_i32 = arith.constant 0 : i32
    %0 = arith.cmpi eq, %arg1, %c0_i32 : i32
    %1 = arith.extui %0 : i1 to i32
    %c0_i32_0 = arith.constant 0 : i32
    %2 = arith.cmpi ne, %1, %c0_i32_0 : i32
    scf.if %2 {
      %cst_64 = arith.constant 0.000000e+00 : f32
      %210 = vector.broadcast %cst_64 : f32 to vector<8x128xf32>
      %c0_65 = arith.constant 0 : index
      %c0_66 = arith.constant 0 : index
      %211 = vector.load %arg6[%c0_65, %c0_66] : memref<8x128xf32, #tpu.memory_space<vmem>>, vector<8x128xf32>
      tpu.vector_store %arg6[%c0_65, %c0_66], %210 {strides = array<i32>} : memref<8x128xf32, #tpu.memory_space<vmem>>, vector<8x128xf32>,
      %cst_67 = arith.constant 0.000000e+00 : f32
      %212 = vector.broadcast %cst_67 : f32 to vector<8x128xf32>
      %c0_68 = arith.constant 0 : index
      %c0_69 = arith.constant 0 : index
      %213 = vector.load %arg7[%c0_68, %c0_69] : memref<8x128xf32, #tpu.memory_space<vmem>>, vector<8x128xf32>
      tpu.vector_store %arg7[%c0_68, %c0_69], %212 {strides = array<i32>} : memref<8x128xf32, #tpu.memory_space<vmem>>, vector<8x128xf32>,
    } else {
    }
    %c0 = arith.constant 0 : index
    %c0_1 = arith.constant 0 : index
    %3 = vector.load %arg2[%c0, %c0_1] : memref<8x1xi32, #tpu.memory_space<vmem>>, vector<8x1xi32>
    %c0_2 = arith.constant 0 : index
    %c0_3 = arith.constant 0 : index
    %4 = vector.load %arg4[%c0_2, %c0_3] : memref<128x512xf32, #tpu.memory_space<vmem>>, vector<128x512xf32>
    %c4_i32 = arith.constant 4 : i32
    %5 = arith.muli %arg1, %c4_i32 : i32
    %c0_4 = arith.constant 0 : index
    %c0_5 = arith.constant 0 : index
    %6 = vector.load %arg6[%c0_4, %c0_5] : memref<8x128xf32, #tpu.memory_space<vmem>>, vector<8x128xf32>
    %c0_6 = arith.constant 0 : index
    %c0_7 = arith.constant 0 : index
    %7 = vector.load %arg7[%c0_6, %c0_7] : memref<8x128xf32, #tpu.memory_space<vmem>>, vector<8x128xf32>
    %c0_i32_8 = arith.constant 0 : i32
    %8 = arith.addi %5, %c0_i32_8 : i32
    %c1_i32 = arith.constant 1 : i32
    %9 = arith.subi %c1_i32, %arg0 : i32
    %10 = arith.muli %9, %8 : i32
    %c7_i32 = arith.constant 7 : i32
    %11 = arith.subi %c7_i32, %8 : i32
    %12 = arith.muli %arg0, %11 : i32
    %13 = arith.addi %10, %12 : i32
    %c1_i32_9 = arith.constant 1 : i32
    %14 = arith.subi %c1_i32_9, %arg0 : i32
    %15 = arith.muli %14, %c0_i32_8 : i32
    %c3_i32 = arith.constant 3 : i32
    %16 = arith.subi %c3_i32, %c0_i32_8 : i32
    %17 = arith.muli %arg0, %16 : i32
    %18 = arith.addi %15, %17 : i32
    %19 = arith.index_cast %18 : i32 to index
    %c0_10 = arith.constant 0 : index
    %c0_11 = arith.constant 0 : index
    %20 = vector.load %arg3[%19, %c0_10, %c0_11] : memref<4x8x512xf32, #tpu.memory_space<vmem>>, vector<1x8x512xf32>
    %21 = vector.shape_cast %20 : vector<1x8x512xf32> to vector<8x512xf32>
    %cst = arith.constant dense<0.000000e+00> : vector<8x512xf32>
    %22 = tpu.matmul %6, %4, %cst {dimension_numbers = #tpu.dot_dimension_numbers<[1], [0], [0], [1], [0, 0, 1, 1], [], []>} : vector<8x128xf32>, vector<128x512xf32>, vector<8x512xf32> -> vector<8x512xf32>
    %23 = arith.addf %21, %22 : vector<8x512xf32>
    %24 = vector.extract_strided_slice %23 {offsets = [0, 0], sizes = [8, 384], strides = [1, 1]} : vector<8x512xf32> to vector<8x384xf32>
    %cst_12 = arith.constant 5.000000e-01 : f32
    %25 = vector.broadcast %cst_12 : f32 to vector<8x384xf32>
    %26 = arith.mulf %25, %24 : vector<8x384xf32>
    %27 = math.tanh %26 : vector<8x384xf32>
    %cst_13 = arith.constant 5.000000e-01 : f32
    %28 = vector.broadcast %cst_13 : f32 to vector<8x384xf32>
    %29 = arith.mulf %28, %27 : vector<8x384xf32>
    %cst_14 = arith.constant 5.000000e-01 : f32
    %30 = vector.broadcast %cst_14 : f32 to vector<8x384xf32>
    %31 = arith.addf %29, %30 : vector<8x384xf32>
    %32 = vector.extract_strided_slice %31 {offsets = [0, 0], sizes = [8, 128], strides = [1, 1]} : vector<8x384xf32> to vector<8x128xf32>
    %33 = vector.extract_strided_slice %31 {offsets = [0, 128], sizes = [8, 128], strides = [1, 1]} : vector<8x384xf32> to vector<8x128xf32>
    %34 = vector.extract_strided_slice %31 {offsets = [0, 256], sizes = [8, 128], strides = [1, 1]} : vector<8x384xf32> to vector<8x128xf32>
    %35 = vector.extract_strided_slice %23 {offsets = [0, 384], sizes = [8, 128], strides = [1, 1]} : vector<8x512xf32> to vector<8x128xf32>
    %36 = math.tanh %35 : vector<8x128xf32>
    %37 = arith.mulf %33, %7 : vector<8x128xf32>
    %38 = arith.mulf %32, %36 : vector<8x128xf32>
    %39 = arith.addf %37, %38 : vector<8x128xf32>
    %40 = math.tanh %39 : vector<8x128xf32>
    %41 = arith.mulf %34, %40 : vector<8x128xf32>
    %42 = vector.broadcast %13 : i32 to vector<8x1xi32>
    %43 = arith.cmpi slt, %42, %3 : vector<8x1xi32>
    %44 = vector.shape_cast %43 : vector<8x1xi1> to vector<8x1xi1>
    %45 = vector.broadcast %44 : vector<8x1xi1> to vector<8x128xi1>
    %46 = arith.select %45, %41, %6 : vector<8x128xi1>, vector<8x128xf32>
    %47 = vector.shape_cast %43 : vector<8x1xi1> to vector<8x1xi1>
    %48 = vector.broadcast %47 : vector<8x1xi1> to vector<8x128xi1>
    %49 = arith.select %48, %39, %7 : vector<8x128xi1>, vector<8x128xf32>
    %cst_15 = arith.constant 0.000000e+00 : f32
    %50 = vector.shape_cast %43 : vector<8x1xi1> to vector<8x1xi1>
    %51 = vector.broadcast %50 : vector<8x1xi1> to vector<8x128xi1>
    %52 = vector.broadcast %cst_15 : f32 to vector<8x128xf32>
    %53 = arith.select %51, %41, %52 : vector<8x128xi1>, vector<8x128xf32>
    %54 = arith.index_cast %18 : i32 to index
    %c0_16 = arith.constant 0 : index
    %c0_17 = arith.constant 0 : index
    %55 = vector.load %arg5[%54, %c0_16, %c0_17] : memref<4x8x128xf32, #tpu.memory_space<vmem>>, vector<1x8x128xf32>
    %56 = vector.shape_cast %55 : vector<1x8x128xf32> to vector<8x128xf32>
    %57 = vector.shape_cast %53 : vector<8x128xf32> to vector<1x8x128xf32>
    tpu.vector_store %arg5[%54, %c0_16, %c0_17], %57 {strides = array<i32>} : memref<4x8x128xf32, #tpu.memory_space<vmem>>, vector<1x8x128xf32>,
    %c1_i32_18 = arith.constant 1 : i32
    %58 = arith.addi %5, %c1_i32_18 : i32
    %c1_i32_19 = arith.constant 1 : i32
    %59 = arith.subi %c1_i32_19, %arg0 : i32
    %60 = arith.muli %59, %58 : i32
    %c7_i32_20 = arith.constant 7 : i32
    %61 = arith.subi %c7_i32_20, %58 : i32
    %62 = arith.muli %arg0, %61 : i32
    %63 = arith.addi %60, %62 : i32
    %c1_i32_21 = arith.constant 1 : i32
    %64 = arith.subi %c1_i32_21, %arg0 : i32
    %65 = arith.muli %64, %c1_i32_18 : i32
    %c3_i32_22 = arith.constant 3 : i32
    %66 = arith.subi %c3_i32_22, %c1_i32_18 : i32
    %67 = arith.muli %arg0, %66 : i32
    %68 = arith.addi %65, %67 : i32
    %69 = arith.index_cast %68 : i32 to index
    %c0_23 = arith.constant 0 : index
    %c0_24 = arith.constant 0 : index
    %70 = vector.load %arg3[%69, %c0_23, %c0_24] : memref<4x8x512xf32, #tpu.memory_space<vmem>>, vector<1x8x512xf32>
    %71 = vector.shape_cast %70 : vector<1x8x512xf32> to vector<8x512xf32>
    %cst_25 = arith.constant dense<0.000000e+00> : vector<8x512xf32>
    %72 = tpu.matmul %46, %4, %cst_25 {dimension_numbers = #tpu.dot_dimension_numbers<[1], [0], [0], [1], [0, 0, 1, 1], [], []>} : vector<8x128xf32>, vector<128x512xf32>, vector<8x512xf32> -> vector<8x512xf32>
    %73 = arith.addf %71, %72 : vector<8x512xf32>
    %74 = vector.extract_strided_slice %73 {offsets = [0, 0], sizes = [8, 384], strides = [1, 1]} : vector<8x512xf32> to vector<8x384xf32>
    %cst_26 = arith.constant 5.000000e-01 : f32
    %75 = vector.broadcast %cst_26 : f32 to vector<8x384xf32>
    %76 = arith.mulf %75, %74 : vector<8x384xf32>
    %77 = math.tanh %76 : vector<8x384xf32>
    %cst_27 = arith.constant 5.000000e-01 : f32
    %78 = vector.broadcast %cst_27 : f32 to vector<8x384xf32>
    %79 = arith.mulf %78, %77 : vector<8x384xf32>
    %cst_28 = arith.constant 5.000000e-01 : f32
    %80 = vector.broadcast %cst_28 : f32 to vector<8x384xf32>
    %81 = arith.addf %79, %80 : vector<8x384xf32>
    %82 = vector.extract_strided_slice %81 {offsets = [0, 0], sizes = [8, 128], strides = [1, 1]} : vector<8x384xf32> to vector<8x128xf32>
    %83 = vector.extract_strided_slice %81 {offsets = [0, 128], sizes = [8, 128], strides = [1, 1]} : vector<8x384xf32> to vector<8x128xf32>
    %84 = vector.extract_strided_slice %81 {offsets = [0, 256], sizes = [8, 128], strides = [1, 1]} : vector<8x384xf32> to vector<8x128xf32>
    %85 = vector.extract_strided_slice %73 {offsets = [0, 384], sizes = [8, 128], strides = [1, 1]} : vector<8x512xf32> to vector<8x128xf32>
    %86 = math.tanh %85 : vector<8x128xf32>
    %87 = arith.mulf %83, %49 : vector<8x128xf32>
    %88 = arith.mulf %82, %86 : vector<8x128xf32>
    %89 = arith.addf %87, %88 : vector<8x128xf32>
    %90 = math.tanh %89 : vector<8x128xf32>
    %91 = arith.mulf %84, %90 : vector<8x128xf32>
    %92 = vector.broadcast %63 : i32 to vector<8x1xi32>
    %93 = arith.cmpi slt, %92, %3 : vector<8x1xi32>
    %94 = vector.shape_cast %93 : vector<8x1xi1> to vector<8x1xi1>
    %95 = vector.broadcast %94 : vector<8x1xi1> to vector<8x128xi1>
    %96 = arith.select %95, %91, %46 : vector<8x128xi1>, vector<8x128xf32>
    %97 = vector.shape_cast %93 : vector<8x1xi1> to vector<8x1xi1>
    %98 = vector.broadcast %97 : vector<8x1xi1> to vector<8x128xi1>
    %99 = arith.select %98, %89, %49 : vector<8x128xi1>, vector<8x128xf32>
    %cst_29 = arith.constant 0.000000e+00 : f32
    %100 = vector.shape_cast %93 : vector<8x1xi1> to vector<8x1xi1>
    %101 = vector.broadcast %100 : vector<8x1xi1> to vector<8x128xi1>
    %102 = vector.broadcast %cst_29 : f32 to vector<8x128xf32>
    %103 = arith.select %101, %91, %102 : vector<8x128xi1>, vector<8x128xf32>
    %104 = arith.index_cast %68 : i32 to index
    %c0_30 = arith.constant 0 : index
    %c0_31 = arith.constant 0 : index
    %105 = vector.load %arg5[%104, %c0_30, %c0_31] : memref<4x8x128xf32, #tpu.memory_space<vmem>>, vector<1x8x128xf32>
    %106 = vector.shape_cast %105 : vector<1x8x128xf32> to vector<8x128xf32>
    %107 = vector.shape_cast %103 : vector<8x128xf32> to vector<1x8x128xf32>
    tpu.vector_store %arg5[%104, %c0_30, %c0_31], %107 {strides = array<i32>} : memref<4x8x128xf32, #tpu.memory_space<vmem>>, vector<1x8x128xf32>,
    %c2_i32 = arith.constant 2 : i32
    %108 = arith.addi %5, %c2_i32 : i32
    %c1_i32_32 = arith.constant 1 : i32
    %109 = arith.subi %c1_i32_32, %arg0 : i32
    %110 = arith.muli %109, %108 : i32
    %c7_i32_33 = arith.constant 7 : i32
    %111 = arith.subi %c7_i32_33, %108 : i32
    %112 = arith.muli %arg0, %111 : i32
    %113 = arith.addi %110, %112 : i32
    %c1_i32_34 = arith.constant 1 : i32
    %114 = arith.subi %c1_i32_34, %arg0 : i32
    %115 = arith.muli %114, %c2_i32 : i32
    %c3_i32_35 = arith.constant 3 : i32
    %116 = arith.subi %c3_i32_35, %c2_i32 : i32
    %117 = arith.muli %arg0, %116 : i32
    %118 = arith.addi %115, %117 : i32
    %119 = arith.index_cast %118 : i32 to index
    %c0_36 = arith.constant 0 : index
    %c0_37 = arith.constant 0 : index
    %120 = vector.load %arg3[%119, %c0_36, %c0_37] : memref<4x8x512xf32, #tpu.memory_space<vmem>>, vector<1x8x512xf32>
    %121 = vector.shape_cast %120 : vector<1x8x512xf32> to vector<8x512xf32>
    %cst_38 = arith.constant dense<0.000000e+00> : vector<8x512xf32>
    %122 = tpu.matmul %96, %4, %cst_38 {dimension_numbers = #tpu.dot_dimension_numbers<[1], [0], [0], [1], [0, 0, 1, 1], [], []>} : vector<8x128xf32>, vector<128x512xf32>, vector<8x512xf32> -> vector<8x512xf32>
    %123 = arith.addf %121, %122 : vector<8x512xf32>
    %124 = vector.extract_strided_slice %123 {offsets = [0, 0], sizes = [8, 384], strides = [1, 1]} : vector<8x512xf32> to vector<8x384xf32>
    %cst_39 = arith.constant 5.000000e-01 : f32
    %125 = vector.broadcast %cst_39 : f32 to vector<8x384xf32>
    %126 = arith.mulf %125, %124 : vector<8x384xf32>
    %127 = math.tanh %126 : vector<8x384xf32>
    %cst_40 = arith.constant 5.000000e-01 : f32
    %128 = vector.broadcast %cst_40 : f32 to vector<8x384xf32>
    %129 = arith.mulf %128, %127 : vector<8x384xf32>
    %cst_41 = arith.constant 5.000000e-01 : f32
    %130 = vector.broadcast %cst_41 : f32 to vector<8x384xf32>
    %131 = arith.addf %129, %130 : vector<8x384xf32>
    %132 = vector.extract_strided_slice %131 {offsets = [0, 0], sizes = [8, 128], strides = [1, 1]} : vector<8x384xf32> to vector<8x128xf32>
    %133 = vector.extract_strided_slice %131 {offsets = [0, 128], sizes = [8, 128], strides = [1, 1]} : vector<8x384xf32> to vector<8x128xf32>
    %134 = vector.extract_strided_slice %131 {offsets = [0, 256], sizes = [8, 128], strides = [1, 1]} : vector<8x384xf32> to vector<8x128xf32>
    %135 = vector.extract_strided_slice %123 {offsets = [0, 384], sizes = [8, 128], strides = [1, 1]} : vector<8x512xf32> to vector<8x128xf32>
    %136 = math.tanh %135 : vector<8x128xf32>
    %137 = arith.mulf %133, %99 : vector<8x128xf32>
    %138 = arith.mulf %132, %136 : vector<8x128xf32>
    %139 = arith.addf %137, %138 : vector<8x128xf32>
    %140 = math.tanh %139 : vector<8x128xf32>
    %141 = arith.mulf %134, %140 : vector<8x128xf32>
    %142 = vector.broadcast %113 : i32 to vector<8x1xi32>
    %143 = arith.cmpi slt, %142, %3 : vector<8x1xi32>
    %144 = vector.shape_cast %143 : vector<8x1xi1> to vector<8x1xi1>
    %145 = vector.broadcast %144 : vector<8x1xi1> to vector<8x128xi1>
    %146 = arith.select %145, %141, %96 : vector<8x128xi1>, vector<8x128xf32>
    %147 = vector.shape_cast %143 : vector<8x1xi1> to vector<8x1xi1>
    %148 = vector.broadcast %147 : vector<8x1xi1> to vector<8x128xi1>
    %149 = arith.select %148, %139, %99 : vector<8x128xi1>, vector<8x128xf32>
    %cst_42 = arith.constant 0.000000e+00 : f32
    %150 = vector.shape_cast %143 : vector<8x1xi1> to vector<8x1xi1>
    %151 = vector.broadcast %150 : vector<8x1xi1> to vector<8x128xi1>
    %152 = vector.broadcast %cst_42 : f32 to vector<8x128xf32>
    %153 = arith.select %151, %141, %152 : vector<8x128xi1>, vector<8x128xf32>
    %154 = arith.index_cast %118 : i32 to index
    %c0_43 = arith.constant 0 : index
    %c0_44 = arith.constant 0 : index
    %155 = vector.load %arg5[%154, %c0_43, %c0_44] : memref<4x8x128xf32, #tpu.memory_space<vmem>>, vector<1x8x128xf32>
    %156 = vector.shape_cast %155 : vector<1x8x128xf32> to vector<8x128xf32>
    %157 = vector.shape_cast %153 : vector<8x128xf32> to vector<1x8x128xf32>
    tpu.vector_store %arg5[%154, %c0_43, %c0_44], %157 {strides = array<i32>} : memref<4x8x128xf32, #tpu.memory_space<vmem>>, vector<1x8x128xf32>,
    %c3_i32_45 = arith.constant 3 : i32
    %158 = arith.addi %5, %c3_i32_45 : i32
    %c1_i32_46 = arith.constant 1 : i32
    %159 = arith.subi %c1_i32_46, %arg0 : i32
    %160 = arith.muli %159, %158 : i32
    %c7_i32_47 = arith.constant 7 : i32
    %161 = arith.subi %c7_i32_47, %158 : i32
    %162 = arith.muli %arg0, %161 : i32
    %163 = arith.addi %160, %162 : i32
    %c1_i32_48 = arith.constant 1 : i32
    %164 = arith.subi %c1_i32_48, %arg0 : i32
    %165 = arith.muli %164, %c3_i32_45 : i32
    %c3_i32_49 = arith.constant 3 : i32
    %166 = arith.subi %c3_i32_49, %c3_i32_45 : i32
    %167 = arith.muli %arg0, %166 : i32
    %168 = arith.addi %165, %167 : i32
    %169 = arith.index_cast %168 : i32 to index
    %c0_50 = arith.constant 0 : index
    %c0_51 = arith.constant 0 : index
    %170 = vector.load %arg3[%169, %c0_50, %c0_51] : memref<4x8x512xf32, #tpu.memory_space<vmem>>, vector<1x8x512xf32>
    %171 = vector.shape_cast %170 : vector<1x8x512xf32> to vector<8x512xf32>
    %cst_52 = arith.constant dense<0.000000e+00> : vector<8x512xf32>
    %172 = tpu.matmul %146, %4, %cst_52 {dimension_numbers = #tpu.dot_dimension_numbers<[1], [0], [0], [1], [0, 0, 1, 1], [], []>} : vector<8x128xf32>, vector<128x512xf32>, vector<8x512xf32> -> vector<8x512xf32>
    %173 = arith.addf %171, %172 : vector<8x512xf32>
    %174 = vector.extract_strided_slice %173 {offsets = [0, 0], sizes = [8, 384], strides = [1, 1]} : vector<8x512xf32> to vector<8x384xf32>
    %cst_53 = arith.constant 5.000000e-01 : f32
    %175 = vector.broadcast %cst_53 : f32 to vector<8x384xf32>
    %176 = arith.mulf %175, %174 : vector<8x384xf32>
    %177 = math.tanh %176 : vector<8x384xf32>
    %cst_54 = arith.constant 5.000000e-01 : f32
    %178 = vector.broadcast %cst_54 : f32 to vector<8x384xf32>
    %179 = arith.mulf %178, %177 : vector<8x384xf32>
    %cst_55 = arith.constant 5.000000e-01 : f32
    %180 = vector.broadcast %cst_55 : f32 to vector<8x384xf32>
    %181 = arith.addf %179, %180 : vector<8x384xf32>
    %182 = vector.extract_strided_slice %181 {offsets = [0, 0], sizes = [8, 128], strides = [1, 1]} : vector<8x384xf32> to vector<8x128xf32>
    %183 = vector.extract_strided_slice %181 {offsets = [0, 128], sizes = [8, 128], strides = [1, 1]} : vector<8x384xf32> to vector<8x128xf32>
    %184 = vector.extract_strided_slice %181 {offsets = [0, 256], sizes = [8, 128], strides = [1, 1]} : vector<8x384xf32> to vector<8x128xf32>
    %185 = vector.extract_strided_slice %173 {offsets = [0, 384], sizes = [8, 128], strides = [1, 1]} : vector<8x512xf32> to vector<8x128xf32>
    %186 = math.tanh %185 : vector<8x128xf32>
    %187 = arith.mulf %183, %149 : vector<8x128xf32>
    %188 = arith.mulf %182, %186 : vector<8x128xf32>
    %189 = arith.addf %187, %188 : vector<8x128xf32>
    %190 = math.tanh %189 : vector<8x128xf32>
    %191 = arith.mulf %184, %190 : vector<8x128xf32>
    %192 = vector.broadcast %163 : i32 to vector<8x1xi32>
    %193 = arith.cmpi slt, %192, %3 : vector<8x1xi32>
    %194 = vector.shape_cast %193 : vector<8x1xi1> to vector<8x1xi1>
    %195 = vector.broadcast %194 : vector<8x1xi1> to vector<8x128xi1>
    %196 = arith.select %195, %191, %146 : vector<8x128xi1>, vector<8x128xf32>
    %197 = vector.shape_cast %193 : vector<8x1xi1> to vector<8x1xi1>
    %198 = vector.broadcast %197 : vector<8x1xi1> to vector<8x128xi1>
    %199 = arith.select %198, %189, %149 : vector<8x128xi1>, vector<8x128xf32>
    %cst_56 = arith.constant 0.000000e+00 : f32
    %200 = vector.shape_cast %193 : vector<8x1xi1> to vector<8x1xi1>
    %201 = vector.broadcast %200 : vector<8x1xi1> to vector<8x128xi1>
    %202 = vector.broadcast %cst_56 : f32 to vector<8x128xf32>
    %203 = arith.select %201, %191, %202 : vector<8x128xi1>, vector<8x128xf32>
    %204 = arith.index_cast %168 : i32 to index
    %c0_57 = arith.constant 0 : index
    %c0_58 = arith.constant 0 : index
    %205 = vector.load %arg5[%204, %c0_57, %c0_58] : memref<4x8x128xf32, #tpu.memory_space<vmem>>, vector<1x8x128xf32>
    %206 = vector.shape_cast %205 : vector<1x8x128xf32> to vector<8x128xf32>
    %207 = vector.shape_cast %203 : vector<8x128xf32> to vector<1x8x128xf32>
    tpu.vector_store %arg5[%204, %c0_57, %c0_58], %207 {strides = array<i32>} : memref<4x8x128xf32, #tpu.memory_space<vmem>>, vector<1x8x128xf32>,
    %c4_i32_59 = arith.constant 4 : i32
    %c0_60 = arith.constant 0 : index
    %c0_61 = arith.constant 0 : index
    %208 = vector.load %arg6[%c0_60, %c0_61] : memref<8x128xf32, #tpu.memory_space<vmem>>, vector<8x128xf32>
    tpu.vector_store %arg6[%c0_60, %c0_61], %196 {strides = array<i32>} : memref<8x128xf32, #tpu.memory_space<vmem>>, vector<8x128xf32>,
    %c0_62 = arith.constant 0 : index
    %c0_63 = arith.constant 0 : index
    %209 = vector.load %arg7[%c0_62, %c0_63] : memref<8x128xf32, #tpu.memory_space<vmem>>, vector<8x128xf32>
    tpu.vector_store %arg7[%c0_62, %c0_63], %199 {strides = array<i32>} : memref<8x128xf32, #tpu.memory_space<vmem>>, vector<8x128xf32>,
    return
  }
  func.func @transform_0(%arg0: i32, %arg1: i32) -> (i32, i32) {
    %c0_i32 = arith.constant 0 : i32
    %c0_i32_0 = arith.constant 0 : i32
    %c0_i32_1 = arith.constant 0 : i32
    return %c0_i32, %c0_i32_0 : i32, i32
  }
  func.func @transform_1(%arg0: i32, %arg1: i32) -> (i32, i32, i32) {
    %c2_i32 = arith.constant 2 : i32
    %0 = arith.muli %c2_i32, %arg1 : i32
    %c1_i32 = arith.constant 1 : i32
    %1 = arith.subi %c1_i32, %0 : i32
    %2 = arith.muli %arg0, %1 : i32
    %3 = arith.addi %arg1, %2 : i32
    %c0_i32 = arith.constant 0 : i32
    %c0_i32_0 = arith.constant 0 : i32
    return %3, %c0_i32, %arg0 : i32, i32, i32
  }
  func.func @transform_2(%arg0: i32, %arg1: i32) -> (i32, i32) {
    %c0_i32 = arith.constant 0 : i32
    %c0_i32_0 = arith.constant 0 : i32
    return %c0_i32, %arg0 : i32, i32
  }
  func.func @transform_3(%arg0: i32, %arg1: i32) -> (i32, i32, i32) {
    %c2_i32 = arith.constant 2 : i32
    %0 = arith.muli %c2_i32, %arg1 : i32
    %c1_i32 = arith.constant 1 : i32
    %1 = arith.subi %c1_i32, %0 : i32
    %2 = arith.muli %arg0, %1 : i32
    %3 = arith.addi %arg1, %2 : i32
    %c0_i32 = arith.constant 0 : i32
    %c0_i32_0 = arith.constant 0 : i32
    return %3, %c0_i32, %arg0 : i32, i32, i32
  }
}

</mosaic_0001>

<bundles_post_ra>
// kernel: rnn_encoder_forward.2
= control target key start
LH: loop header
LB: loop body
LE: loop exit
PB: predicated region body
PF: predicated region fallthrough
CT: control target
= control target key end

     0   :  { %s1965_s12 = smov 0   ;;  %s1967_s13 = smov 0   ;;  %s2510_s0 = inlined_call_operand.vmem [shape: s32[8,1], index: 0, kind: input, shape index: {}]   ;;  %s2511_s1 = inlined_call_operand.vmem [shape: f32[8,8,1024], index: 1, kind: input, shape index: {}]   ;;  %s2512_s2 = inlined_call_operand.vmem [shape: f32[128,1024], index: 2, kind: input, shape index: {}]   ;;  %s2513_s3 = inlined_call_operand.vmem [shape: f32[8,8,256], index: 3, kind: output, shape index: {}]  }
   0x1   :  { %s1969_s14 = smov 0   ;;  %s1971_s15 = smov 0  }
   0x2   :  { %s1973_s16 = smov 0   ;;  %s1975_s17 = smov 0  }
   0x3   :  { %s1977_s18 = smov 0   ;;  %s1979_s19 = smov 0  }
   0x4   :  { %s1981_s20 = smov 0   ;;  %s1983_s21 = smov 0  }
   0x5 LB: > { %s1432_s22 = sadd.s32 4294967295, %s1940_s21   ;;  %s22_s23 = sadd.s32 1, %s1932_s19  ;;  %s1940_s21 = sphi %s1983_s21, %s13_s21   ;;  %s1936_s20 = sphi %s1981_s20, %s2525_s20   ;;  %s1932_s19 = sphi %s1979_s19, %s2524_s19   ;;  %s1928_s18 = sphi %s1977_s18, %s2523_s18   ;;  %s1924_s17 = sphi %s1975_s17, %s2522_s17   ;;  %s1920_s16 = sphi %s1973_s16, %s2521_s16   ;;  %s1916_s15 = sphi %s1971_s15, %s2520_s15   ;;  %s1912_s14 = sphi %s1969_s14, %s2519_s14   ;;  %s1908_s13 = sphi %s1967_s13, %s2518_s13   ;;  %s1904_s12 = sphi %s1965_s12, %s2517_s12  }
   0x6   : > { %p23_p0 = scmp.ge.s32.totalorder %s22_s23, 2  ;;  %s25_s24 = sadd.s32 1, %s1936_s20 }
   0x7   : > { %s1434_s25 = sshll.u32 %s1932_s19, 1  ;;  %s63_s26 = sadd.s32 1, %s1920_s16 }
   0x8   : > { %s2527_s23 = smov (%p23_p0, %s22_s23), 0  ;;  %s2529_s24 = smov (!%p23_p0, %s25_s24), %s1936_s20 }
   0x9   : > { %s51_s27 = ssub.s32 1, %s1434_s25  ;;  %s1435_s28 = sshll.u32 %s2527_s23, 1 }
   0xa   : > { %p27_p1 = scmp.ge.s32.totalorder %s2529_s24, 2  ;;  %s52_s29 = smul.u32 %s1936_s20, %s51_s27 }
   0xb   : > { %s55_s30 = ssub.s32 1, %s1435_s28  ;;  %p70_p2 = scmp.ne.s32.totalorder %s1920_s16, %s1916_s15 }
   0xc   : > { %s2531_s24 = smov (%p27_p1, %s2529_s24), 0  ;;  %s2030_s4 = sadd.s32 %s1932_s19, %s52_s29 }
   0xd   : > { %p71_p3 = scmp.eq.s32.totalorder %s1940_s21, 0  ;;  %s56_s5 = smul.u32 %s55_s30, %s2531_s24 }
   0xe   : > { %s59_s6 = ssub.s32 %s1936_s20, %s2531_s24  ;;  %s89_s9 = sadd.s32 1, %s1912_s14 }
   0xf   : > { %p2039_p4 = por %p71_p3, %p70_p2  ;;  %p87_p5 = scmp.eq.s32.totalorder %s59_s6, 0 }
  0x10   : > { %s57_s8 = sadd.s32 %s56_s5, %s2527_s23  ;;  %p102_p6 = scmp.ne.s32.totalorder %s1908_s13, %s1904_s12 }
  0x11   : > { %s58_s10 = ssub.s32 %s2030_s4, %s57_s8  ;;  %p103_p7 = scmp.eq.s32.totalorder %s1432_s22, 0 }
  0x12   : > { %s60_s11 = sor.u32 %s59_s6, %s58_s10  ;;  %p136_p9 = scmp.eq.s32.totalorder %s1432_s22, 3 }
  0x13   : > { %p61_p8 = scmp.eq.s32.totalorder %s60_s11, 0  ;;  %p104_p10 = por %p103_p7, %p102_p6 }
  0x14   : > { %s2049_s25 = scalar_select %p87_p5, %s1912_s14, %s89_s9  }
  0x15   : > { %s2052_s27 = scalar_select %p61_p8, %s1920_s16, %s63_s26  }
  0x16   : > { %p2057_p11 = por %p136_p9, %p70_p2  ;;  %p1438_p12 = scmp.ge.s32.totalorder %s1940_s21, 1 }
  0x17   : > { %p149_p13 = scmp.lt.s32.totalorder %s1940_s21, 5 }
  0x19   : > { %p2063_p0 = pnand %p1438_p12, %p149_p13 }
  0x1b   : > { %153 = sbr.rel (%p2063_p0) target bundleno = 69 (0x45), region = 12 }
  0x22   : > { %160 = sbr.rel (!%p104_p10) target bundleno = 69 (0x45), region = 20  ;;  %s1474_s12 = sshll.u32 (%p104_p10), %s1928_s18, 5 }
  0x23   : > { %s2073_s30 = scalar_lea.vmem (%p104_p10), %s2512_s2, %s1474_s12 }
  0x24   : > { %v176_v0 = vld [vmem:[%s2073_s30] sm:$0xff] (%p104_p10)  ;;  %v178_v1 = vld [vmem:[%s2073_s30 + $0x8] sm:$0xff] (%p104_p10)  ;;  %v180_v2 = vld [vmem:[%s2073_s30 + $0x10] sm:$0xff] (%p104_p10) }
  0x25   : > { %177 = vst [vmem:[#allocation5] sm:$0xff] (%p104_p10), %v176_v0  ;;  %179 = vst [vmem:[#allocation5 + $0x8] sm:$0xff] (%p104_p10), %v178_v1  ;;  %v182_v3 = vld [vmem:[%s2073_s30 + $0x18] sm:$0xff] (%p104_p10)  ;;  %v184_v4 = vld [vmem:[%s2073_s30 + $0x40] sm:$0xff] (%p104_p10) }
  0x26   : > { %181 = vst [vmem:[#allocation5 + $0x10] sm:$0xff] (%p104_p10), %v180_v2  ;;  %v186_v5 = vld [vmem:[%s2073_s30 + $0x48] sm:$0xff] (%p104_p10)  ;;  %183 = vst [vmem:[#allocation5 + $0x18] sm:$0xff] (%p104_p10), %v182_v3  ;;  %v188_v6 = vld [vmem:[%s2073_s30 + $0x50] sm:$0xff] (%p104_p10) }
  0x27   : > { %185 = vst [vmem:[#allocation5 + $0x20] sm:$0xff] (%p104_p10), %v184_v4  ;;  %187 = vst [vmem:[#allocation5 + $0x28] sm:$0xff] (%p104_p10), %v186_v5  ;;  %v190_v7 = vld [vmem:[%s2073_s30 + $0x58] sm:$0xff] (%p104_p10)  ;;  %v192_v8 = vld [vmem:[%s2073_s30 + $0x80] sm:$0xff] (%p104_p10) }
  0x28   : > { %189 = vst [vmem:[#allocation5 + $0x30] sm:$0xff] (%p104_p10), %v188_v6  ;;  %191 = vst [vmem:[#allocation5 + $0x38] sm:$0xff] (%p104_p10), %v190_v7  ;;  %v194_v9 = vld [vmem:[%s2073_s30 + $0x88] sm:$0xff] (%p104_p10)  ;;  %v196_v10 = vld [vmem:[%s2073_s30 + $0x90] sm:$0xff] (%p104_p10) }
  0x29   : > { %193 = vst [vmem:[#allocation5 + $0x40] sm:$0xff] %v192_v8  ;;  %v198_v11 = vld [vmem:[%s2073_s30 + $0x98] sm:$0xff]  ;;  %195 = vst [vmem:[#allocation5 + $0x48] sm:$0xff] %v194_v9  ;;  %v200_v12 = vld [vmem:[%s2073_s30 + $0xc0] sm:$0xff] }
  0x2a   : > { %197 = vst [vmem:[#allocation5 + $0x50] sm:$0xff] %v196_v10  ;;  %199 = vst [vmem:[#allocation5 + $0x58] sm:$0xff] %v198_v11  ;;  %v202_v13 = vld [vmem:[%s2073_s30 + $0xc8] sm:$0xff]  ;;  %v204_v14 = vld [vmem:[%s2073_s30 + $0xd0] sm:$0xff] }
  0x2b   : > { %201 = vst [vmem:[#allocation5 + $0x60] sm:$0xff] %v200_v12  ;;  %203 = vst [vmem:[#allocation5 + $0x68] sm:$0xff] %v202_v13  ;;  %v206_v15 = vld [vmem:[%s2073_s30 + $0xd8] sm:$0xff]  ;;  %v208_v16 = vld [vmem:[%s2073_s30 + $0x100] sm:$0xff] }
  0x2c   : > { %205 = vst [vmem:[#allocation5 + $0x70] sm:$0xff] %v204_v14  ;;  %v210_v17 = vld [vmem:[%s2073_s30 + $0x108] sm:$0xff]  ;;  %207 = vst [vmem:[#allocation5 + $0x78] sm:$0xff] %v206_v15  ;;  %v212_v18 = vld [vmem:[%s2073_s30 + $0x110] sm:$0xff] }
  0x2d   : > { %209 = vst [vmem:[#allocation5 + $0x80] sm:$0xff] %v208_v16  ;;  %211 = vst [vmem:[#allocation5 + $0x88] sm:$0xff] %v210_v17  ;;  %v214_v19 = vld [vmem:[%s2073_s30 + $0x118] sm:$0xff]  ;;  %v216_v20 = vld [vmem:[%s2073_s30 + $0x140] sm:$0xff] }
  0x2e   : > { %213 = vst [vmem:[#allocation5 + $0x90] sm:$0xff] %v212_v18  ;;  %215 = vst [vmem:[#allocation5 + $0x98] sm:$0xff] %v214_v19  ;;  %v218_v21 = vld [vmem:[%s2073_s30 + $0x148] sm:$0xff]  ;;  %v220_v22 = vld [vmem:[%s2073_s30 + $0x150] sm:$0xff] }
  0x2f   : > { %217 = vst [vmem:[#allocation5 + $0xa0] sm:$0xff] %v216_v20  ;;  %v222_v23 = vld [vmem:[%s2073_s30 + $0x158] sm:$0xff]  ;;  %219 = vst [vmem:[#allocation5 + $0xa8] sm:$0xff] %v218_v21  ;;  %v224_v24 = vld [vmem:[%s2073_s30 + $0x180] sm:$0xff] }
  0x30   : > { %221 = vst [vmem:[#allocation5 + $0xb0] sm:$0xff] %v220_v22  ;;  %223 = vst [vmem:[#allocation5 + $0xb8] sm:$0xff] %v222_v23  ;;  %v226_v25 = vld [vmem:[%s2073_s30 + $0x188] sm:$0xff]  ;;  %v228_v26 = vld [vmem:[%s2073_s30 + $0x190] sm:$0xff] }
  0x31   : > { %225 = vst [vmem:[#allocation5 + $0xc0] sm:$0xff] %v224_v24  ;;  %227 = vst [vmem:[#allocation5 + $0xc8] sm:$0xff] %v226_v25  ;;  %v230_v27 = vld [vmem:[%s2073_s30 + $0x198] sm:$0xff]  ;;  %v232_v28 = vld [vmem:[%s2073_s30 + $0x1c0] sm:$0xff] }
  0x32   : > { %229 = vst [vmem:[#allocation5 + $0xd0] sm:$0xff] %v228_v26  ;;  %v234_v29 = vld [vmem:[%s2073_s30 + $0x1c8] sm:$0xff]  ;;  %231 = vst [vmem:[#allocation5 + $0xd8] sm:$0xff] %v230_v27  ;;  %v236_v30 = vld [vmem:[%s2073_s30 + $0x1d0] sm:$0xff] }
  0x33   : > { %233 = vst [vmem:[#allocation5 + $0xe0] sm:$0xff] %v232_v28  ;;  %235 = vst [vmem:[#allocation5 + $0xe8] sm:$0xff] %v234_v29  ;;  %v238_v31 = vld [vmem:[%s2073_s30 + $0x1d8] sm:$0xff]  ;;  %v240_v32 = vld [vmem:[%s2073_s30 + $0x200] sm:$0xff] }
  0x34   : > { %237 = vst [vmem:[#allocation5 + $0xf0] sm:$0xff] %v236_v30  ;;  %239 = vst [vmem:[#allocation5 + $0xf8] sm:$0xff] %v238_v31  ;;  %v242_v33 = vld [vmem:[%s2073_s30 + $0x208] sm:$0xff]  ;;  %v244_v34 = vld [vmem:[%s2073_s30 + $0x210] sm:$0xff] }
  0x35   : > { %241 = vst [vmem:[#allocation5 + $0x100] sm:$0xff] %v240_v32  ;;  %v246_v35 = vld [vmem:[%s2073_s30 + $0x218] sm:$0xff]  ;;  %243 = vst [vmem:[#allocation5 + $0x108] sm:$0xff] %v242_v33  ;;  %v248_v36 = vld [vmem:[%s2073_s30 + $0x240] sm:$0xff] }
  0x36   : > { %245 = vst [vmem:[#allocation5 + $0x110] sm:$0xff] %v244_v34  ;;  %247 = vst [vmem:[#allocation5 + $0x118] sm:$0xff] %v246_v35  ;;  %v250_v37 = vld [vmem:[%s2073_s30 + $0x248] sm:$0xff]  ;;  %v252_v38 = vld [vmem:[%s2073_s30 + $0x250] sm:$0xff] }
  0x37   : > { %249 = vst [vmem:[#allocation5 + $0x120] sm:$0xff] %v248_v36  ;;  %251 = vst [vmem:[#allocation5 + $0x128] sm:$0xff] %v250_v37  ;;  %v254_v39 = vld [vmem:[%s2073_s30 + $0x258] sm:$0xff]  ;;  %v256_v40 = vld [vmem:[%s2073_s30 + $0x280] sm:$0xff] }
  0x38   : > { %253 = vst [vmem:[#allocation5 + $0x130] sm:$0xff] %v252_v38  ;;  %v258_v41 = vld [vmem:[%s2073_s30 + $0x288] sm:$0xff]  ;;  %255 = vst [vmem:[#allocation5 + $0x138] sm:$0xff] %v254_v39  ;;  %v260_v42 = vld [vmem:[%s2073_s30 + $0x290] sm:$0xff] }
  0x39   : > { %257 = vst [vmem:[#allocation5 + $0x140] sm:$0xff] %v256_v40  ;;  %259 = vst [vmem:[#allocation5 + $0x148] sm:$0xff] %v258_v41  ;;  %v262_v43 = vld [vmem:[%s2073_s30 + $0x298] sm:$0xff]  ;;  %v264_v44 = vld [vmem:[%s2073_s30 + $0x2c0] sm:$0xff] }
  0x3a   : > { %261 = vst [vmem:[#allocation5 + $0x150] sm:$0xff] %v260_v42  ;;  %263 = vst [vmem:[#allocation5 + $0x158] sm:$0xff] %v262_v43  ;;  %v266_v45 = vld [vmem:[%s2073_s30 + $0x2c8] sm:$0xff]  ;;  %v268_v46 = vld [vmem:[%s2073_s30 + $0x2d0] sm:$0xff] }
  0x3b   : > { %265 = vst [vmem:[#allocation5 + $0x160] sm:$0xff] %v264_v44  ;;  %v270_v47 = vld [vmem:[%s2073_s30 + $0x2d8] sm:$0xff]  ;;  %267 = vst [vmem:[#allocation5 + $0x168] sm:$0xff] %v266_v45  ;;  %v272_v48 = vld [vmem:[%s2073_s30 + $0x300] sm:$0xff] }
  0x3c   : > { %269 = vst [vmem:[#allocation5 + $0x170] sm:$0xff] %v268_v46  ;;  %271 = vst [vmem:[#allocation5 + $0x178] sm:$0xff] %v270_v47  ;;  %v274_v49 = vld [vmem:[%s2073_s30 + $0x308] sm:$0xff]  ;;  %v276_v50 = vld [vmem:[%s2073_s30 + $0x310] sm:$0xff] }
  0x3d   : > { %273 = vst [vmem:[#allocation5 + $0x180] sm:$0xff] %v272_v48  ;;  %275 = vst [vmem:[#allocation5 + $0x188] sm:$0xff] %v274_v49  ;;  %v278_v51 = vld [vmem:[%s2073_s30 + $0x318] sm:$0xff]  ;;  %v280_v52 = vld [vmem:[%s2073_s30 + $0x340] sm:$0xff] }
  0x3e   : > { %277 = vst [vmem:[#allocation5 + $0x190] sm:$0xff] %v276_v50  ;;  %v282_v53 = vld [vmem:[%s2073_s30 + $0x348] sm:$0xff]  ;;  %279 = vst [vmem:[#allocation5 + $0x198] sm:$0xff] %v278_v51  ;;  %v284_v54 = vld [vmem:[%s2073_s30 + $0x350] sm:$0xff] }
  0x3f   : > { %281 = vst [vmem:[#allocation5 + $0x1a0] sm:$0xff] %v280_v52  ;;  %283 = vst [vmem:[#allocation5 + $0x1a8] sm:$0xff] %v282_v53  ;;  %v286_v55 = vld [vmem:[%s2073_s30 + $0x358] sm:$0xff]  ;;  %v288_v56 = vld [vmem:[%s2073_s30 + $0x380] sm:$0xff] }
  0x40   : > { %285 = vst [vmem:[#allocation5 + $0x1b0] sm:$0xff] %v284_v54  ;;  %287 = vst [vmem:[#allocation5 + $0x1b8] sm:$0xff] %v286_v55  ;;  %v290_v57 = vld [vmem:[%s2073_s30 + $0x388] sm:$0xff]  ;;  %v292_v58 = vld [vmem:[%s2073_s30 + $0x390] sm:$0xff] }
  0x41   : > { %289 = vst [vmem:[#allocation5 + $0x1c0] sm:$0xff] %v288_v56  ;;  %v294_v59 = vld [vmem:[%s2073_s30 + $0x398] sm:$0xff]  ;;  %291 = vst [vmem:[#allocation5 + $0x1c8] sm:$0xff] %v290_v57  ;;  %v296_v60 = vld [vmem:[%s2073_s30 + $0x3c0] sm:$0xff] }
  0x42   : > { %293 = vst [vmem:[#allocation5 + $0x1d0] sm:$0xff] %v292_v58  ;;  %295 = vst [vmem:[#allocation5 + $0x1d8] sm:$0xff] %v294_v59  ;;  %v298_v61 = vld [vmem:[%s2073_s30 + $0x3c8] sm:$0xff]  ;;  %v300_v62 = vld [vmem:[%s2073_s30 + $0x3d0] sm:$0xff] }
  0x43   : > { %297 = vst [vmem:[#allocation5 + $0x1e0] sm:$0xff] %v296_v60  ;;  %299 = vst [vmem:[#allocation5 + $0x1e8] sm:$0xff] %v298_v61  ;;  %v302_v63 = vld [vmem:[%s2073_s30 + $0x3d8] sm:$0xff] }
  0x44   : > { %301 = vst [vmem:[#allocation5 + $0x1f0] sm:$0xff] %v300_v62  ;;  %303 = vst [vmem:[#allocation5 + $0x1f8] sm:$0xff] %v302_v63 }
  0x45 PF: > { %p1441_p1 = scmp.ge.s32.totalorder %s1940_s21, 4 }
  0x47   : > { %310 = sbr.rel (%p1441_p1) target bundleno = 93 (0x5d), region = 43 }
  0x4e   : > { %313 = sbr.rel (!%p2039_p4) target bundleno = 93 (0x5d), region = 47  ;;  %s315_s5 = sand.u32 (%p2039_p4), 1, %s1920_s16  }
  0x4f   : > { %s1445_s6 = sshll.u32 (%p2039_p4), %s1936_s20, 2  ;;  %s1442_s8 = sshll.u32 (%p2039_p4), %s315_s5, 7 }
  0x50   : > { %s1475_s9 = sshll.u32 (%p2039_p4), %s2030_s4, 5  ;;  %s317_s4 = scalar_lea.vmem (%p2039_p4), [#allocation4], %s1442_s8 }
  0x51   : > { %s325_s10 = sadd.s32 (%p2039_p4), %s1475_s9, %s1445_s6 }
  0x52   : > { %s1447_s11 = sshll.u32 (%p2039_p4), %s325_s10, 3 }
  0x53   : > { %s2148_s26 = scalar_lea.vmem (%p2039_p4), %s2511_s1, %s1447_s11 }
  0x54   : > { %v340_v0 = vld [vmem:[%s2148_s26] sm:$0xff] (%p2039_p4)  ;;  %v342_v1 = vld [vmem:[%s2148_s26 + $0x8] sm:$0xff] (%p2039_p4)  ;;  %v344_v2 = vld [vmem:[%s2148_s26 + $0x10] sm:$0xff] (%p2039_p4) }
  0x55   : > { %341 = vst [vmem:[%s317_s4] sm:$0xff] %v340_v0  ;;  %343 = vst [vmem:[%s317_s4 + $0x8] sm:$0xff] %v342_v1  ;;  %v346_v3 = vld [vmem:[%s2148_s26 + $0x18] sm:$0xff]  ;;  %v348_v4 = vld [vmem:[%s2148_s26 + $0x40] sm:$0xff] }
  0x56   : > { %345 = vst [vmem:[%s317_s4 + $0x10] sm:$0xff] %v344_v2  ;;  %v350_v5 = vld [vmem:[%s2148_s26 + $0x48] sm:$0xff]  ;;  %347 = vst [vmem:[%s317_s4 + $0x18] sm:$0xff] %v346_v3  ;;  %v352_v6 = vld [vmem:[%s2148_s26 + $0x50] sm:$0xff] }
  0x57   : > { %349 = vst [vmem:[%s317_s4 + $0x20] sm:$0xff] %v348_v4  ;;  %351 = vst [vmem:[%s317_s4 + $0x28] sm:$0xff] %v350_v5  ;;  %v354_v7 = vld [vmem:[%s2148_s26 + $0x58] sm:$0xff]  ;;  %v356_v8 = vld [vmem:[%s2148_s26 + $0x80] sm:$0xff] }
  0x58   : > { %353 = vst [vmem:[%s317_s4 + $0x30] sm:$0xff] %v352_v6  ;;  %355 = vst [vmem:[%s317_s4 + $0x38] sm:$0xff] %v354_v7  ;;  %v358_v9 = vld [vmem:[%s2148_s26 + $0x88] sm:$0xff]  ;;  %v360_v10 = vld [vmem:[%s2148_s26 + $0x90] sm:$0xff] }
  0x59   : > { %357 = vst [vmem:[%s317_s4 + $0x40] sm:$0xff] %v356_v8  ;;  %v362_v11 = vld [vmem:[%s2148_s26 + $0x98] sm:$0xff]  ;;  %359 = vst [vmem:[%s317_s4 + $0x48] sm:$0xff] %v358_v9  ;;  %v364_v12 = vld [vmem:[%s2148_s26 + $0xc0] sm:$0xff] }
  0x5a   : > { %361 = vst [vmem:[%s317_s4 + $0x50] sm:$0xff] %v360_v10  ;;  %363 = vst [vmem:[%s317_s4 + $0x58] sm:$0xff] %v362_v11  ;;  %v366_v13 = vld [vmem:[%s2148_s26 + $0xc8] sm:$0xff]  ;;  %v368_v14 = vld [vmem:[%s2148_s26 + $0xd0] sm:$0xff] }
  0x5b   : > { %365 = vst [vmem:[%s317_s4 + $0x60] sm:$0xff] %v364_v12  ;;  %367 = vst [vmem:[%s317_s4 + $0x68] sm:$0xff] %v366_v13  ;;  %v370_v15 = vld [vmem:[%s2148_s26 + $0xd8] sm:$0xff] }
  0x5c   : > { %369 = vst [vmem:[%s317_s4 + $0x70] sm:$0xff] %v368_v14  ;;  %371 = vst [vmem:[%s317_s4 + $0x78] sm:$0xff] %v370_v15 }
  0x5d PF: > { %380 = sbr.rel (%p2063_p0) target bundleno = 1153 (0x481), region = 70  ;;  %s383_s7 = sand.u32 (!%p2063_p0), 1, %s1916_s15  }
  0x5e   : > { %s1449_s30 = sshll.u32 (!%p2063_p0), %s383_s7, 7  ;;  %s1450_s5 = sshll.u32 (!%p2063_p0), %s383_s7, 5 }
  0x5f   : > { %s2169_s6 = scalar_lea.vmem (!%p2063_p0), [#allocation4], %s1449_s30  ;;  %s2171_s8 = scalar_lea.vmem (!%p2063_p0), [#allocation6], %s1450_s5 }
  0x60   : > { %p1451_p2 = scmp.ne.s32.totalorder (!%p2063_p0), %s1924_s17, 0 }
  0x64   : > { %423 = sbr.rel (%p1451_p2) target bundleno = 107 (0x6b), region = 82  ;;  %v1942_v16 = vmov (!%p1451_p2), 0.0  }
  0x65   : > { %424 = vst [vmem:[#allocation2] sm:$0xff] (!%p1451_p2), %v1942_v16  ;;  %425 = vst [vmem:[#allocation3] sm:$0xff] (!%p1451_p2), %v1942_v16 }
  0x6b PF: > { %v428_v17 = vld [vmem:[#allocation5 + $0x8] sm:$0xff]  ;;  %v427_v19 = vld [vmem:[#allocation5] sm:$0xff]  ;;  %v1943_v24 = vmov 0.0   ;;  %v430_v29 = vld [vmem:[#allocation5 + $0x18] sm:$0xff]  ;;  %v1944_v30 = vmov 0   ;;  %s2196_s15 = sshll.u32 %s1924_s17, 2 }
  0x6c   : > { %v432_v18 = vld [vmem:[#allocation5 + $0x28] sm:$0xff]  ;;  %v431_v21 = vld [vmem:[#allocation5 + $0x20] sm:$0xff]  ;;  %571 = vmatprep.mubr.f32.mxu0 %v1943_v24  ;;  %642 = vmatprep.mubr.f32.mxu1 %v1943_v24  ;;  %v434_v31 = vld [vmem:[#allocation5 + $0x38] sm:$0xff]  ;;  %s2205_s29 = ssub.s32 1, %s1928_s18  ;;  %s496_s9 = ssub.s32 7, %s2196_s15 }
  0x6d   : > { %v2174_v20 = vpack.c.bf16 %v432_v18, %v428_v17  ;;  %v436_v22 = vld [vmem:[#allocation5 + $0x48] sm:$0xff]  ;;  %v2178_v25 = vpack.c.bf16 %v431_v21, %v427_v19  ;;  %v435_v27 = vld [vmem:[#allocation5 + $0x40] sm:$0xff]  ;;  %1820 = vset.pattern.permute.xlu0 %v1944_v30  ;;  %1821 = vset.pattern.permute.xlu1 %v1944_v30  ;;  %v429_v32 = vld [vmem:[#allocation5 + $0x10] sm:$0xff]  ;;  %v2188_v35 = vpack.c.bf16 %v434_v31, %v430_v29  ;;  %s684_s10 = sadd.s32 1, %s2196_s15  ;;  %s495_s11 = smul.u32 %s2196_s15, %s2205_s29 }
  0x6e   : > { %v440_v23 = vld [vmem:[#allocation5 + $0x68] sm:$0xff]  ;;  %v439_v28 = vld [vmem:[#allocation5 + $0x60] sm:$0xff]  ;;  %v433_v33 = vld [vmem:[#allocation5 + $0x30] sm:$0xff]  ;;  %s686_s12 = ssub.s32 6, %s2196_s15  ;;  %s497_s22 = smul.u32 %s1928_s18, %s496_s9 }
  0x6f   : > { %v2180_v26 = vpack.c.bf16 %v440_v23, %v436_v22  ;;  %1482 = vmatprep.subr.bf16.mxu0 %v2174_v20  ;;  %v2186_v34 = vpack.c.bf16 %v439_v28, %v435_v27  ;;  %v2190_v36 = vpack.c.bf16 %v433_v33, %v429_v32  ;;  %v444_v37 = vld [vmem:[#allocation5 + $0x88] sm:$0xff]  ;;  %v443_v39 = vld [vmem:[#allocation5 + $0x80] sm:$0xff]  ;;  %v438_v42 = vld [vmem:[#allocation5 + $0x58] sm:$0xff]  ;;  %1514 = vmatprep.subr.bf16.mxu1 %v2188_v35  ;;  %s2232_s26 = smul.u32 %s684_s10, %s2205_s29  ;;  %s1068_s9 = ssub.s32 4, %s2196_s15 }
  0x70   : > { %1484 = vmatpush1.bf16.msra.mxu0 %v2178_v25  ;;  %v448_v38 = vld [vmem:[#allocation5 + $0xa8] sm:$0xff]  ;;  %v447_v41 = vld [vmem:[#allocation5 + $0xa0] sm:$0xff]  ;;  %v442_v43 = vld [vmem:[#allocation5 + $0x78] sm:$0xff]  ;;  %s2238_s4 = smul.u32 %s1928_s18, %s686_s12  ;;  %s498_s7 = sadd.s32 %s497_s22, %s495_s11 }
  0x71   : > { %1486 = vmatprep.subr.bf16.mxu0 %v2180_v26  ;;  %v2193_v40 = vpack.c.bf16 %v448_v38, %v444_v37  ;;  %v2199_v44 = vpack.c.bf16 %v442_v43, %v438_v42  ;;  %v437_v45 = vld [vmem:[#allocation5 + $0x50] sm:$0xff]  ;;  %v452_v47 = vld [vmem:[#allocation5 + $0xc8] sm:$0xff]  ;;  %1516 = vmatpush1.bf16.msra.mxu1 %v2190_v36  ;;  %v2208_v50 = vpack.c.bf16 %v447_v41, %v443_v39  ;;  %v446_v51 = vld [vmem:[#allocation5 + $0x98] sm:$0xff]  ;;  %v671_v29 = vstv %s498_s7  ;;  %s1476_s10 = smul.u32 96, %s1928_s18 }
  0x72   : > { %v441_v46 = vld [vmem:[#allocation5 + $0x70] sm:$0xff]  ;;  %v456_v49 = vld [vmem:[#allocation5 + $0xe8] sm:$0xff]  ;;  %v450_v52 = vld [vmem:[#allocation5 + $0xb8] sm:$0xff]  ;;  %s688_s30 = sadd.s32 %s2238_s4, %s2232_s26  ;;  %s1455_s12 = smul.u32 24, %s1928_s18 }
  0x73   : > { %v2202_v48 = vpack.c.bf16 %v441_v46, %v437_v45  ;;  %1518 = vmatprep.subr.bf16.mxu1 %v2199_v44  ;;  %v445_v53 = vld [vmem:[#allocation5 + $0x90] sm:$0xff]  ;;  %v2213_v54 = vpack.c.bf16 %v456_v49, %v452_v47  ;;  %v451_v55 = vld [vmem:[#allocation5 + $0xc0] sm:$0xff]  ;;  %v2215_v57 = vpack.c.bf16 %v450_v52, %v446_v51  ;;  %v460_v59 = vld [vmem:[#allocation5 + $0x108] sm:$0xff]  ;;  %v862_v39 = vstv %s688_s30  ;;  %s502_s11 = scalar_lea.vmem %s2169_s6, %s1476_s10 [#allocation4]  ;;  %s875_s26 = sadd.s32 2, %s2196_s15 }
  0x74   : > { %1488 = vmatpush1.bf16.msra.mxu0 %v2186_v34  ;;  %v455_v56 = vld [vmem:[#allocation5 + $0xe0] sm:$0xff]  ;;  %v449_v58 = vld [vmem:[#allocation5 + $0xb0] sm:$0xff]  ;;  %v464_v60 = vld [vmem:[#allocation5 + $0x128] sm:$0xff]  ;;  %s682_s22 = scalar_lea.vmem %s2171_s8, %s1455_s12 [#allocation6]  ;;  %s877_s4 = ssub.s32 5, %s2196_s15 }
  0x75   : > { %1490 = vmatprep.subr.bf16.mxu0 %v2193_v40  ;;  %v454_v61 = vld [vmem:[#allocation5 + $0xd8] sm:$0xff]  ;;  %1520 = vmatpush1.bf16.msra.mxu1 %v2202_v48  ;;  %v2222_v62 = vpack.c.bf16 %v449_v58, %v445_v53  ;;  %v2226_v0 = vpack.c.bf16 %v455_v56, %v451_v55  ;;  %v459_v1 = vld [vmem:[#allocation5 + $0x100] sm:$0xff]  ;;  %v453_v3 = vld [vmem:[#allocation5 + $0xd0] sm:$0xff]  ;;  %v2235_v5 = vpack.c.bf16 %v464_v60, %v460_v59  ;;  %s876_s7 = smul.u32 %s875_s26, %s2205_s29  ;;  %s1066_s30 = sadd.s32 3, %s2196_s15 }
  0x76   : > { %v458_v63 = vld [vmem:[#allocation5 + $0xf8] sm:$0xff]  ;;  %1522 = vmatprep.subr.bf16.mxu1 %v2215_v57  ;;  %v457_v4 = vld [vmem:[#allocation5 + $0xf0] sm:$0xff]  ;;  %v463_v6 = vld [vmem:[#allocation5 + $0x120] sm:$0xff]  ;;  %s878_s5 = smul.u32 %s1928_s18, %s877_s4  ;;  %s1456_s26 = sshll.u32 %s1928_s18, 1 }
  0x77   : > { %v2229_v2 = vpack.c.bf16 %v458_v63, %v454_v61  ;;  %v462_v7 = vld [vmem:[#allocation5 + $0x118] sm:$0xff]  ;;  %v468_v9 = vld [vmem:[#allocation5 + $0x148] sm:$0xff]  ;;  %v2241_v11 = vpack.c.bf16 %v457_v4, %v453_v3  ;;  %v2244_v12 = vpack.c.bf16 %v463_v6, %v459_v1  ;;  %v467_v13 = vld [vmem:[#allocation5 + $0x140] sm:$0xff]  ;;  %s1067_s10 = smul.u32 %s1066_s30, %s2205_s29  ;;  %s2405_s4 = sadd.s32 %s1456_s26, %s2205_s29 }
  0x78   : > { %1492 = vmatpush1.bf16.msra.mxu0 %v2208_v50  ;;  %v466_v8 = vld [vmem:[#allocation5 + $0x138] sm:$0xff]  ;;  %v472_v10 = vld [vmem:[#allocation5 + $0x168] sm:$0xff]  ;;  %v461_v15 = vld [vmem:[#allocation5 + $0x110] sm:$0xff]  ;;  %s1069_s12 = smul.u32 %s1928_s18, %s1068_s9  ;;  %s1477_s15 = sshll.u32 %s2405_s4, 5 }
  0x79   : > { %1494 = vmatprep.subr.bf16.mxu0 %v2213_v54  ;;  %1524 = vmatpush1.bf16.msra.mxu1 %v2222_v62  ;;  %v2247_v14 = vpack.c.bf16 %v466_v8, %v462_v7  ;;  %v465_v16 = vld [vmem:[#allocation5 + $0x130] sm:$0xff]  ;;  %v2253_v17 = vpack.c.bf16 %v472_v10, %v468_v9  ;;  %v471_v18 = vld [vmem:[#allocation5 + $0x160] sm:$0xff]  ;;  %v470_v19 = vld [vmem:[#allocation5 + $0x158] sm:$0xff]  ;;  %s1459_s30 = sshll.u32 %s2405_s4, 3  ;;  %s1460_s9 = sshll.u32 %s2205_s29, 1 }
  0x7a   : > { %1526 = vmatprep.subr.bf16.mxu1 %v2229_v2  ;;  %v474_v21 = vld [vmem:[#allocation5 + $0x178] sm:$0xff]  ;;  %v476_v22 = vld [vmem:[#allocation5 + $0x188] sm:$0xff]  ;;  %v2258_v27 = vpack.c.bf16 %v465_v16, %v461_v15  ;;  %v475_v28 = vld [vmem:[#allocation5 + $0x180] sm:$0xff]  ;;  %v2261_v31 = vpack.c.bf16 %v471_v18, %v467_v13  ;;  %s1479_s4 = smul.u32 96, %s2205_s29 }
  0x7b   : > { %v480_v23 = vld [vmem:[#allocation5 + $0x1a8] sm:$0xff]  ;;  %v479_v32 = vld [vmem:[#allocation5 + $0x1a0] sm:$0xff]  ;;  %v2264_v33 = vpack.c.bf16 %v474_v21, %v470_v19  ;;  %v469_v37 = vld [vmem:[#allocation5 + $0x150] sm:$0xff] }
  0x7c   : > { %1496 = vmatpush1.bf16.msra.mxu0 %v2226_v0  ;;  %v473_v38 = vld [vmem:[#allocation5 + $0x170] sm:$0xff]  ;;  %v2267_v41 = vpack.c.bf16 %v480_v23, %v476_v22  ;;  %v478_v42 = vld [vmem:[#allocation5 + $0x198] sm:$0xff]  ;;  %v484_v46 = vld [vmem:[#allocation5 + $0x1c8] sm:$0xff]  ;;  %v2281_v52 = vpack.c.bf16 %v479_v32, %v475_v28 }
  0x7d   : > { %1498 = vmatprep.subr.bf16.mxu0 %v2235_v5  ;;  %1528 = vmatpush1.bf16.msra.mxu1 %v2241_v11  ;;  %v482_v43 = vld [vmem:[#allocation5 + $0x1b8] sm:$0xff]  ;;  %v2272_v45 = vld [vmem:[%s2510_s0] sm:$0xff]  ;;  %v488_v47 = vld [vmem:[#allocation5 + $0x1e8] sm:$0xff]  ;;  %v2276_v49 = vpack.c.bf16 %v473_v38, %v469_v37 }
  0x7e   : > { %1530 = vmatprep.subr.bf16.mxu1 %v2247_v14  ;;  %vm672_vm0 = vcmp.lt.s32.totalorder %v671_v29, %v2272_v45  ;;  %vm863_vm1 = vcmp.lt.s32.totalorder %v862_v39, %v2272_v45  ;;  %v483_v53 = vld [vmem:[#allocation5 + $0x1c0] sm:$0xff]  ;;  %v2284_v55 = vpack.c.bf16 %v482_v43, %v478_v42  ;;  %v477_v56 = vld [vmem:[#allocation5 + $0x190] sm:$0xff]  ;;  %v2287_v59 = vpack.c.bf16 %v488_v47, %v484_v46  ;;  %v486_v61 = vld [vmem:[#allocation5 + $0x1d8] sm:$0xff] }
  0x7f   : > { %v673_v51 = vsel %vm672_vm0, 1, %v1944_v30  ;;  %v481_v58 = vld [vmem:[#allocation5 + $0x1b0] sm:$0xff]  ;;  %v487_v60 = vld [vmem:[#allocation5 + $0x1e0] sm:$0xff]  ;;  %v490_v63 = vld [vmem:[#allocation5 + $0x1f8] sm:$0xff]  ;;  %v864_v1 = vsel %vm863_vm1, 1, %v1944_v30 }
  0x80   : > { %1500 = vmatpush1.bf16.msra.mxu0 %v2244_v12  ;;  %675 = vperm.xlu0 %1820, %v673_v51   ;;  %v2291_v3 = vpack.c.bf16 %v481_v58, %v477_v56  ;;  %v2294_v4 = vpack.c.bf16 %v487_v60, %v483_v53  ;;  %v2297_v6 = vpack.c.bf16 %v490_v63, %v486_v61  ;;  %v485_v7 = vld [vmem:[#allocation5 + $0x1d0] sm:$0xff]  ;;  %v504_v15 = vld [vmem:[%s502_s11 + $0x8] sm:$0xff]  ;;  %v506_v22 = vld [vmem:[%s502_s11 + $0x18] sm:$0xff] }
  0x81   : > { %1502 = vmatprep.subr.bf16.mxu0 %v2253_v17  ;;  %1532 = vmatpush1.bf16.msra.mxu1 %v2258_v27  ;;  %v489_v8 = vld [vmem:[#allocation5 + $0x1f0] sm:$0xff]  ;;  %v505_v38 = vld [vmem:[%s502_s11 + $0x10] sm:$0xff]  ;;  %v493_v58 = vld [vmem:[#allocation3] sm:$0xff] }
  0x82   : > { %1534 = vmatprep.subr.bf16.mxu1 %v2264_v33  ;;  %v2301_v9 = vpack.c.bf16 %v489_v8, %v485_v7  ;;  %v2304_v10 = vld [vmem:[#allocation2] sm:$0xff] }
  0x83   : > { %v503_v13 = vld [vmem:[%s502_s11] sm:$0xff]  ;;  %s879_s11 = sadd.s32 %s878_s5, %s876_s7  ;;  %s693_s7 = scalar_lea.vmem %s2169_s6, %s1477_s15 [#allocation4] }
  0x84   : > { %1504 = vmatpush1.bf16.msra.mxu0 %v2261_v31  ;;  %866 = vperm.xlu0 %1820, %v864_v1   ;;  %s873_s5 = scalar_lea.vmem %s2171_s8, %s1459_s30 [#allocation6]  ;;  %s1074_s15 = scalar_lea.vmem %s2169_s6, %s1479_s4 [#allocation4] }
  0x85   : > { %1506 = vmatprep.subr.bf16.mxu0 %v2267_v41  ;;  %1536 = vmatpush1.bf16.msra.mxu1 %v2276_v49 }
  0x86   : > { %1538 = vmatprep.subr.bf16.mxu1 %v2284_v55 }
  0x88   : > { %1508 = vmatpush1.bf16.msra.mxu0 %v2281_v52 }
  0x89   : > { %1510 = vmatprep.subr.bf16.mxu0 %v2287_v59  ;;  %1540 = vmatpush1.bf16.msra.mxu1 %v2291_v3 }
  0x8a   : > { %1542 = vmatprep.subr.bf16.mxu1 %v2297_v6 }
  0x8c   : > { %1512 = vmatpush1.bf16.msra.mxu0 %v2294_v4 }
  0x8d   : > { %1546 = vmatprep.subr.bf16.mxu0 %v2174_v20  ;;  %1544 = vmatpush1.bf16.msra.mxu1 %v2301_v9 }
  0x8e   : > { %1578 = vmatprep.subr.bf16.mxu1 %v2188_v35 }
  0x8f   : > { %572 = vmatmul.mubr.f32.vlgmr.msra.gmra.mrb[0].mxu0 %v2304_v10 }
  0x90   : > { %1548 = vmatpush1.bf16.msra.mxu0 %v2178_v25  ;;  %762 = vmatprep.mubr.f32.mxu0 %v1943_v24 }
  0x91   : > { %1550 = vmatprep.subr.bf16.mxu0 %v2180_v26  ;;  %643 = vmatmul.mubr.f32.vlgmr.msra.gmra.mrb[0].mxu1 %v2304_v10 }
  0x92   : > { %1580 = vmatpush1.bf16.msra.mxu1 %v2190_v36  ;;  %833 = vmatprep.mubr.f32.mxu1 %v1943_v24 }
  0x93   : > { %1582 = vmatprep.subr.bf16.mxu1 %v2199_v44 }
  0x94   : > { %1552 = vmatpush1.bf16.msra.mxu0 %v2186_v34 }
  0x95   : > { %1554 = vmatprep.subr.bf16.mxu0 %v2193_v40 }
  0x96   : > { %1584 = vmatpush1.bf16.msra.mxu1 %v2202_v48 }
  0x97   : > { %1586 = vmatprep.subr.bf16.mxu1 %v2215_v57 }
  0x98   : > { %1556 = vmatpush1.bf16.msra.mxu0 %v2208_v50 }
  0x99   : > { %1558 = vmatprep.subr.bf16.mxu0 %v2213_v54 }
  0x9a   : > { %1588 = vmatpush1.bf16.msra.mxu1 %v2222_v62 }
  0x9b   : > { %1590 = vmatprep.subr.bf16.mxu1 %v2229_v2 }
  0x9c   : > { %1560 = vmatpush1.bf16.msra.mxu0 %v2226_v0 }
  0x9d   : > { %1562 = vmatprep.subr.bf16.mxu0 %v2235_v5 }
  0x9e   : > { %1592 = vmatpush1.bf16.msra.mxu1 %v2241_v11 }
  0x9f   : > { %1594 = vmatprep.subr.bf16.mxu1 %v2247_v14 }
  0xa0   : > { %1564 = vmatpush1.bf16.msra.mxu0 %v2244_v12 }
  0xa1   : > { %1566 = vmatprep.subr.bf16.mxu0 %v2253_v17 }
  0xa2   : > { %1596 = vmatpush1.bf16.msra.mxu1 %v2258_v27 }
  0xa3   : > { %1598 = vmatprep.subr.bf16.mxu1 %v2264_v33 }
  0xa4   : > { %1568 = vmatpush1.bf16.msra.mxu0 %v2261_v31 }
  0xa5   : > { %1570 = vmatprep.subr.bf16.mxu0 %v2267_v41 }
  0xa6   : > { %1600 = vmatpush1.bf16.msra.mxu1 %v2276_v49 }
  0xa7   : > { %1602 = vmatprep.subr.bf16.mxu1 %v2284_v55 }
  0xa8   : > { %1572 = vmatpush1.bf16.msra.mxu0 %v2281_v52 }
  0xa9   : > { %1574 = vmatprep.subr.bf16.mxu0 %v2287_v59 }
  0xaa   : > { %1604 = vmatpush1.bf16.msra.mxu1 %v2291_v3 }
  0xab   : > { %1606 = vmatprep.subr.bf16.mxu1 %v2297_v6 }
  0xac   : > { %1576 = vmatpush1.bf16.msra.mxu0 %v2294_v4 }
  0xad   : > { %1610 = vmatprep.subr.bf16.mxu0 %v2174_v20 }
  0xae   : > { %1608 = vmatpush1.bf16.msra.mxu1 %v2301_v9 }
  0xaf   : > { %1642 = vmatprep.subr.bf16.mxu1 %v2188_v35 }
  0xff   : > { %v676_v61 = vpop.permute.xlu0 %675 }
 0x100   : > { %vm677_vm2 = vcmp.eq.s32.totalorder %v676_v61, 1 }
 0x162   : > { %v573_v16 = vpop.f32.mrb[0].mxu0 }
 0x163   : > { %v649_v18 = vadd.f32 %v573_v16, %v503_v13  ;;  %v575_v19 = vpop.f32.mrb[1].mxu0 }
 0x164   : > { %v650_v21 = vadd.f32 %v575_v19, %v504_v15  ;;  %v644_v28 = vpop.f32.mrb[0].mxu1 }
 0x165   : > { %v653_v23 = vmul.f32 0.5, %v649_v18  ;;  %v646_v32 = vpop.f32.mrb[1].mxu1  ;;  %v651_v39 = vadd.f32 %v644_v28, %v505_v38  ;;  %v694_v28 = vld [vmem:[%s693_s7] sm:$0xff] }
 0x166   : > { %v654_v29 = vmul.f32 0.5, %v650_v21  ;;  %v652_v37 = vadd.f32 %v646_v32, %v506_v22 }
 0x167   : > { %1822 = vtanh.f32 %v653_v23  ;;  %v655_v42 = vmul.f32 0.5, %v651_v39 }
 0x168   : > { %1824 = vtanh.f32 %v654_v29  ;;  %v695_v29 = vld [vmem:[%s693_s7 + $0x8] sm:$0xff] }
 0x169   : > { %1826 = vtanh.f32 %v652_v37 }
 0x16a   : > { %1828 = vtanh.f32 %v655_v42 }
 0x171   : > { %v1823_v43 = vpop.eup %1822 }
 0x172   : > { %v1825_v46 = vpop.eup %1824  ;;  %v659_v47 = vmul.f32 0.5, %v1823_v43 }
 0x173   : > { %v1827_v51 = vpop.eup %1826  ;;  %v660_v53 = vmul.f32 0.5, %v1825_v46  ;;  %v697_v46 = vld [vmem:[%s693_s7 + $0x18] sm:$0xff] }
 0x174   : > { %v662_v56 = vadd.f32 0.5, %v659_v47  ;;  %v1829_v13 = vpop.eup %1828 }
 0x175   : > { %v663_v60 = vadd.f32 0.5, %v660_v53  ;;  %v661_v15 = vmul.f32 0.5, %v1829_v13 }
 0x176   : > { %v667_v63 = vmul.f32 %v1827_v51, %v662_v56  ;;  %v696_v51 = vld [vmem:[%s693_s7 + $0x10] sm:$0xff] }
 0x177   : > { %v666_v1 = vmul.f32 %v663_v60, %v493_v58  ;;  %v664_v16 = vadd.f32 0.5, %v661_v15 }
 0x179   : > { %v668_v7 = vadd.f32 %v667_v63, %v666_v1 }
 0x17b   : > { %1830 = vtanh.f32 %v668_v7  ;;  %v2348_v8 = vsel %vm677_vm2, %v668_v7, %v493_v58 }
 0x185   : > { %v1831_v18 = vpop.eup %1830 }
 0x186   : > { %v670_v19 = vmul.f32 %v1831_v18, %v664_v16  ;;  %v867_v16 = vpop.permute.xlu0 %866 }
 0x187   : > { %vm868_vm5 = vcmp.eq.s32.totalorder %v867_v16, 1 }
 0x188   : > { %v2353_v21 = vsel %vm677_vm2, %v670_v19, %v2304_v10  ;;  %v680_v22 = vsel %vm677_vm2, %v670_v19, 0.0  ;;  %v1053_v10 = vstv %s879_s11 }
 0x189   : > { %683 = vst [vmem:[%s682_s22] sm:$0xff] %v680_v22  ;;  %763 = vmatmul.mubr.f32.vlgmr.msra.gmra.mrb[2].mxu0 %v2353_v21  ;;  %834 = vmatmul.mubr.f32.vlgmr.msra.gmra.mrb[2].mxu1 %v2353_v21  ;;  %vm1054_vm3 = vcmp.lt.s32.totalorder %v1053_v10, %v2272_v45  ;;  %s1070_s22 = sadd.s32 %s1069_s12, %s1067_s10  ;;  %s2454_s10 = sadd.s32 %s1928_s18, %s1460_s9 }
 0x18a   : > { %1612 = vmatpush1.bf16.msra.mxu0 %v2178_v25  ;;  %1644 = vmatpush1.bf16.msra.mxu1 %v2190_v36  ;;  %v1243_v23 = vstv %s1070_s22  ;;  %s1478_s11 = sshll.u32 %s2454_s10, 5  ;;  %s1463_s22 = sshll.u32 %s2454_s10, 3 }
 0x18b   : > { %1614 = vmatprep.subr.bf16.mxu0 %v2180_v26  ;;  %1646 = vmatprep.subr.bf16.mxu1 %v2199_v44  ;;  %vm1244_vm4 = vcmp.lt.s32.totalorder %v1243_v23, %v2272_v45  ;;  %s884_s12 = scalar_lea.vmem %s2169_s6, %s1478_s11 [#allocation4]  ;;  %s1064_s26 = scalar_lea.vmem %s2171_s8, %s1463_s22 [#allocation6] }
 0x18c   : > { %953 = vmatprep.mubr.f32.mxu0 %v1943_v24  ;;  %1024 = vmatprep.mubr.f32.mxu1 %v1943_v24  ;;  %s1466_s6 = smul.u32 24, %s2205_s29  ;;  %s1468_s29 = sshll.u32 (%p2057_p11), %s1924_s17, 1 }
 0x18d   : > { %s1266_s30 = ssub.s32 (%p2057_p11), 1, %s1468_s29 }
 0x18e   : > { %1616 = vmatpush1.bf16.msra.mxu0 %v2186_v34  ;;  %1648 = vmatpush1.bf16.msra.mxu1 %v2202_v48  ;;  %s1254_s7 = scalar_lea.vmem %s2171_s8, %s1466_s6 [#allocation6] }
 0x18f   : > { %1618 = vmatprep.subr.bf16.mxu0 %v2193_v40  ;;  %1650 = vmatprep.subr.bf16.mxu1 %v2215_v57 }
 0x192   : > { %1620 = vmatpush1.bf16.msra.mxu0 %v2208_v50  ;;  %1652 = vmatpush1.bf16.msra.mxu1 %v2222_v62 }
 0x193   : > { %1622 = vmatprep.subr.bf16.mxu0 %v2213_v54  ;;  %1654 = vmatprep.subr.bf16.mxu1 %v2229_v2 }
 0x196   : > { %1624 = vmatpush1.bf16.msra.mxu0 %v2226_v0  ;;  %1656 = vmatpush1.bf16.msra.mxu1 %v2241_v11 }
 0x197   : > { %1626 = vmatprep.subr.bf16.mxu0 %v2235_v5  ;;  %1658 = vmatprep.subr.bf16.mxu1 %v2247_v14 }
 0x19a   : > { %1628 = vmatpush1.bf16.msra.mxu0 %v2244_v12  ;;  %1660 = vmatpush1.bf16.msra.mxu1 %v2258_v27 }
 0x19b   : > { %1630 = vmatprep.subr.bf16.mxu0 %v2253_v17  ;;  %1662 = vmatprep.subr.bf16.mxu1 %v2264_v33 }
 0x19e   : > { %1632 = vmatpush1.bf16.msra.mxu0 %v2261_v31  ;;  %1664 = vmatpush1.bf16.msra.mxu1 %v2276_v49 }
 0x19f   : > { %1634 = vmatprep.subr.bf16.mxu0 %v2267_v41  ;;  %1666 = vmatprep.subr.bf16.mxu1 %v2284_v55 }
 0x1a2   : > { %1636 = vmatpush1.bf16.msra.mxu0 %v2281_v52  ;;  %1668 = vmatpush1.bf16.msra.mxu1 %v2291_v3 }
 0x1a3   : > { %1638 = vmatprep.subr.bf16.mxu0 %v2287_v59  ;;  %1670 = vmatprep.subr.bf16.mxu1 %v2297_v6 }
 0x1a6   : > { %1640 = vmatpush1.bf16.msra.mxu0 %v2294_v4  ;;  %1672 = vmatpush1.bf16.msra.mxu1 %v2301_v9 }
 0x1a7   : > { %1674 = vmatprep.subr.bf16.mxu0 %v2174_v20  ;;  %1706 = vmatprep.subr.bf16.mxu1 %v2188_v35  ;;  %v1055_v20 = vsel %vm1054_vm3, 1, %v1944_v30  ;;  %v1245_v35 = vsel %vm1244_vm4, 1, %v1944_v30 }
 0x1a8   : > { %1057 = vperm.xlu1 %1821, %v1055_v20  }
 0x1ac   : > { %1247 = vperm.xlu1 %1821, %v1245_v35  }
 0x25c   : > { %v764_v32 = vpop.f32.mrb[2].mxu0  ;;  %v835_v37 = vpop.f32.mrb[2].mxu1 }
 0x25d   : > { %v840_v38 = vadd.f32 %v764_v32, %v694_v28  ;;  %v766_v39 = vpop.f32.mrb[3].mxu0  ;;  %v837_v42 = vpop.f32.mrb[3].mxu1  ;;  %v842_v53 = vadd.f32 %v835_v37, %v696_v51  ;;  %v1078_v51 = vld [vmem:[%s1074_s15 + $0x18] sm:$0xff] }
 0x25e   : > { %v841_v43 = vadd.f32 %v766_v39, %v695_v29  ;;  %v843_v30 = vadd.f32 %v837_v42, %v697_v46  ;;  %v1076_v39 = vld [vmem:[%s1074_s15 + $0x8] sm:$0xff] }
 0x25f   : > { %v844_v47 = vmul.f32 0.5, %v840_v38  ;;  %v846_v56 = vmul.f32 0.5, %v842_v53  ;;  %v1075_v38 = vld [vmem:[%s1074_s15] sm:$0xff] }
 0x260   : > { %v845_v45 = vmul.f32 0.5, %v841_v43 }
 0x261   : > { %1832 = vtanh.f32 %v844_v47 }
 0x262   : > { %1834 = vtanh.f32 %v845_v45 }
 0x263   : > { %1836 = vtanh.f32 %v843_v30 }
 0x264   : > { %1838 = vtanh.f32 %v846_v56 }
 0x26b   : > { %v1833_v58 = vpop.eup %1832 }
 0x26c   : > { %v850_v60 = vmul.f32 0.5, %v1833_v58  ;;  %v1835_v61 = vpop.eup %1834 }
 0x26d   : > { %v851_v1 = vmul.f32 0.5, %v1835_v61  ;;  %v1837_v7 = vpop.eup %1836 }
 0x26e   : > { %v853_v63 = vadd.f32 0.5, %v850_v60  ;;  %v1839_v10 = vpop.eup %1838  ;;  %v1077_v60 = vld [vmem:[%s1074_s15 + $0x10] sm:$0xff] }
 0x26f   : > { %v854_v13 = vadd.f32 0.5, %v851_v1  ;;  %v852_v20 = vmul.f32 0.5, %v1839_v10 }
 0x270   : > { %v858_v15 = vmul.f32 %v1837_v7, %v853_v63 }
 0x271   : > { %v857_v18 = vmul.f32 %v854_v13, %v2348_v8  ;;  %v855_v23 = vadd.f32 0.5, %v852_v20 }
 0x273   : > { %v859_v19 = vadd.f32 %v858_v15, %v857_v18 }
 0x275   : > { %1840 = vtanh.f32 %v859_v19  ;;  %v2411_v22 = vsel %vm868_vm5, %v859_v19, %v2348_v8 }
 0x27f   : > { %v1841_v35 = vpop.eup %1840 }
 0x280   : > { %v861_v28 = vmul.f32 %v1841_v35, %v855_v23 }
 0x282   : > { %v2416_v29 = vsel %vm868_vm5, %v861_v28, %v2353_v21  ;;  %v871_v32 = vsel %vm868_vm5, %v861_v28, 0.0 }
 0x283   : > { %954 = vmatmul.mubr.f32.vlgmr.msra.gmra.mrb[4].mxu0 %v2416_v29  ;;  %874 = vst [vmem:[%s873_s5] sm:$0xff] %v871_v32  ;;  %1025 = vmatmul.mubr.f32.vlgmr.msra.gmra.mrb[4].mxu1 %v2416_v29  ;;  %s1267_s5 = smul.u32 (%p2057_p11), %s1928_s18, %s1266_s30 }
 0x284   : > { %1676 = vmatpush1.bf16.msra.mxu0 %v2178_v25  ;;  %1708 = vmatpush1.bf16.msra.mxu1 %v2190_v36  ;;  %v886_v25 = vld [vmem:[%s884_s12 + $0x8] sm:$0xff] }
 0x285   : > { %1678 = vmatprep.subr.bf16.mxu0 %v2180_v26  ;;  %1710 = vmatprep.subr.bf16.mxu1 %v2199_v44  ;;  %s1268_s9 = sadd.s32 (%p2057_p11), %s1924_s17, %s1267_s5 }
 0x286   : > { %1143 = vmatprep.mubr.f32.mxu0 %v1943_v24  ;;  %1214 = vmatprep.mubr.f32.mxu1 %v1943_v24  ;;  %v885_v24 = vld [vmem:[%s884_s12] sm:$0xff]  ;;  %s1480_s10 = sshll.u32 (%p2057_p11), %s1268_s9, 3 }
 0x287   : > { %s1271_s11 = sadd.s32 (%p2057_p11), %s1928_s18, %s1480_s10 }
 0x288   : > { %1680 = vmatpush1.bf16.msra.mxu0 %v2186_v34  ;;  %1712 = vmatpush1.bf16.msra.mxu1 %v2202_v48  ;;  %s1471_s28 = sshll.u32 (%p2057_p11), %s1271_s11, 3 }
 0x289   : > { %1682 = vmatprep.subr.bf16.mxu0 %v2193_v40  ;;  %1714 = vmatprep.subr.bf16.mxu1 %v2215_v57 }
 0x28c   : > { %1684 = vmatpush1.bf16.msra.mxu0 %v2208_v50  ;;  %1716 = vmatpush1.bf16.msra.mxu1 %v2222_v62  ;;  %v888_v50 = vld [vmem:[%s884_s12 + $0x18] sm:$0xff] }
 0x28d   : > { %1686 = vmatprep.subr.bf16.mxu0 %v2213_v54  ;;  %1718 = vmatprep.subr.bf16.mxu1 %v2229_v2 }
 0x290   : > { %1688 = vmatpush1.bf16.msra.mxu0 %v2226_v0  ;;  %1720 = vmatpush1.bf16.msra.mxu1 %v2241_v11  ;;  %v887_v0 = vld [vmem:[%s884_s12 + $0x10] sm:$0xff] }
 0x291   : > { %1690 = vmatprep.subr.bf16.mxu0 %v2235_v5  ;;  %1722 = vmatprep.subr.bf16.mxu1 %v2247_v14 }
 0x294   : > { %1692 = vmatpush1.bf16.msra.mxu0 %v2244_v12  ;;  %1724 = vmatpush1.bf16.msra.mxu1 %v2258_v27 }
 0x295   : > { %1694 = vmatprep.subr.bf16.mxu0 %v2253_v17  ;;  %1726 = vmatprep.subr.bf16.mxu1 %v2264_v33 }
 0x298   : > { %1696 = vmatpush1.bf16.msra.mxu0 %v2261_v31  ;;  %1728 = vmatpush1.bf16.msra.mxu1 %v2276_v49 }
 0x299   : > { %1698 = vmatprep.subr.bf16.mxu0 %v2267_v41  ;;  %1730 = vmatprep.subr.bf16.mxu1 %v2284_v55  ;;  %v1058_v41 = vpop.permute.xlu1 %1057 }
 0x29a   : > { %vm1059_vm6 = vcmp.eq.s32.totalorder %v1058_v41, 1 }
 0x29c   : > { %1700 = vmatpush1.bf16.msra.mxu0 %v2281_v52  ;;  %1732 = vmatpush1.bf16.msra.mxu1 %v2291_v3 }
 0x29d   : > { %1702 = vmatprep.subr.bf16.mxu0 %v2287_v59  ;;  %1734 = vmatprep.subr.bf16.mxu1 %v2297_v6  ;;  %v1248_v10 = vpop.permute.xlu1 %1247 }
 0x29e   : > { %vm1249_vm7 = vcmp.eq.s32.totalorder %v1248_v10, 1 }
 0x2a0   : > { %1704 = vmatpush1.bf16.msra.mxu0 %v2294_v4  ;;  %1736 = vmatpush1.bf16.msra.mxu1 %v2301_v9 }
 0x356   : > { %v955_v26 = vpop.f32.mrb[4].mxu0  ;;  %v1026_v34 = vpop.f32.mrb[4].mxu1 }
 0x357   : > { %v1031_v36 = vadd.f32 %v955_v26, %v885_v24  ;;  %v957_v40 = vpop.f32.mrb[5].mxu0  ;;  %v1028_v44 = vpop.f32.mrb[5].mxu1  ;;  %v1033_v2 = vadd.f32 %v1026_v34, %v887_v0 }
 0x358   : > { %v1032_v48 = vadd.f32 %v957_v40, %v886_v25  ;;  %v1034_v62 = vadd.f32 %v1028_v44, %v888_v50 }
 0x359   : > { %v1035_v54 = vmul.f32 0.5, %v1031_v36  ;;  %v1037_v5 = vmul.f32 0.5, %v1033_v2 }
 0x35a   : > { %v1036_v57 = vmul.f32 0.5, %v1032_v48 }
 0x35b   : > { %1842 = vtanh.f32 %v1035_v54 }
 0x35c   : > { %1844 = vtanh.f32 %v1036_v57 }
 0x35d   : > { %1846 = vtanh.f32 %v1034_v62 }
 0x35e   : > { %1848 = vtanh.f32 %v1037_v5 }
 0x365   : > { %v1843_v11 = vpop.eup %1842 }
 0x366   : > { %v1041_v12 = vmul.f32 0.5, %v1843_v11  ;;  %v1845_v14 = vpop.eup %1844 }
 0x367   : > { %v1042_v27 = vmul.f32 0.5, %v1845_v14  ;;  %v1847_v31 = vpop.eup %1846 }
 0x368   : > { %v1044_v17 = vadd.f32 0.5, %v1041_v12  ;;  %v1849_v3 = vpop.eup %1848 }
 0x369   : > { %v1045_v33 = vadd.f32 0.5, %v1042_v27  ;;  %v1043_v4 = vmul.f32 0.5, %v1849_v3 }
 0x36a   : > { %v1049_v49 = vmul.f32 %v1847_v31, %v1044_v17 }
 0x36b   : > { %v1048_v52 = vmul.f32 %v1045_v33, %v2411_v22  ;;  %v1046_v6 = vadd.f32 0.5, %v1043_v4 }
 0x36d   : > { %v1050_v55 = vadd.f32 %v1049_v49, %v1048_v52 }
 0x36f   : > { %1850 = vtanh.f32 %v1050_v55  ;;  %v1061_v59 = vsel %vm1059_vm6, %v1050_v55, %v2411_v22 }
 0x379   : > { %v1851_v9 = vpop.eup %1850 }
 0x37a   : > { %v1052_v8 = vmul.f32 %v1851_v9, %v1046_v6 }
 0x37c   : > { %v1060_v21 = vsel %vm1059_vm6, %v1052_v8, %v2416_v29  ;;  %v1062_v37 = vsel %vm1059_vm6, %v1052_v8, 0.0 }
 0x37d   : > { %1065 = vst [vmem:[%s1064_s26] sm:$0xff] %v1062_v37  ;;  %1144 = vmatmul.mubr.f32.vlgmr.msra.gmra.mrb[6].mxu0 %v1060_v21  ;;  %1215 = vmatmul.mubr.f32.vlgmr.msra.gmra.mrb[6].mxu1 %v1060_v21  ;;  %s1273_s26 = scalar_lea.vmem (%p2057_p11), %s2513_s3, %s1471_s28 }
 0x450   : > { %v1145_v42 = vpop.f32.mrb[6].mxu0  ;;  %v1216_v43 = vpop.f32.mrb[6].mxu1 }
 0x451   : > { %v1221_v46 = vadd.f32 %v1145_v42, %v1075_v38  ;;  %v1147_v47 = vpop.f32.mrb[7].mxu0  ;;  %v1218_v45 = vpop.f32.mrb[7].mxu1  ;;  %v1223_v61 = vadd.f32 %v1216_v43, %v1077_v60 }
 0x452   : > { %v1222_v30 = vadd.f32 %v1147_v47, %v1076_v39  ;;  %v1224_v58 = vadd.f32 %v1218_v45, %v1078_v51 }
 0x453   : > { %v1225_v53 = vmul.f32 0.5, %v1221_v46  ;;  %v1227_v63 = vmul.f32 0.5, %v1223_v61 }
 0x454   : > { %v1226_v56 = vmul.f32 0.5, %v1222_v30 }
 0x455   : > { %1852 = vtanh.f32 %v1225_v53 }
 0x456   : > { %1854 = vtanh.f32 %v1226_v56 }
 0x457   : > { %1856 = vtanh.f32 %v1224_v58 }
 0x458   : > { %1858 = vtanh.f32 %v1227_v63 }
 0x45f   : > { %v1853_v1 = vpop.eup %1852 }
 0x460   : > { %v1231_v7 = vmul.f32 0.5, %v1853_v1  ;;  %v1855_v13 = vpop.eup %1854 }
 0x461   : > { %v1232_v16 = vmul.f32 0.5, %v1855_v13  ;;  %v1857_v18 = vpop.eup %1856 }
 0x462   : > { %v1234_v15 = vadd.f32 0.5, %v1231_v7  ;;  %v1859_v28 = vpop.eup %1858 }
 0x463   : > { %v1235_v19 = vadd.f32 0.5, %v1232_v16  ;;  %v1233_v29 = vmul.f32 0.5, %v1859_v28 }
 0x464   : > { %v1239_v22 = vmul.f32 %v1857_v18, %v1234_v15 }
 0x465   : > { %v1238_v20 = vmul.f32 %v1235_v19, %v1061_v59  ;;  %v1236_v32 = vadd.f32 0.5, %v1233_v29 }
 0x467   : > { %v1240_v23 = vadd.f32 %v1239_v22, %v1238_v20 }
 0x469   : > { %1860 = vtanh.f32 %v1240_v23  ;;  %v1251_v35 = vsel %vm1249_vm7, %v1240_v23, %v1061_v59 }
 0x46a   : > { %1257 = vst [vmem:[#allocation3] sm:$0xff] %v1251_v35 }
 0x471   : > { %1264 = sbr.rel (!%p2057_p11) target bundleno = 1153 (0x481), region = 86 }
 0x473   : > { %v1861_v24 = vpop.eup %1860 }
 0x474   : > { %v1242_v25 = vmul.f32 %v1861_v24, %v1236_v32 }
 0x476   : > { %v1250_v26 = vsel %vm1249_vm7, %v1242_v25, %v1060_v21  ;;  %v1252_v34 = vsel %vm1249_vm7, %v1242_v25, 0.0 }
 0x477   : > { %1255 = vst [vmem:[%s1254_s7] sm:$0xff] %v1252_v34  ;;  %1256 = vst [vmem:[#allocation2] sm:$0xff] %v1250_v26 }
 0x47e   : > { %v1307_v36 = vld [vmem:[%s2171_s8] sm:$0xff]  ;;  %v1309_v40 = vld [vmem:[%s2171_s8 + $0x8] sm:$0xff]  ;;  %v1311_v44 = vld [vmem:[%s2171_s8 + $0x10] sm:$0xff] }
 0x47f   : > { %v1313_v48 = vld [vmem:[%s2171_s8 + $0x18] sm:$0xff]  ;;  %1308 = vst [vmem:[%s1273_s26] sm:$0xff] %v1307_v36  ;;  %1310 = vst [vmem:[%s1273_s26 + $0x10] sm:$0xff] %v1309_v40 }
 0x480   : > { %1312 = vst [vmem:[%s1273_s26 + $0x20] sm:$0xff] %v1311_v44  ;;  %1314 = vst [vmem:[%s1273_s26 + $0x30] sm:$0xff] %v1313_v48 }
 0x481 PF: > { %s13_s21 = sadd.s32 1, %s1940_s21   ;;  %s2517_s12 = smov %s1908_s13 }
 0x482   : > { %p10_p3 = scmp.ge.s32.totalorder %s13_s21, 6   ;;  %s2518_s13 = smov %s1912_s14 }
 0x483   : > { %s2519_s14 = smov %s2049_s25  ;;  %s2520_s15 = smov %s1920_s16 }
 0x484   : > { %s2521_s16 = smov %s2052_s27  ;;  %s2522_s17 = smov %s1932_s19 }
 0x485   : > { %s2523_s18 = smov %s1936_s20  ;;  %s2524_s19 = smov %s2527_s23 }
 0x486   : > { %s2525_s20 = smov %s2531_s24  ;;  %12 = sbr.rel (!%p10_p3) target bundleno = 5 (0x5), region = 168 }

// kernel: rnn_encoder_forward.2
= control target key start
LH: loop header
LB: loop body
LE: loop exit
PB: predicated region body
PF: predicated region fallthrough
CT: control target
= control target key end

     0   :  { %s1966_s12 = smov 0   ;;  %s1968_s13 = smov 0   ;;  %s2631_s0 = inlined_call_operand.vmem [shape: s32[8,1], index: 0, kind: input, shape index: {}]   ;;  %s2632_s1 = inlined_call_operand.vmem [shape: f32[8,8,1024], index: 1, kind: input, shape index: {}]   ;;  %s2633_s2 = inlined_call_operand.vmem [shape: f32[128,1024], index: 2, kind: input, shape index: {}]   ;;  %s2634_s3 = inlined_call_operand.vmem [shape: f32[8,8,256], index: 3, kind: output, shape index: {}]  }
   0x1   :  { %s1970_s14 = smov 0   ;;  %s1972_s15 = smov 0  }
   0x2   :  { %s1974_s16 = smov 0   ;;  %s1976_s17 = smov 0  }
   0x3   :  { %s1978_s18 = smov 0   ;;  %s1980_s19 = smov 0  }
   0x4   :  { %s1982_s20 = smov 0  }
   0x5 LB: > { %s1447_s21 = sadd.s32 4294967295, %s1941_s20   ;;  %s22_s22 = sadd.s32 1, %s1933_s18  ;;  %s1941_s20 = sphi %s1982_s20, %s13_s20   ;;  %s1937_s19 = sphi %s1980_s19, %s2645_s19   ;;  %s1933_s18 = sphi %s1978_s18, %s2644_s18   ;;  %s1929_s17 = sphi %s1976_s17, %s2643_s17   ;;  %s1925_s16 = sphi %s1974_s16, %s2642_s16   ;;  %s1921_s15 = sphi %s1972_s15, %s2641_s15   ;;  %s1917_s14 = sphi %s1970_s14, %s2640_s14   ;;  %s1913_s13 = sphi %s1968_s13, %s2639_s13   ;;  %s1909_s12 = sphi %s1966_s12, %s2638_s12  }
   0x6   : > { %p23_p0 = scmp.ge.s32.totalorder %s22_s22, 2  ;;  %s25_s23 = sadd.s32 1, %s1937_s19 }
   0x7   : > { %s1449_s24 = sshll.u32 %s1933_s18, 1  ;;  %s63_s25 = sadd.s32 1, %s1921_s15 }
   0x8   : > { %s2647_s22 = smov (%p23_p0, %s22_s22), 0  ;;  %s2649_s23 = smov (!%p23_p0, %s25_s23), %s1937_s19 }
   0x9   : > { %s51_s26 = ssub.s32 1, %s1449_s24  ;;  %s1450_s27 = sshll.u32 %s2647_s22, 1 }
   0xa   : > { %p27_p1 = scmp.ge.s32.totalorder %s2649_s23, 2  ;;  %s52_s28 = smul.u32 %s1937_s19, %s51_s26 }
   0xb   : > { %s55_s29 = ssub.s32 1, %s1450_s27  ;;  %p70_p2 = scmp.ne.s32.totalorder %s1921_s15, %s1917_s14 }
   0xc   : > { %s2651_s23 = smov (%p27_p1, %s2649_s23), 0  ;;  %s53_s30 = sadd.s32 %s1933_s18, %s52_s28 }
   0xd   : > { %p71_p3 = scmp.eq.s32.totalorder %s1941_s20, 0  ;;  %s56_s4 = smul.u32 %s55_s29, %s2651_s23 }
   0xe   : > { %s59_s5 = ssub.s32 %s1937_s19, %s2651_s23  ;;  %s89_s8 = sadd.s32 1, %s1913_s13 }
   0xf   : > { %p2033_p4 = por %p71_p3, %p70_p2  ;;  %p87_p5 = scmp.eq.s32.totalorder %s59_s5, 0 }
  0x10   : > { %s57_s7 = sadd.s32 %s56_s4, %s2647_s22  ;;  %p96_p6 = scmp.ne.s32.totalorder %s1913_s13, %s1909_s12 }
  0x11   : > { %s58_s9 = ssub.s32 %s53_s30, %s57_s7  ;;  %p136_p7 = scmp.eq.s32.totalorder %s1447_s21, 3 }
  0x12   : > { %s60_s10 = sor.u32 %s59_s5, %s58_s9  ;;  %p2041_p9 = por %p96_p6, %p71_p3 }
  0x13   : > { %p61_p8 = scmp.eq.s32.totalorder %s60_s10, 0  ;;  %p2054_p10 = por %p136_p7, %p70_p2 }
  0x14   : > { %s2046_s24 = scalar_select %p87_p5, %s1913_s13, %s89_s8  }
  0x15   : > { %s2049_s26 = scalar_select %p61_p8, %s1921_s15, %s63_s25  }
  0x16   : > { %p1454_p11 = scmp.ge.s32.totalorder %s1941_s20, 4 }
  0x18   : > { %161 = sbr.rel (%p1454_p11) target bundleno = 82 (0x52), region = 20 }
  0x1f   : > { %164 = sbr.rel (!%p2033_p4) target bundleno = 46 (0x2e), region = 24  ;;  %s166_s21 = sand.u32 (%p2033_p4), 1, %s1921_s15  }
  0x20   : > { %s1458_s28 = sshll.u32 (%p2033_p4), %s1937_s19, 2  ;;  %s1455_s29 = sshll.u32 (%p2033_p4), %s166_s21, 7 }
  0x21   : > { %s1491_s4 = sshll.u32 (%p2033_p4), %s53_s30, 5  ;;  %s168_s30 = scalar_lea.vmem (%p2033_p4), [#allocation4], %s1455_s29 }
  0x22   : > { %s176_s5 = sadd.s32 (%p2033_p4), %s1491_s4, %s1458_s28 }
  0x23   : > { %s1460_s25 = sshll.u32 (%p2033_p4), %s176_s5, 3 }
  0x24   : > { %s2066_s9 = scalar_lea.vmem (%p2033_p4), %s2632_s1, %s1460_s25 }
  0x25   : > { %v191_v0 = vld [vmem:[%s2066_s9] sm:$0xff] (%p2033_p4)  ;;  %v193_v1 = vld [vmem:[%s2066_s9 + $0x8] sm:$0xff] (%p2033_p4)  ;;  %v195_v2 = vld [vmem:[%s2066_s9 + $0x10] sm:$0xff] (%p2033_p4) }
  0x26   : > { %192 = vst [vmem:[%s168_s30] sm:$0xff] %v191_v0  ;;  %194 = vst [vmem:[%s168_s30 + $0x8] sm:$0xff] %v193_v1  ;;  %v197_v3 = vld [vmem:[%s2066_s9 + $0x18] sm:$0xff]  ;;  %v199_v4 = vld [vmem:[%s2066_s9 + $0x40] sm:$0xff] }
  0x27   : > { %196 = vst [vmem:[%s168_s30 + $0x10] sm:$0xff] %v195_v2  ;;  %v201_v5 = vld [vmem:[%s2066_s9 + $0x48] sm:$0xff]  ;;  %198 = vst [vmem:[%s168_s30 + $0x18] sm:$0xff] %v197_v3  ;;  %v203_v6 = vld [vmem:[%s2066_s9 + $0x50] sm:$0xff] }
  0x28   : > { %200 = vst [vmem:[%s168_s30 + $0x20] sm:$0xff] %v199_v4  ;;  %202 = vst [vmem:[%s168_s30 + $0x28] sm:$0xff] %v201_v5  ;;  %v205_v7 = vld [vmem:[%s2066_s9 + $0x58] sm:$0xff]  ;;  %v207_v8 = vld [vmem:[%s2066_s9 + $0x80] sm:$0xff] }
  0x29   : > { %204 = vst [vmem:[%s168_s30 + $0x30] sm:$0xff] %v203_v6  ;;  %206 = vst [vmem:[%s168_s30 + $0x38] sm:$0xff] %v205_v7  ;;  %v209_v9 = vld [vmem:[%s2066_s9 + $0x88] sm:$0xff]  ;;  %v211_v10 = vld [vmem:[%s2066_s9 + $0x90] sm:$0xff] }
  0x2a   : > { %208 = vst [vmem:[%s168_s30 + $0x40] sm:$0xff] %v207_v8  ;;  %v213_v11 = vld [vmem:[%s2066_s9 + $0x98] sm:$0xff]  ;;  %210 = vst [vmem:[%s168_s30 + $0x48] sm:$0xff] %v209_v9  ;;  %v215_v12 = vld [vmem:[%s2066_s9 + $0xc0] sm:$0xff] }
  0x2b   : > { %212 = vst [vmem:[%s168_s30 + $0x50] sm:$0xff] %v211_v10  ;;  %214 = vst [vmem:[%s168_s30 + $0x58] sm:$0xff] %v213_v11  ;;  %v217_v13 = vld [vmem:[%s2066_s9 + $0xc8] sm:$0xff]  ;;  %v219_v14 = vld [vmem:[%s2066_s9 + $0xd0] sm:$0xff] }
  0x2c   : > { %216 = vst [vmem:[%s168_s30 + $0x60] sm:$0xff] %v215_v12  ;;  %218 = vst [vmem:[%s168_s30 + $0x68] sm:$0xff] %v217_v13  ;;  %v221_v15 = vld [vmem:[%s2066_s9 + $0xd8] sm:$0xff] }
  0x2d   : > { %220 = vst [vmem:[%s168_s30 + $0x70] sm:$0xff] %v219_v14  ;;  %222 = vst [vmem:[%s168_s30 + $0x78] sm:$0xff] %v221_v15 }
  0x2e PF: > { %228 = sbr.rel (!%p2041_p9) target bundleno = 82 (0x52), region = 47  ;;  %s230_s6 = sand.u32 (%p2041_p9), 1, %s1913_s13  }
  0x2f   : > { %s1492_s10 = sshll.u32 (%p2041_p9), %s1937_s19, 5  ;;  %s1461_s21 = sshll.u32 (%p2041_p9), %s230_s6, 9 }
  0x30   : > { %s2091_s4 = scalar_lea.vmem (%p2041_p9), %s2633_s2, %s1492_s10  ;;  %s2096_s11 = scalar_lea.vmem (%p2041_p9), [#allocation5], %s1461_s21 }
  0x31   : > { %v248_v16 = vld [vmem:[%s2091_s4] sm:$0xff] (%p2041_p9)  ;;  %v250_v17 = vld [vmem:[%s2091_s4 + $0x8] sm:$0xff] (%p2041_p9)  ;;  %v252_v18 = vld [vmem:[%s2091_s4 + $0x10] sm:$0xff] (%p2041_p9) }
  0x32   : > { %249 = vst [vmem:[%s2096_s11] sm:$0xff] (%p2041_p9), %v248_v16  ;;  %251 = vst [vmem:[%s2096_s11 + $0x8] sm:$0xff] (%p2041_p9), %v250_v17  ;;  %v254_v19 = vld [vmem:[%s2091_s4 + $0x18] sm:$0xff] (%p2041_p9)  ;;  %v256_v20 = vld [vmem:[%s2091_s4 + $0x40] sm:$0xff] (%p2041_p9) }
  0x33   : > { %253 = vst [vmem:[%s2096_s11 + $0x10] sm:$0xff] (%p2041_p9), %v252_v18  ;;  %v258_v21 = vld [vmem:[%s2091_s4 + $0x48] sm:$0xff] (%p2041_p9)  ;;  %255 = vst [vmem:[%s2096_s11 + $0x18] sm:$0xff] (%p2041_p9), %v254_v19  ;;  %v260_v22 = vld [vmem:[%s2091_s4 + $0x50] sm:$0xff] (%p2041_p9) }
  0x34   : > { %257 = vst [vmem:[%s2096_s11 + $0x20] sm:$0xff] (%p2041_p9), %v256_v20  ;;  %259 = vst [vmem:[%s2096_s11 + $0x28] sm:$0xff] (%p2041_p9), %v258_v21  ;;  %v262_v23 = vld [vmem:[%s2091_s4 + $0x58] sm:$0xff] (%p2041_p9)  ;;  %v264_v24 = vld [vmem:[%s2091_s4 + $0x80] sm:$0xff] (%p2041_p9) }
  0x35   : > { %261 = vst [vmem:[%s2096_s11 + $0x30] sm:$0xff] %v260_v22  ;;  %263 = vst [vmem:[%s2096_s11 + $0x38] sm:$0xff] %v262_v23  ;;  %v266_v25 = vld [vmem:[%s2091_s4 + $0x88] sm:$0xff]  ;;  %v268_v26 = vld [vmem:[%s2091_s4 + $0x90] sm:$0xff] }
  0x36   : > { %265 = vst [vmem:[%s2096_s11 + $0x40] sm:$0xff] %v264_v24  ;;  %v270_v27 = vld [vmem:[%s2091_s4 + $0x98] sm:$0xff]  ;;  %267 = vst [vmem:[%s2096_s11 + $0x48] sm:$0xff] %v266_v25  ;;  %v272_v28 = vld [vmem:[%s2091_s4 + $0xc0] sm:$0xff] }
  0x37   : > { %269 = vst [vmem:[%s2096_s11 + $0x50] sm:$0xff] %v268_v26  ;;  %271 = vst [vmem:[%s2096_s11 + $0x58] sm:$0xff] %v270_v27  ;;  %v274_v29 = vld [vmem:[%s2091_s4 + $0xc8] sm:$0xff]  ;;  %v276_v30 = vld [vmem:[%s2091_s4 + $0xd0] sm:$0xff] }
  0x38   : > { %273 = vst [vmem:[%s2096_s11 + $0x60] sm:$0xff] %v272_v28  ;;  %275 = vst [vmem:[%s2096_s11 + $0x68] sm:$0xff] %v274_v29  ;;  %v278_v31 = vld [vmem:[%s2091_s4 + $0xd8] sm:$0xff]  ;;  %v280_v32 = vld [vmem:[%s2091_s4 + $0x100] sm:$0xff] }
  0x39   : > { %277 = vst [vmem:[%s2096_s11 + $0x70] sm:$0xff] %v276_v30  ;;  %v282_v33 = vld [vmem:[%s2091_s4 + $0x108] sm:$0xff]  ;;  %279 = vst [vmem:[%s2096_s11 + $0x78] sm:$0xff] %v278_v31  ;;  %v284_v34 = vld [vmem:[%s2091_s4 + $0x110] sm:$0xff] }
  0x3a   : > { %281 = vst [vmem:[%s2096_s11 + $0x80] sm:$0xff] %v280_v32  ;;  %283 = vst [vmem:[%s2096_s11 + $0x88] sm:$0xff] %v282_v33  ;;  %v286_v35 = vld [vmem:[%s2091_s4 + $0x118] sm:$0xff]  ;;  %v288_v36 = vld [vmem:[%s2091_s4 + $0x140] sm:$0xff] }
  0x3b   : > { %285 = vst [vmem:[%s2096_s11 + $0x90] sm:$0xff] %v284_v34  ;;  %287 = vst [vmem:[%s2096_s11 + $0x98] sm:$0xff] %v286_v35  ;;  %v290_v37 = vld [vmem:[%s2091_s4 + $0x148] sm:$0xff]  ;;  %v292_v38 = vld [vmem:[%s2091_s4 + $0x150] sm:$0xff] }
  0x3c   : > { %289 = vst [vmem:[%s2096_s11 + $0xa0] sm:$0xff] %v288_v36  ;;  %v294_v39 = vld [vmem:[%s2091_s4 + $0x158] sm:$0xff]  ;;  %291 = vst [vmem:[%s2096_s11 + $0xa8] sm:$0xff] %v290_v37  ;;  %v296_v40 = vld [vmem:[%s2091_s4 + $0x180] sm:$0xff] }
  0x3d   : > { %293 = vst [vmem:[%s2096_s11 + $0xb0] sm:$0xff] %v292_v38  ;;  %295 = vst [vmem:[%s2096_s11 + $0xb8] sm:$0xff] %v294_v39  ;;  %v298_v41 = vld [vmem:[%s2091_s4 + $0x188] sm:$0xff]  ;;  %v300_v42 = vld [vmem:[%s2091_s4 + $0x190] sm:$0xff] }
  0x3e   : > { %297 = vst [vmem:[%s2096_s11 + $0xc0] sm:$0xff] %v296_v40  ;;  %299 = vst [vmem:[%s2096_s11 + $0xc8] sm:$0xff] %v298_v41  ;;  %v302_v43 = vld [vmem:[%s2091_s4 + $0x198] sm:$0xff]  ;;  %v304_v44 = vld [vmem:[%s2091_s4 + $0x1c0] sm:$0xff] }
  0x3f   : > { %301 = vst [vmem:[%s2096_s11 + $0xd0] sm:$0xff] %v300_v42  ;;  %v306_v45 = vld [vmem:[%s2091_s4 + $0x1c8] sm:$0xff]  ;;  %303 = vst [vmem:[%s2096_s11 + $0xd8] sm:$0xff] %v302_v43  ;;  %v308_v46 = vld [vmem:[%s2091_s4 + $0x1d0] sm:$0xff] }
  0x40   : > { %305 = vst [vmem:[%s2096_s11 + $0xe0] sm:$0xff] %v304_v44  ;;  %307 = vst [vmem:[%s2096_s11 + $0xe8] sm:$0xff] %v306_v45  ;;  %v310_v47 = vld [vmem:[%s2091_s4 + $0x1d8] sm:$0xff]  ;;  %v312_v48 = vld [vmem:[%s2091_s4 + $0x200] sm:$0xff] }
  0x41   : > { %309 = vst [vmem:[%s2096_s11 + $0xf0] sm:$0xff] %v308_v46  ;;  %311 = vst [vmem:[%s2096_s11 + $0xf8] sm:$0xff] %v310_v47  ;;  %v314_v49 = vld [vmem:[%s2091_s4 + $0x208] sm:$0xff]  ;;  %v316_v50 = vld [vmem:[%s2091_s4 + $0x210] sm:$0xff] }
  0x42   : > { %313 = vst [vmem:[%s2096_s11 + $0x100] sm:$0xff] %v312_v48  ;;  %v318_v51 = vld [vmem:[%s2091_s4 + $0x218] sm:$0xff]  ;;  %315 = vst [vmem:[%s2096_s11 + $0x108] sm:$0xff] %v314_v49  ;;  %v320_v52 = vld [vmem:[%s2091_s4 + $0x240] sm:$0xff] }
  0x43   : > { %317 = vst [vmem:[%s2096_s11 + $0x110] sm:$0xff] %v316_v50  ;;  %319 = vst [vmem:[%s2096_s11 + $0x118] sm:$0xff] %v318_v51  ;;  %v322_v53 = vld [vmem:[%s2091_s4 + $0x248] sm:$0xff]  ;;  %v324_v54 = vld [vmem:[%s2091_s4 + $0x250] sm:$0xff] }
  0x44   : > { %321 = vst [vmem:[%s2096_s11 + $0x120] sm:$0xff] %v320_v52  ;;  %323 = vst [vmem:[%s2096_s11 + $0x128] sm:$0xff] %v322_v53  ;;  %v326_v55 = vld [vmem:[%s2091_s4 + $0x258] sm:$0xff]  ;;  %v328_v56 = vld [vmem:[%s2091_s4 + $0x280] sm:$0xff] }
  0x45   : > { %325 = vst [vmem:[%s2096_s11 + $0x130] sm:$0xff] %v324_v54  ;;  %v330_v57 = vld [vmem:[%s2091_s4 + $0x288] sm:$0xff]  ;;  %327 = vst [vmem:[%s2096_s11 + $0x138] sm:$0xff] %v326_v55  ;;  %v332_v58 = vld [vmem:[%s2091_s4 + $0x290] sm:$0xff] }
  0x46   : > { %329 = vst [vmem:[%s2096_s11 + $0x140] sm:$0xff] %v328_v56  ;;  %331 = vst [vmem:[%s2096_s11 + $0x148] sm:$0xff] %v330_v57  ;;  %v334_v59 = vld [vmem:[%s2091_s4 + $0x298] sm:$0xff]  ;;  %v336_v60 = vld [vmem:[%s2091_s4 + $0x2c0] sm:$0xff] }
  0x47   : > { %333 = vst [vmem:[%s2096_s11 + $0x150] sm:$0xff] %v332_v58  ;;  %335 = vst [vmem:[%s2096_s11 + $0x158] sm:$0xff] %v334_v59  ;;  %v338_v61 = vld [vmem:[%s2091_s4 + $0x2c8] sm:$0xff]  ;;  %v340_v62 = vld [vmem:[%s2091_s4 + $0x2d0] sm:$0xff] }
  0x48   : > { %337 = vst [vmem:[%s2096_s11 + $0x160] sm:$0xff] %v336_v60  ;;  %v342_v63 = vld [vmem:[%s2091_s4 + $0x2d8] sm:$0xff]  ;;  %339 = vst [vmem:[%s2096_s11 + $0x168] sm:$0xff] %v338_v61  ;;  %v344_v0 = vld [vmem:[%s2091_s4 + $0x300] sm:$0xff] }
  0x49   : > { %341 = vst [vmem:[%s2096_s11 + $0x170] sm:$0xff] %v340_v62  ;;  %343 = vst [vmem:[%s2096_s11 + $0x178] sm:$0xff] %v342_v63  ;;  %v346_v1 = vld [vmem:[%s2091_s4 + $0x308] sm:$0xff]  ;;  %v348_v2 = vld [vmem:[%s2091_s4 + $0x310] sm:$0xff] }
  0x4a   : > { %345 = vst [vmem:[%s2096_s11 + $0x180] sm:$0xff] %v344_v0  ;;  %347 = vst [vmem:[%s2096_s11 + $0x188] sm:$0xff] %v346_v1  ;;  %v350_v3 = vld [vmem:[%s2091_s4 + $0x318] sm:$0xff]  ;;  %v352_v4 = vld [vmem:[%s2091_s4 + $0x340] sm:$0xff] }
  0x4b   : > { %349 = vst [vmem:[%s2096_s11 + $0x190] sm:$0xff] %v348_v2  ;;  %v354_v5 = vld [vmem:[%s2091_s4 + $0x348] sm:$0xff]  ;;  %351 = vst [vmem:[%s2096_s11 + $0x198] sm:$0xff] %v350_v3  ;;  %v356_v6 = vld [vmem:[%s2091_s4 + $0x350] sm:$0xff] }
  0x4c   : > { %353 = vst [vmem:[%s2096_s11 + $0x1a0] sm:$0xff] %v352_v4  ;;  %355 = vst [vmem:[%s2096_s11 + $0x1a8] sm:$0xff] %v354_v5  ;;  %v358_v7 = vld [vmem:[%s2091_s4 + $0x358] sm:$0xff]  ;;  %v360_v8 = vld [vmem:[%s2091_s4 + $0x380] sm:$0xff] }
  0x4d   : > { %357 = vst [vmem:[%s2096_s11 + $0x1b0] sm:$0xff] %v356_v6  ;;  %359 = vst [vmem:[%s2096_s11 + $0x1b8] sm:$0xff] %v358_v7  ;;  %v362_v9 = vld [vmem:[%s2091_s4 + $0x388] sm:$0xff]  ;;  %v364_v10 = vld [vmem:[%s2091_s4 + $0x390] sm:$0xff] }
  0x4e   : > { %361 = vst [vmem:[%s2096_s11 + $0x1c0] sm:$0xff] %v360_v8  ;;  %v366_v11 = vld [vmem:[%s2091_s4 + $0x398] sm:$0xff]  ;;  %363 = vst [vmem:[%s2096_s11 + $0x1c8] sm:$0xff] %v362_v9  ;;  %v368_v12 = vld [vmem:[%s2091_s4 + $0x3c0] sm:$0xff] }
  0x4f   : > { %365 = vst [vmem:[%s2096_s11 + $0x1d0] sm:$0xff] %v364_v10  ;;  %367 = vst [vmem:[%s2096_s11 + $0x1d8] sm:$0xff] %v366_v11  ;;  %v370_v13 = vld [vmem:[%s2091_s4 + $0x3c8] sm:$0xff]  ;;  %v372_v14 = vld [vmem:[%s2091_s4 + $0x3d0] sm:$0xff] }
  0x50   : > { %369 = vst [vmem:[%s2096_s11 + $0x1e0] sm:$0xff] %v368_v12  ;;  %371 = vst [vmem:[%s2096_s11 + $0x1e8] sm:$0xff] %v370_v13  ;;  %v374_v15 = vld [vmem:[%s2091_s4 + $0x3d8] sm:$0xff] }
  0x51   : > { %373 = vst [vmem:[%s2096_s11 + $0x1f0] sm:$0xff] %v372_v14  ;;  %375 = vst [vmem:[%s2096_s11 + $0x1f8] sm:$0xff] %v374_v15 }
  0x52 PF: > { %p1464_p12 = scmp.ge.s32.totalorder %s1941_s20, 1  ;;  %p380_p13 = scmp.lt.s32.totalorder %s1941_s20, 5 }
  0x54   : > { %p381_p0 = pnand %p1464_p12, %p380_p13 }
  0x55   : > { %s387_s5 = sand.u32 (!%p381_p0), 1, %s1917_s14   ;;  %s394_s25 = sand.u32 (!%p381_p0), 1, %s1909_s12  }
  0x56   : > { %384 = sbr.rel (%p381_p0) target bundleno = 1146 (0x47a), region = 70  ;;  %s1465_s7 = sshll.u32 (!%p381_p0), %s387_s5, 7 }
  0x57   : > { %s1466_s8 = sshll.u32 (!%p381_p0), %s394_s25, 9  ;;  %s1467_s9 = sshll.u32 (!%p381_p0), %s387_s5, 5 }
  0x58   : > { %s2227_s30 = scalar_lea.vmem (!%p381_p0), [#allocation4], %s1465_s7  ;;  %s2229_s6 = scalar_lea.vmem (!%p381_p0), [#allocation5], %s1466_s8 }
  0x59   : > { %s2231_s10 = scalar_lea.vmem (!%p381_p0), [#allocation6], %s1467_s9  ;;  %p1468_p1 = scmp.ne.s32.totalorder (!%p381_p0), %s1925_s16, 0 }
  0x5d   : > { %435 = sbr.rel (%p1468_p1) target bundleno = 100 (0x64), region = 82  ;;  %v1943_v16 = vmov (!%p1468_p1), 0.0  }
  0x5e   : > { %436 = vst [vmem:[#allocation2] sm:$0xff] (!%p1468_p1), %v1943_v16  ;;  %437 = vst [vmem:[#allocation3] sm:$0xff] (!%p1468_p1), %v1943_v16 }
  0x64 PF: > { %v440_v17 = vld [vmem:[%s2229_s6 + $0x8] sm:$0xff]  ;;  %v439_v19 = vld [vmem:[%s2229_s6] sm:$0xff]  ;;  %v1944_v24 = vmov 0.0   ;;  %v442_v29 = vld [vmem:[%s2229_s6 + $0x18] sm:$0xff]  ;;  %v1945_v30 = vmov 0   ;;  %s2274_s12 = sshll.u32 %s1925_s16, 2 }
  0x65   : > { %v444_v18 = vld [vmem:[%s2229_s6 + $0x28] sm:$0xff]  ;;  %v443_v21 = vld [vmem:[%s2229_s6 + $0x20] sm:$0xff]  ;;  %583 = vmatprep.mubr.f32.mxu0 %v1944_v24  ;;  %654 = vmatprep.mubr.f32.mxu1 %v1944_v24  ;;  %v446_v31 = vld [vmem:[%s2229_s6 + $0x38] sm:$0xff]  ;;  %s2287_s14 = ssub.s32 1, %s1929_s17  ;;  %s508_s21 = ssub.s32 7, %s2274_s12 }
  0x66   : > { %v2237_v20 = vpack.c.bf16 %v444_v18, %v440_v17  ;;  %v448_v22 = vld [vmem:[%s2229_s6 + $0x48] sm:$0xff]  ;;  %v2244_v25 = vpack.c.bf16 %v443_v21, %v439_v19  ;;  %v447_v27 = vld [vmem:[%s2229_s6 + $0x40] sm:$0xff]  ;;  %1829 = vset.pattern.permute.xlu0 %v1945_v30  ;;  %1830 = vset.pattern.permute.xlu1 %v1945_v30  ;;  %v441_v32 = vld [vmem:[%s2229_s6 + $0x10] sm:$0xff]  ;;  %v2260_v35 = vpack.c.bf16 %v446_v31, %v442_v29  ;;  %s696_s28 = sadd.s32 1, %s2274_s12  ;;  %s507_s29 = smul.u32 %s2274_s12, %s2287_s14 }
  0x67   : > { %v452_v23 = vld [vmem:[%s2229_s6 + $0x68] sm:$0xff]  ;;  %v451_v28 = vld [vmem:[%s2229_s6 + $0x60] sm:$0xff]  ;;  %v445_v33 = vld [vmem:[%s2229_s6 + $0x30] sm:$0xff]  ;;  %s698_s4 = ssub.s32 6, %s2274_s12  ;;  %s509_s11 = smul.u32 %s1929_s17, %s508_s21 }
  0x68   : > { %v2246_v26 = vpack.c.bf16 %v452_v23, %v448_v22  ;;  %1499 = vmatprep.subr.bf16.mxu0 %v2237_v20  ;;  %v2258_v34 = vpack.c.bf16 %v451_v28, %v447_v27  ;;  %v2262_v36 = vpack.c.bf16 %v445_v33, %v441_v32  ;;  %v456_v37 = vld [vmem:[%s2229_s6 + $0x88] sm:$0xff]  ;;  %v455_v39 = vld [vmem:[%s2229_s6 + $0x80] sm:$0xff]  ;;  %v450_v42 = vld [vmem:[%s2229_s6 + $0x58] sm:$0xff]  ;;  %1531 = vmatprep.subr.bf16.mxu1 %v2260_v35  ;;  %s2327_s5 = smul.u32 %s696_s28, %s2287_s14  ;;  %s1080_s9 = ssub.s32 4, %s2274_s12 }
  0x69   : > { %1501 = vmatpush1.bf16.msra.mxu0 %v2244_v25  ;;  %v460_v38 = vld [vmem:[%s2229_s6 + $0xa8] sm:$0xff]  ;;  %v459_v41 = vld [vmem:[%s2229_s6 + $0xa0] sm:$0xff]  ;;  %v454_v43 = vld [vmem:[%s2229_s6 + $0x78] sm:$0xff]  ;;  %s2336_s25 = smul.u32 %s1929_s17, %s698_s4  ;;  %s510_s7 = sadd.s32 %s509_s11, %s507_s29 }
  0x6a   : > { %1503 = vmatprep.subr.bf16.mxu0 %v2246_v26  ;;  %v2268_v40 = vpack.c.bf16 %v460_v38, %v456_v37  ;;  %v2277_v44 = vpack.c.bf16 %v454_v43, %v450_v42  ;;  %v449_v45 = vld [vmem:[%s2229_s6 + $0x50] sm:$0xff]  ;;  %v464_v47 = vld [vmem:[%s2229_s6 + $0xc8] sm:$0xff]  ;;  %1533 = vmatpush1.bf16.msra.mxu1 %v2262_v36  ;;  %v2290_v50 = vpack.c.bf16 %v459_v41, %v455_v39  ;;  %v458_v51 = vld [vmem:[%s2229_s6 + $0x98] sm:$0xff]  ;;  %v683_v29 = vstv %s510_s7  ;;  %s1472_s29 = smul.u32 24, %s1929_s17  ;;  %s887_s11 = sadd.s32 2, %s2274_s12 }
  0x6b   : > { %v453_v46 = vld [vmem:[%s2229_s6 + $0x70] sm:$0xff]  ;;  %v468_v49 = vld [vmem:[%s2229_s6 + $0xe8] sm:$0xff]  ;;  %v462_v52 = vld [vmem:[%s2229_s6 + $0xb8] sm:$0xff]  ;;  %s700_s8 = sadd.s32 %s2336_s25, %s2327_s5  ;;  %s889_s5 = ssub.s32 5, %s2274_s12 }
  0x6c   : > { %v2283_v48 = vpack.c.bf16 %v453_v46, %v449_v45  ;;  %1535 = vmatprep.subr.bf16.mxu1 %v2277_v44  ;;  %v457_v53 = vld [vmem:[%s2229_s6 + $0x90] sm:$0xff]  ;;  %v2298_v54 = vpack.c.bf16 %v468_v49, %v464_v47  ;;  %v463_v55 = vld [vmem:[%s2229_s6 + $0xc0] sm:$0xff]  ;;  %v2302_v57 = vpack.c.bf16 %v462_v52, %v458_v51  ;;  %v472_v59 = vld [vmem:[%s2229_s6 + $0x108] sm:$0xff]  ;;  %v874_v39 = vstv %s700_s8  ;;  %s694_s4 = scalar_lea.vmem %s2231_s10, %s1472_s29 [#allocation6]  ;;  %s888_s25 = smul.u32 %s887_s11, %s2287_s14 }
  0x6d   : > { %1505 = vmatpush1.bf16.msra.mxu0 %v2258_v34  ;;  %v467_v56 = vld [vmem:[%s2229_s6 + $0xe0] sm:$0xff]  ;;  %v461_v58 = vld [vmem:[%s2229_s6 + $0xb0] sm:$0xff]  ;;  %v476_v60 = vld [vmem:[%s2229_s6 + $0x128] sm:$0xff]  ;;  %s1078_s7 = sadd.s32 3, %s2274_s12  ;;  %s890_s8 = smul.u32 %s1929_s17, %s889_s5 }
  0x6e   : > { %1507 = vmatprep.subr.bf16.mxu0 %v2268_v40  ;;  %v466_v61 = vld [vmem:[%s2229_s6 + $0xd8] sm:$0xff]  ;;  %1537 = vmatpush1.bf16.msra.mxu1 %v2283_v48  ;;  %v2313_v62 = vpack.c.bf16 %v461_v58, %v457_v53  ;;  %v2318_v0 = vpack.c.bf16 %v467_v56, %v463_v55  ;;  %v471_v1 = vld [vmem:[%s2229_s6 + $0x100] sm:$0xff]  ;;  %v465_v3 = vld [vmem:[%s2229_s6 + $0xd0] sm:$0xff]  ;;  %v2330_v5 = vpack.c.bf16 %v476_v60, %v472_v59  ;;  %s1079_s21 = smul.u32 %s1078_s7, %s2287_s14 }
  0x6f   : > { %v470_v63 = vld [vmem:[%s2229_s6 + $0xf8] sm:$0xff]  ;;  %1539 = vmatprep.subr.bf16.mxu1 %v2302_v57  ;;  %v469_v4 = vld [vmem:[%s2229_s6 + $0xf0] sm:$0xff]  ;;  %v475_v6 = vld [vmem:[%s2229_s6 + $0x120] sm:$0xff] }
  0x70   : > { %v2322_v2 = vpack.c.bf16 %v470_v63, %v466_v61  ;;  %v474_v7 = vld [vmem:[%s2229_s6 + $0x118] sm:$0xff]  ;;  %v480_v9 = vld [vmem:[%s2229_s6 + $0x148] sm:$0xff]  ;;  %v2341_v11 = vpack.c.bf16 %v469_v4, %v465_v3  ;;  %v2344_v12 = vpack.c.bf16 %v475_v6, %v471_v1  ;;  %v479_v13 = vld [vmem:[%s2229_s6 + $0x140] sm:$0xff] }
  0x71   : > { %1509 = vmatpush1.bf16.msra.mxu0 %v2290_v50  ;;  %v478_v8 = vld [vmem:[%s2229_s6 + $0x138] sm:$0xff]  ;;  %v484_v10 = vld [vmem:[%s2229_s6 + $0x168] sm:$0xff]  ;;  %v473_v15 = vld [vmem:[%s2229_s6 + $0x110] sm:$0xff] }
  0x72   : > { %1511 = vmatprep.subr.bf16.mxu0 %v2298_v54  ;;  %1541 = vmatpush1.bf16.msra.mxu1 %v2313_v62  ;;  %v2348_v14 = vpack.c.bf16 %v478_v8, %v474_v7  ;;  %v477_v16 = vld [vmem:[%s2229_s6 + $0x130] sm:$0xff]  ;;  %v2356_v17 = vpack.c.bf16 %v484_v10, %v480_v9  ;;  %v483_v18 = vld [vmem:[%s2229_s6 + $0x160] sm:$0xff]  ;;  %v482_v19 = vld [vmem:[%s2229_s6 + $0x158] sm:$0xff] }
  0x73   : > { %1543 = vmatprep.subr.bf16.mxu1 %v2322_v2  ;;  %v486_v21 = vld [vmem:[%s2229_s6 + $0x178] sm:$0xff]  ;;  %v488_v22 = vld [vmem:[%s2229_s6 + $0x188] sm:$0xff]  ;;  %v2366_v27 = vpack.c.bf16 %v477_v16, %v473_v15  ;;  %v487_v28 = vld [vmem:[%s2229_s6 + $0x180] sm:$0xff]  ;;  %v2370_v31 = vpack.c.bf16 %v483_v18, %v479_v13 }
  0x74   : > { %v492_v23 = vld [vmem:[%s2229_s6 + $0x1a8] sm:$0xff]  ;;  %v491_v32 = vld [vmem:[%s2229_s6 + $0x1a0] sm:$0xff]  ;;  %v2374_v33 = vpack.c.bf16 %v486_v21, %v482_v19  ;;  %v481_v37 = vld [vmem:[%s2229_s6 + $0x150] sm:$0xff] }
  0x75   : > { %1513 = vmatpush1.bf16.msra.mxu0 %v2318_v0  ;;  %v485_v38 = vld [vmem:[%s2229_s6 + $0x170] sm:$0xff]  ;;  %v2379_v41 = vpack.c.bf16 %v492_v23, %v488_v22  ;;  %v490_v42 = vld [vmem:[%s2229_s6 + $0x198] sm:$0xff]  ;;  %v496_v46 = vld [vmem:[%s2229_s6 + $0x1c8] sm:$0xff]  ;;  %v2397_v52 = vpack.c.bf16 %v491_v32, %v487_v28 }
  0x76   : > { %1515 = vmatprep.subr.bf16.mxu0 %v2330_v5  ;;  %1545 = vmatpush1.bf16.msra.mxu1 %v2341_v11  ;;  %v494_v43 = vld [vmem:[%s2229_s6 + $0x1b8] sm:$0xff]  ;;  %v2386_v45 = vld [vmem:[%s2631_s0] sm:$0xff]  ;;  %v500_v47 = vld [vmem:[%s2229_s6 + $0x1e8] sm:$0xff]  ;;  %v2392_v49 = vpack.c.bf16 %v485_v38, %v481_v37 }
  0x77   : > { %1547 = vmatprep.subr.bf16.mxu1 %v2348_v14  ;;  %vm684_vm0 = vcmp.lt.s32.totalorder %v683_v29, %v2386_v45  ;;  %vm875_vm1 = vcmp.lt.s32.totalorder %v874_v39, %v2386_v45  ;;  %v495_v53 = vld [vmem:[%s2229_s6 + $0x1c0] sm:$0xff]  ;;  %v2401_v55 = vpack.c.bf16 %v494_v43, %v490_v42  ;;  %v489_v56 = vld [vmem:[%s2229_s6 + $0x190] sm:$0xff]  ;;  %v2406_v59 = vpack.c.bf16 %v500_v47, %v496_v46  ;;  %v498_v61 = vld [vmem:[%s2229_s6 + $0x1d8] sm:$0xff] }
  0x78   : > { %v685_v51 = vsel %vm684_vm0, 1, %v1945_v30  ;;  %v493_v58 = vld [vmem:[%s2229_s6 + $0x1b0] sm:$0xff]  ;;  %v499_v60 = vld [vmem:[%s2229_s6 + $0x1e0] sm:$0xff]  ;;  %v502_v63 = vld [vmem:[%s2229_s6 + $0x1f8] sm:$0xff]  ;;  %v876_v1 = vsel %vm875_vm1, 1, %v1945_v30 }
  0x79   : > { %1517 = vmatpush1.bf16.msra.mxu0 %v2344_v12  ;;  %687 = vperm.xlu0 %1829, %v685_v51   ;;  %v2413_v3 = vpack.c.bf16 %v493_v58, %v489_v56  ;;  %v2416_v4 = vpack.c.bf16 %v499_v60, %v495_v53  ;;  %v2419_v6 = vpack.c.bf16 %v502_v63, %v498_v61  ;;  %v497_v7 = vld [vmem:[%s2229_s6 + $0x1d0] sm:$0xff]  ;;  %v505_v58 = vld [vmem:[#allocation3] sm:$0xff] }
  0x7a   : > { %1519 = vmatprep.subr.bf16.mxu0 %v2356_v17  ;;  %1549 = vmatpush1.bf16.msra.mxu1 %v2366_v27  ;;  %v501_v8 = vld [vmem:[%s2229_s6 + $0x1f0] sm:$0xff]  ;;  %s1493_s6 = smul.u32 96, %s1929_s17 }
  0x7b   : > { %1551 = vmatprep.subr.bf16.mxu1 %v2374_v33  ;;  %v2425_v9 = vpack.c.bf16 %v501_v8, %v497_v7  ;;  %v2428_v10 = vld [vmem:[#allocation2] sm:$0xff] }
  0x7c   : > { %s514_s28 = scalar_lea.vmem %s2227_s30, %s1493_s6 [#allocation4]  ;;  %s891_s6 = sadd.s32 %s890_s8, %s888_s25 }
  0x7d   : > { %1521 = vmatpush1.bf16.msra.mxu0 %v2370_v31  ;;  %878 = vperm.xlu0 %1829, %v876_v1   ;;  %v515_v13 = vld [vmem:[%s514_s28] sm:$0xff]  ;;  %v516_v15 = vld [vmem:[%s514_s28 + $0x8] sm:$0xff]  ;;  %v518_v22 = vld [vmem:[%s514_s28 + $0x18] sm:$0xff]  ;;  %s1477_s8 = sshll.u32 %s2287_s14, 1 }
  0x7e   : > { %1523 = vmatprep.subr.bf16.mxu0 %v2379_v41  ;;  %1553 = vmatpush1.bf16.msra.mxu1 %v2392_v49  ;;  %v517_v38 = vld [vmem:[%s514_s28 + $0x10] sm:$0xff]  ;;  %s1081_s28 = smul.u32 %s1929_s17, %s1080_s9  ;;  %s2578_s9 = sadd.s32 %s1929_s17, %s1477_s8 }
  0x7f   : > { %1555 = vmatprep.subr.bf16.mxu1 %v2401_v55 }
  0x80   : > { %s1082_s29 = sadd.s32 %s1081_s28, %s1079_s21  ;;  %s1495_s21 = sshll.u32 %s2578_s9, 5 }
  0x81   : > { %1525 = vmatpush1.bf16.msra.mxu0 %v2397_v52  ;;  %s1480_s28 = sshll.u32 %s2578_s9, 3 }
  0x82   : > { %1527 = vmatprep.subr.bf16.mxu0 %v2406_v59  ;;  %1557 = vmatpush1.bf16.msra.mxu1 %v2413_v3 }
  0x83   : > { %1559 = vmatprep.subr.bf16.mxu1 %v2419_v6 }
  0x85   : > { %1529 = vmatpush1.bf16.msra.mxu0 %v2416_v4 }
  0x86   : > { %1563 = vmatprep.subr.bf16.mxu0 %v2237_v20  ;;  %1561 = vmatpush1.bf16.msra.mxu1 %v2425_v9 }
  0x87   : > { %1595 = vmatprep.subr.bf16.mxu1 %v2260_v35 }
  0x88   : > { %584 = vmatmul.mubr.f32.vlgmr.msra.gmra.mrb[0].mxu0 %v2428_v10 }
  0x89   : > { %1565 = vmatpush1.bf16.msra.mxu0 %v2244_v25  ;;  %774 = vmatprep.mubr.f32.mxu0 %v1944_v24 }
  0x8a   : > { %1567 = vmatprep.subr.bf16.mxu0 %v2246_v26  ;;  %655 = vmatmul.mubr.f32.vlgmr.msra.gmra.mrb[0].mxu1 %v2428_v10 }
  0x8b   : > { %1597 = vmatpush1.bf16.msra.mxu1 %v2262_v36  ;;  %845 = vmatprep.mubr.f32.mxu1 %v1944_v24 }
  0x8c   : > { %1599 = vmatprep.subr.bf16.mxu1 %v2277_v44 }
  0x8d   : > { %1569 = vmatpush1.bf16.msra.mxu0 %v2258_v34 }
  0x8e   : > { %1571 = vmatprep.subr.bf16.mxu0 %v2268_v40 }
  0x8f   : > { %1601 = vmatpush1.bf16.msra.mxu1 %v2283_v48 }
  0x90   : > { %1603 = vmatprep.subr.bf16.mxu1 %v2302_v57 }
  0x91   : > { %1573 = vmatpush1.bf16.msra.mxu0 %v2290_v50 }
  0x92   : > { %1575 = vmatprep.subr.bf16.mxu0 %v2298_v54 }
  0x93   : > { %1605 = vmatpush1.bf16.msra.mxu1 %v2313_v62 }
  0x94   : > { %1607 = vmatprep.subr.bf16.mxu1 %v2322_v2 }
  0x95   : > { %1577 = vmatpush1.bf16.msra.mxu0 %v2318_v0 }
  0x96   : > { %1579 = vmatprep.subr.bf16.mxu0 %v2330_v5 }
  0x97   : > { %1609 = vmatpush1.bf16.msra.mxu1 %v2341_v11 }
  0x98   : > { %1611 = vmatprep.subr.bf16.mxu1 %v2348_v14 }
  0x99   : > { %1581 = vmatpush1.bf16.msra.mxu0 %v2344_v12 }
  0x9a   : > { %1583 = vmatprep.subr.bf16.mxu0 %v2356_v17 }
  0x9b   : > { %1613 = vmatpush1.bf16.msra.mxu1 %v2366_v27 }
  0x9c   : > { %1615 = vmatprep.subr.bf16.mxu1 %v2374_v33 }
  0x9d   : > { %1585 = vmatpush1.bf16.msra.mxu0 %v2370_v31 }
  0x9e   : > { %1587 = vmatprep.subr.bf16.mxu0 %v2379_v41 }
  0x9f   : > { %1617 = vmatpush1.bf16.msra.mxu1 %v2392_v49 }
  0xa0   : > { %1619 = vmatprep.subr.bf16.mxu1 %v2401_v55 }
  0xa1   : > { %1589 = vmatpush1.bf16.msra.mxu0 %v2397_v52 }
  0xa2   : > { %1591 = vmatprep.subr.bf16.mxu0 %v2406_v59 }
  0xa3   : > { %1621 = vmatpush1.bf16.msra.mxu1 %v2413_v3 }
  0xa4   : > { %1623 = vmatprep.subr.bf16.mxu1 %v2419_v6 }
  0xa5   : > { %1593 = vmatpush1.bf16.msra.mxu0 %v2416_v4 }
  0xa6   : > { %1627 = vmatprep.subr.bf16.mxu0 %v2237_v20 }
  0xa7   : > { %1625 = vmatpush1.bf16.msra.mxu1 %v2425_v9 }
  0xa8   : > { %1659 = vmatprep.subr.bf16.mxu1 %v2260_v35 }
  0xf8   : > { %v688_v61 = vpop.permute.xlu0 %687 }
  0xf9   : > { %vm689_vm2 = vcmp.eq.s32.totalorder %v688_v61, 1 }
 0x15b   : > { %v585_v16 = vpop.f32.mrb[0].mxu0 }
 0x15c   : > { %v661_v18 = vadd.f32 %v585_v16, %v515_v13  ;;  %v587_v19 = vpop.f32.mrb[1].mxu0 }
 0x15d   : > { %v662_v21 = vadd.f32 %v587_v19, %v516_v15  ;;  %v656_v28 = vpop.f32.mrb[0].mxu1 }
 0x15e   : > { %v665_v23 = vmul.f32 0.5, %v661_v18  ;;  %v658_v32 = vpop.f32.mrb[1].mxu1  ;;  %v663_v39 = vadd.f32 %v656_v28, %v517_v38 }
 0x15f   : > { %v666_v29 = vmul.f32 0.5, %v662_v21  ;;  %v664_v37 = vadd.f32 %v658_v32, %v518_v22 }
 0x160   : > { %1831 = vtanh.f32 %v665_v23  ;;  %v667_v42 = vmul.f32 0.5, %v663_v39  ;;  %v1255_v23 = vstv %s1082_s29  ;;  %s1076_s29 = scalar_lea.vmem %s2231_s10, %s1480_s28 [#allocation6] }
 0x161   : > { %1833 = vtanh.f32 %v666_v29  ;;  %vm1256_vm4 = vcmp.lt.s32.totalorder %v1255_v23, %v2386_v45 }
 0x162   : > { %1835 = vtanh.f32 %v664_v37 }
 0x163   : > { %1837 = vtanh.f32 %v667_v42 }
 0x16a   : > { %v1832_v43 = vpop.eup %1831 }
 0x16b   : > { %v1834_v46 = vpop.eup %1833  ;;  %v671_v47 = vmul.f32 0.5, %v1832_v43 }
 0x16c   : > { %v1836_v51 = vpop.eup %1835  ;;  %v672_v53 = vmul.f32 0.5, %v1834_v46 }
 0x16d   : > { %v674_v56 = vadd.f32 0.5, %v671_v47  ;;  %v1838_v13 = vpop.eup %1837 }
 0x16e   : > { %v675_v60 = vadd.f32 0.5, %v672_v53  ;;  %v673_v15 = vmul.f32 0.5, %v1838_v13 }
 0x16f   : > { %v679_v63 = vmul.f32 %v1836_v51, %v674_v56 }
 0x170   : > { %v678_v1 = vmul.f32 %v675_v60, %v505_v58  ;;  %v676_v16 = vadd.f32 0.5, %v673_v15 }
 0x172   : > { %v680_v7 = vadd.f32 %v679_v63, %v678_v1 }
 0x174   : > { %1839 = vtanh.f32 %v680_v7  ;;  %v2472_v8 = vsel %vm689_vm2, %v680_v7, %v505_v58 }
 0x17e   : > { %v1840_v18 = vpop.eup %1839 }
 0x17f   : > { %v682_v19 = vmul.f32 %v1840_v18, %v676_v16  ;;  %v879_v16 = vpop.permute.xlu0 %878 }
 0x180   : > { %vm880_vm5 = vcmp.eq.s32.totalorder %v879_v16, 1 }
 0x181   : > { %v2477_v21 = vsel %vm689_vm2, %v682_v19, %v2428_v10  ;;  %v692_v22 = vsel %vm689_vm2, %v682_v19, 0.0  ;;  %v1065_v10 = vstv %s891_s6  ;;  %s896_s6 = scalar_lea.vmem %s2227_s30, %s1495_s21 [#allocation4] }
 0x182   : > { %695 = vst [vmem:[%s694_s4] sm:$0xff] %v692_v22  ;;  %775 = vmatmul.mubr.f32.vlgmr.msra.gmra.mrb[2].mxu0 %v2477_v21  ;;  %846 = vmatmul.mubr.f32.vlgmr.msra.gmra.mrb[2].mxu1 %v2477_v21  ;;  %vm1066_vm3 = vcmp.lt.s32.totalorder %v1065_v10, %v2386_v45  ;;  %s1473_s4 = sshll.u32 %s1929_s17, 1 }
 0x183   : > { %1629 = vmatpush1.bf16.msra.mxu0 %v2244_v25  ;;  %1661 = vmatpush1.bf16.msra.mxu1 %v2262_v36  ;;  %s2529_s11 = sadd.s32 %s1473_s4, %s2287_s14  ;;  %s1496_s4 = smul.u32 96, %s2287_s14 }
 0x184   : > { %1631 = vmatprep.subr.bf16.mxu0 %v2246_v26  ;;  %1663 = vmatprep.subr.bf16.mxu1 %v2277_v44  ;;  %s1494_s12 = sshll.u32 %s2529_s11, 5  ;;  %s1476_s25 = sshll.u32 %s2529_s11, 3 }
 0x185   : > { %965 = vmatprep.mubr.f32.mxu0 %v1944_v24  ;;  %1036 = vmatprep.mubr.f32.mxu1 %v1944_v24  ;;  %s705_s5 = scalar_lea.vmem %s2227_s30, %s1494_s12 [#allocation4]  ;;  %s885_s7 = scalar_lea.vmem %s2231_s10, %s1476_s25 [#allocation6] }
 0x186   : > { %v706_v28 = vld [vmem:[%s705_s5] sm:$0xff]  ;;  %v707_v29 = vld [vmem:[%s705_s5 + $0x8] sm:$0xff]  ;;  %v709_v46 = vld [vmem:[%s705_s5 + $0x18] sm:$0xff]  ;;  %s1086_s11 = scalar_lea.vmem %s2227_s30, %s1496_s4 [#allocation4]  ;;  %s1483_s30 = smul.u32 24, %s2287_s14 }
 0x187   : > { %1633 = vmatpush1.bf16.msra.mxu0 %v2258_v34  ;;  %1665 = vmatpush1.bf16.msra.mxu1 %v2283_v48  ;;  %v708_v51 = vld [vmem:[%s705_s5 + $0x10] sm:$0xff]  ;;  %s1485_s14 = sshll.u32 (%p2054_p10), %s1925_s16, 1 }
 0x188   : > { %1635 = vmatprep.subr.bf16.mxu0 %v2268_v40  ;;  %1667 = vmatprep.subr.bf16.mxu1 %v2302_v57  ;;  %s1266_s12 = scalar_lea.vmem %s2231_s10, %s1483_s30 [#allocation6]  ;;  %s1278_s5 = ssub.s32 (%p2054_p10), 1, %s1485_s14 }
 0x189   : > { %s1279_s25 = smul.u32 (%p2054_p10), %s1929_s17, %s1278_s5 }
 0x18b   : > { %1637 = vmatpush1.bf16.msra.mxu0 %v2290_v50  ;;  %1669 = vmatpush1.bf16.msra.mxu1 %v2313_v62 }
 0x18c   : > { %1639 = vmatprep.subr.bf16.mxu0 %v2298_v54  ;;  %1671 = vmatprep.subr.bf16.mxu1 %v2322_v2 }
 0x18f   : > { %1641 = vmatpush1.bf16.msra.mxu0 %v2318_v0  ;;  %1673 = vmatpush1.bf16.msra.mxu1 %v2341_v11 }
 0x190   : > { %1643 = vmatprep.subr.bf16.mxu0 %v2330_v5  ;;  %1675 = vmatprep.subr.bf16.mxu1 %v2348_v14 }
 0x193   : > { %1645 = vmatpush1.bf16.msra.mxu0 %v2344_v12  ;;  %1677 = vmatpush1.bf16.msra.mxu1 %v2366_v27 }
 0x194   : > { %1647 = vmatprep.subr.bf16.mxu0 %v2356_v17  ;;  %1679 = vmatprep.subr.bf16.mxu1 %v2374_v33 }
 0x197   : > { %1649 = vmatpush1.bf16.msra.mxu0 %v2370_v31  ;;  %1681 = vmatpush1.bf16.msra.mxu1 %v2392_v49 }
 0x198   : > { %1651 = vmatprep.subr.bf16.mxu0 %v2379_v41  ;;  %1683 = vmatprep.subr.bf16.mxu1 %v2401_v55 }
 0x19b   : > { %1653 = vmatpush1.bf16.msra.mxu0 %v2397_v52  ;;  %1685 = vmatpush1.bf16.msra.mxu1 %v2413_v3 }
 0x19c   : > { %1655 = vmatprep.subr.bf16.mxu0 %v2406_v59  ;;  %1687 = vmatprep.subr.bf16.mxu1 %v2419_v6 }
 0x19f   : > { %1657 = vmatpush1.bf16.msra.mxu0 %v2416_v4  ;;  %1689 = vmatpush1.bf16.msra.mxu1 %v2425_v9 }
 0x1a0   : > { %1691 = vmatprep.subr.bf16.mxu0 %v2237_v20  ;;  %1723 = vmatprep.subr.bf16.mxu1 %v2260_v35  ;;  %v1067_v20 = vsel %vm1066_vm3, 1, %v1945_v30  ;;  %v1257_v35 = vsel %vm1256_vm4, 1, %v1945_v30 }
 0x1a1   : > { %1069 = vperm.xlu1 %1830, %v1067_v20  }
 0x1a5   : > { %1259 = vperm.xlu1 %1830, %v1257_v35  }
 0x255   : > { %v776_v32 = vpop.f32.mrb[2].mxu0  ;;  %v847_v37 = vpop.f32.mrb[2].mxu1 }
 0x256   : > { %v852_v38 = vadd.f32 %v776_v32, %v706_v28  ;;  %v778_v39 = vpop.f32.mrb[3].mxu0  ;;  %v849_v42 = vpop.f32.mrb[3].mxu1  ;;  %v854_v53 = vadd.f32 %v847_v37, %v708_v51  ;;  %v1090_v51 = vld [vmem:[%s1086_s11 + $0x18] sm:$0xff] }
 0x257   : > { %v853_v43 = vadd.f32 %v778_v39, %v707_v29  ;;  %v855_v30 = vadd.f32 %v849_v42, %v709_v46  ;;  %v1088_v39 = vld [vmem:[%s1086_s11 + $0x8] sm:$0xff] }
 0x258   : > { %v856_v47 = vmul.f32 0.5, %v852_v38  ;;  %v858_v56 = vmul.f32 0.5, %v854_v53  ;;  %v1087_v38 = vld [vmem:[%s1086_s11] sm:$0xff] }
 0x259   : > { %v857_v45 = vmul.f32 0.5, %v853_v43 }
 0x25a   : > { %1841 = vtanh.f32 %v856_v47 }
 0x25b   : > { %1843 = vtanh.f32 %v857_v45 }
 0x25c   : > { %1845 = vtanh.f32 %v855_v30 }
 0x25d   : > { %1847 = vtanh.f32 %v858_v56 }
 0x264   : > { %v1842_v58 = vpop.eup %1841 }
 0x265   : > { %v862_v60 = vmul.f32 0.5, %v1842_v58  ;;  %v1844_v61 = vpop.eup %1843 }
 0x266   : > { %v863_v1 = vmul.f32 0.5, %v1844_v61  ;;  %v1846_v7 = vpop.eup %1845 }
 0x267   : > { %v865_v63 = vadd.f32 0.5, %v862_v60  ;;  %v1848_v10 = vpop.eup %1847  ;;  %v1089_v60 = vld [vmem:[%s1086_s11 + $0x10] sm:$0xff] }
 0x268   : > { %v866_v13 = vadd.f32 0.5, %v863_v1  ;;  %v864_v20 = vmul.f32 0.5, %v1848_v10 }
 0x269   : > { %v870_v15 = vmul.f32 %v1846_v7, %v865_v63 }
 0x26a   : > { %v869_v18 = vmul.f32 %v866_v13, %v2472_v8  ;;  %v867_v23 = vadd.f32 0.5, %v864_v20 }
 0x26c   : > { %v871_v19 = vadd.f32 %v870_v15, %v869_v18 }
 0x26e   : > { %1849 = vtanh.f32 %v871_v19  ;;  %v2535_v22 = vsel %vm880_vm5, %v871_v19, %v2472_v8 }
 0x278   : > { %v1850_v35 = vpop.eup %1849 }
 0x279   : > { %v873_v28 = vmul.f32 %v1850_v35, %v867_v23 }
 0x27b   : > { %v2540_v29 = vsel %vm880_vm5, %v873_v28, %v2477_v21  ;;  %v883_v32 = vsel %vm880_vm5, %v873_v28, 0.0 }
 0x27c   : > { %966 = vmatmul.mubr.f32.vlgmr.msra.gmra.mrb[4].mxu0 %v2540_v29  ;;  %886 = vst [vmem:[%s885_s7] sm:$0xff] %v883_v32  ;;  %1037 = vmatmul.mubr.f32.vlgmr.msra.gmra.mrb[4].mxu1 %v2540_v29  ;;  %s1280_s7 = sadd.s32 (%p2054_p10), %s1925_s16, %s1279_s25 }
 0x27d   : > { %1693 = vmatpush1.bf16.msra.mxu0 %v2244_v25  ;;  %1725 = vmatpush1.bf16.msra.mxu1 %v2262_v36  ;;  %v898_v25 = vld [vmem:[%s896_s6 + $0x8] sm:$0xff]  ;;  %s1497_s8 = sshll.u32 (%p2054_p10), %s1280_s7, 3 }
 0x27e   : > { %1695 = vmatprep.subr.bf16.mxu0 %v2246_v26  ;;  %1727 = vmatprep.subr.bf16.mxu1 %v2277_v44  ;;  %s1283_s9 = sadd.s32 (%p2054_p10), %s1929_s17, %s1497_s8 }
 0x27f   : > { %1155 = vmatprep.mubr.f32.mxu0 %v1944_v24  ;;  %1226 = vmatprep.mubr.f32.mxu1 %v1944_v24  ;;  %v897_v24 = vld [vmem:[%s896_s6] sm:$0xff]  ;;  %s1488_s27 = sshll.u32 (%p2054_p10), %s1283_s9, 3 }
 0x280   : > { %s1285_s28 = scalar_lea.vmem (%p2054_p10), %s2634_s3, %s1488_s27 }
 0x281   : > { %1697 = vmatpush1.bf16.msra.mxu0 %v2258_v34  ;;  %1729 = vmatpush1.bf16.msra.mxu1 %v2283_v48 }
 0x282   : > { %1699 = vmatprep.subr.bf16.mxu0 %v2268_v40  ;;  %1731 = vmatprep.subr.bf16.mxu1 %v2302_v57 }
 0x285   : > { %1701 = vmatpush1.bf16.msra.mxu0 %v2290_v50  ;;  %1733 = vmatpush1.bf16.msra.mxu1 %v2313_v62  ;;  %v900_v50 = vld [vmem:[%s896_s6 + $0x18] sm:$0xff] }
 0x286   : > { %1703 = vmatprep.subr.bf16.mxu0 %v2298_v54  ;;  %1735 = vmatprep.subr.bf16.mxu1 %v2322_v2 }
 0x289   : > { %1705 = vmatpush1.bf16.msra.mxu0 %v2318_v0  ;;  %1737 = vmatpush1.bf16.msra.mxu1 %v2341_v11  ;;  %v899_v0 = vld [vmem:[%s896_s6 + $0x10] sm:$0xff] }
 0x28a   : > { %1707 = vmatprep.subr.bf16.mxu0 %v2330_v5  ;;  %1739 = vmatprep.subr.bf16.mxu1 %v2348_v14 }
 0x28d   : > { %1709 = vmatpush1.bf16.msra.mxu0 %v2344_v12  ;;  %1741 = vmatpush1.bf16.msra.mxu1 %v2366_v27 }
 0x28e   : > { %1711 = vmatprep.subr.bf16.mxu0 %v2356_v17  ;;  %1743 = vmatprep.subr.bf16.mxu1 %v2374_v33 }
 0x291   : > { %1713 = vmatpush1.bf16.msra.mxu0 %v2370_v31  ;;  %1745 = vmatpush1.bf16.msra.mxu1 %v2392_v49 }
 0x292   : > { %1715 = vmatprep.subr.bf16.mxu0 %v2379_v41  ;;  %1747 = vmatprep.subr.bf16.mxu1 %v2401_v55  ;;  %v1070_v41 = vpop.permute.xlu1 %1069 }
 0x293   : > { %vm1071_vm6 = vcmp.eq.s32.totalorder %v1070_v41, 1 }
 0x295   : > { %1717 = vmatpush1.bf16.msra.mxu0 %v2397_v52  ;;  %1749 = vmatpush1.bf16.msra.mxu1 %v2413_v3 }
 0x296   : > { %1719 = vmatprep.subr.bf16.mxu0 %v2406_v59  ;;  %1751 = vmatprep.subr.bf16.mxu1 %v2419_v6  ;;  %v1260_v10 = vpop.permute.xlu1 %1259 }
 0x297   : > { %vm1261_vm7 = vcmp.eq.s32.totalorder %v1260_v10, 1 }
 0x299   : > { %1721 = vmatpush1.bf16.msra.mxu0 %v2416_v4  ;;  %1753 = vmatpush1.bf16.msra.mxu1 %v2425_v9 }
 0x34f   : > { %v967_v26 = vpop.f32.mrb[4].mxu0  ;;  %v1038_v34 = vpop.f32.mrb[4].mxu1 }
 0x350   : > { %v1043_v36 = vadd.f32 %v967_v26, %v897_v24  ;;  %v969_v40 = vpop.f32.mrb[5].mxu0  ;;  %v1040_v44 = vpop.f32.mrb[5].mxu1  ;;  %v1045_v2 = vadd.f32 %v1038_v34, %v899_v0 }
 0x351   : > { %v1044_v48 = vadd.f32 %v969_v40, %v898_v25  ;;  %v1046_v62 = vadd.f32 %v1040_v44, %v900_v50 }
 0x352   : > { %v1047_v54 = vmul.f32 0.5, %v1043_v36  ;;  %v1049_v5 = vmul.f32 0.5, %v1045_v2 }
 0x353   : > { %v1048_v57 = vmul.f32 0.5, %v1044_v48 }
 0x354   : > { %1851 = vtanh.f32 %v1047_v54 }
 0x355   : > { %1853 = vtanh.f32 %v1048_v57 }
 0x356   : > { %1855 = vtanh.f32 %v1046_v62 }
 0x357   : > { %1857 = vtanh.f32 %v1049_v5 }
 0x35e   : > { %v1852_v11 = vpop.eup %1851 }
 0x35f   : > { %v1053_v12 = vmul.f32 0.5, %v1852_v11  ;;  %v1854_v14 = vpop.eup %1853 }
 0x360   : > { %v1054_v27 = vmul.f32 0.5, %v1854_v14  ;;  %v1856_v31 = vpop.eup %1855 }
 0x361   : > { %v1056_v17 = vadd.f32 0.5, %v1053_v12  ;;  %v1858_v3 = vpop.eup %1857 }
 0x362   : > { %v1057_v33 = vadd.f32 0.5, %v1054_v27  ;;  %v1055_v4 = vmul.f32 0.5, %v1858_v3 }
 0x363   : > { %v1061_v49 = vmul.f32 %v1856_v31, %v1056_v17 }
 0x364   : > { %v1060_v52 = vmul.f32 %v1057_v33, %v2535_v22  ;;  %v1058_v6 = vadd.f32 0.5, %v1055_v4 }
 0x366   : > { %v1062_v55 = vadd.f32 %v1061_v49, %v1060_v52 }
 0x368   : > { %1859 = vtanh.f32 %v1062_v55  ;;  %v1073_v59 = vsel %vm1071_vm6, %v1062_v55, %v2535_v22 }
 0x372   : > { %v1860_v9 = vpop.eup %1859 }
 0x373   : > { %v1064_v8 = vmul.f32 %v1860_v9, %v1058_v6 }
 0x375   : > { %v1072_v21 = vsel %vm1071_vm6, %v1064_v8, %v2540_v29  ;;  %v1074_v37 = vsel %vm1071_vm6, %v1064_v8, 0.0 }
 0x376   : > { %1077 = vst [vmem:[%s1076_s29] sm:$0xff] %v1074_v37  ;;  %1156 = vmatmul.mubr.f32.vlgmr.msra.gmra.mrb[6].mxu0 %v1072_v21  ;;  %1227 = vmatmul.mubr.f32.vlgmr.msra.gmra.mrb[6].mxu1 %v1072_v21 }
 0x449   : > { %v1157_v42 = vpop.f32.mrb[6].mxu0  ;;  %v1228_v43 = vpop.f32.mrb[6].mxu1 }
 0x44a   : > { %v1233_v46 = vadd.f32 %v1157_v42, %v1087_v38  ;;  %v1159_v47 = vpop.f32.mrb[7].mxu0  ;;  %v1230_v45 = vpop.f32.mrb[7].mxu1  ;;  %v1235_v61 = vadd.f32 %v1228_v43, %v1089_v60 }
 0x44b   : > { %v1234_v30 = vadd.f32 %v1159_v47, %v1088_v39  ;;  %v1236_v58 = vadd.f32 %v1230_v45, %v1090_v51 }
 0x44c   : > { %v1237_v53 = vmul.f32 0.5, %v1233_v46  ;;  %v1239_v63 = vmul.f32 0.5, %v1235_v61 }
 0x44d   : > { %v1238_v56 = vmul.f32 0.5, %v1234_v30 }
 0x44e   : > { %1861 = vtanh.f32 %v1237_v53 }
 0x44f   : > { %1863 = vtanh.f32 %v1238_v56 }
 0x450   : > { %1865 = vtanh.f32 %v1236_v58 }
 0x451   : > { %1867 = vtanh.f32 %v1239_v63 }
 0x458   : > { %v1862_v1 = vpop.eup %1861 }
 0x459   : > { %v1243_v7 = vmul.f32 0.5, %v1862_v1  ;;  %v1864_v13 = vpop.eup %1863 }
 0x45a   : > { %v1244_v16 = vmul.f32 0.5, %v1864_v13  ;;  %v1866_v18 = vpop.eup %1865 }
 0x45b   : > { %v1246_v15 = vadd.f32 0.5, %v1243_v7  ;;  %v1868_v28 = vpop.eup %1867 }
 0x45c   : > { %v1247_v19 = vadd.f32 0.5, %v1244_v16  ;;  %v1245_v29 = vmul.f32 0.5, %v1868_v28 }
 0x45d   : > { %v1251_v22 = vmul.f32 %v1866_v18, %v1246_v15 }
 0x45e   : > { %v1250_v20 = vmul.f32 %v1247_v19, %v1073_v59  ;;  %v1248_v32 = vadd.f32 0.5, %v1245_v29 }
 0x460   : > { %v1252_v23 = vadd.f32 %v1251_v22, %v1250_v20 }
 0x462   : > { %1869 = vtanh.f32 %v1252_v23  ;;  %v1263_v35 = vsel %vm1261_vm7, %v1252_v23, %v1073_v59 }
 0x463   : > { %1269 = vst [vmem:[#allocation3] sm:$0xff] %v1263_v35 }
 0x46a   : > { %1276 = sbr.rel (!%p2054_p10) target bundleno = 1146 (0x47a), region = 86 }
 0x46c   : > { %v1870_v24 = vpop.eup %1869 }
 0x46d   : > { %v1254_v25 = vmul.f32 %v1870_v24, %v1248_v32 }
 0x46f   : > { %v1262_v26 = vsel %vm1261_vm7, %v1254_v25, %v1072_v21  ;;  %v1264_v34 = vsel %vm1261_vm7, %v1254_v25, 0.0 }
 0x470   : > { %1267 = vst [vmem:[%s1266_s12] sm:$0xff] %v1264_v34  ;;  %1268 = vst [vmem:[#allocation2] sm:$0xff] %v1262_v26 }
 0x477   : > { %v1319_v36 = vld [vmem:[%s2231_s10] sm:$0xff]  ;;  %v1321_v40 = vld [vmem:[%s2231_s10 + $0x8] sm:$0xff]  ;;  %v1323_v44 = vld [vmem:[%s2231_s10 + $0x10] sm:$0xff] }
 0x478   : > { %v1325_v48 = vld [vmem:[%s2231_s10 + $0x18] sm:$0xff]  ;;  %1320 = vst [vmem:[%s1285_s28] sm:$0xff] %v1319_v36  ;;  %1322 = vst [vmem:[%s1285_s28 + $0x10] sm:$0xff] %v1321_v40 }
 0x479   : > { %1324 = vst [vmem:[%s1285_s28 + $0x20] sm:$0xff] %v1323_v44  ;;  %1326 = vst [vmem:[%s1285_s28 + $0x30] sm:$0xff] %v1325_v48 }
 0x47a PF: > { %s13_s20 = sadd.s32 1, %s1941_s20   ;;  %s2638_s12 = smov %s1913_s13 }
 0x47b   : > { %p10_p2 = scmp.ge.s32.totalorder %s13_s20, 6   ;;  %s2639_s13 = smov %s2046_s24 }
 0x47c   : > { %s2640_s14 = smov %s1921_s15  ;;  %s2641_s15 = smov %s2049_s26 }
 0x47d   : > { %s2642_s16 = smov %s1933_s18  ;;  %s2643_s17 = smov %s1937_s19 }
 0x47e   : > { %s2644_s18 = smov %s2647_s22  ;;  %s2645_s19 = smov %s2651_s23 }
 0x47f   :  { %12 = sbr.rel (!%p10_p2) target bundleno = 5 (0x5), region = 171 }

</bundles_post_ra>
